<compile_context>
chip_gen: v7x
topology: tpu7x:2x2x1
jax: 0.10.0
libtpu: 0.0.40
codegen_flags: <defaults>
</compile_context>

<pallas_src>
import jax
import jax.numpy as jnp
from jax import lax
from jax.experimental import pallas as pl
from jax.experimental.pallas import tpu as pltpu

# ----------------------------- configuration -----------------------------
B = 2            # batch
LE = 8           # encoder sequence length
LD = 2 * LE - 1  # decoder sequence length (stack transitions)
CHAR_LEN = 4
NUM_WORDS, WORD_DIM = 20, 16
NUM_CHARS, CHAR_DIM = 20, 8
NUM_POS, POS_DIM = 10, 8
NUM_FILTERS, KERNEL_SIZE = 16, 3
HIDDEN = 32
ARC = 32
TYPE = 16
NUM_LABELS = 5
D_IN = WORD_DIM + NUM_FILTERS + POS_DIM  # 40
T_OUT = CHAR_LEN + KERNEL_SIZE - 1       # conv1d output length (padding = K-1)
N_WORDS = B * LE                         # encoder word positions (time-major rows: e*B + b)
M_ROWS = B * LD                          # decoder rows (time-major rows: t*B + b)
OUT_LANES = 128                          # lane-dense output width


def _vmem_specs(n):
    return [pl.BlockSpec(memory_space=pltpu.MemorySpace.VMEM) for _ in range(n)]


def _elu(y):
    # F.elu(alpha=1); clamp exp argument so the unselected branch never overflows.
    return jnp.where(y > 0, y, jnp.exp(jnp.minimum(y, 0.0)) - 1.0)


def _lstm_cell_merged(gates, c):
    """LSTM cell on a [R, 4H] gate block: full-width sigmoid + tanh, lane-select the
    candidate quarter, then combine. Works for the sublane-stacked fwd+bwd encoder block
    ([2B, 4H]) and the decoder block ([B, 4H]) alike."""
    H = HIDDEN
    lane = lax.broadcasted_iota(jnp.int32, gates.shape, 1)
    is_g = (lane >= 2 * H) & (lane < 3 * H)
    act = jnp.where(is_g, jnp.tanh(gates), jax.nn.sigmoid(gates))
    ig = act[:, 0:H]
    fg = act[:, H:2 * H]
    gg = act[:, 2 * H:3 * H]
    og = act[:, 3 * H:4 * H]
    c_new = fg * c + ig * gg
    return og * jnp.tanh(c_new), c_new


def _sum_all(x):
    """Reduce a 2-D array to a [1, 1] value (stay in vector land end-to-end)."""
    return jnp.sum(jnp.sum(x, axis=1, keepdims=True), axis=0, keepdims=True)


# ----------------------------- the single fused kernel -----------------------------
def stackptr_fused_kernel(
        word_ref, pos_ref, char_ref,
        heads_ref, children_ref, types_ref,
        rowb_col_ref, rowb_row_ref, colb_row_ref,
        convw_ref, convb_ref,
        ewih_ref, ewhh_ref, eb_ref,
        hxw_ref, hxb_ref,
        ctw_ref, ctb_ref,
        dwih_ref, dwhh_ref, db_ref,
        htw_ref, htb_ref,
        utop_ref, ubot_ref,
        uflat_ref, sel_ref, wl_ref, wr_ref, bb_ref,
        sums_ref):
    H = HIDDEN
    N = N_WORDS
    M = M_ROWS

    # ---------------- char CNN: one matmul, max over conv time, tanh ----------------
    y = jnp.dot(char_ref[...], convw_ref[...], preferred_element_type=jnp.float32)  # [T_OUT*N, F]
    cf = y[0:N, :]
    for t in range(1, T_OUT):
        cf = jnp.maximum(cf, y[t * N:(t + 1) * N, :])
    char_feat = jnp.tanh(cf + convb_ref[...])                                        # [N, F]

    # ---------------- src_encoding = cat([word, char, pos]) (time-major rows) -------
    src = jnp.concatenate([word_ref[...], char_feat, pos_ref[...]], axis=1)          # [N, D_IN]

    # ---------------- bidirectional encoder LSTM (fused fwd/bwd) --------------------
    gx = jnp.dot(src, ewih_ref[...], preferred_element_type=jnp.float32) + eb_ref[...]  # [N, 8H]
    ewhh = ewhh_ref[...]                                                                # [H, 8H]
    h2 = jnp.zeros((2 * B, H), jnp.float32)   # rows 0:B = fwd, B:2B = bwd
    c2 = jnp.zeros((2 * B, H), jnp.float32)
    hf_list = [None] * LE
    hb_list = [None] * LE
    for i in range(LE):                        # fully unrolled
        tf = i
        tb = LE - 1 - i
        r = jnp.dot(h2, ewhh, preferred_element_type=jnp.float32)                     # [2B, 8H]
        g_f = gx[tf * B:(tf + 1) * B, 0:4 * H] + r[0:B, 0:4 * H]
        g_b = gx[tb * B:(tb + 1) * B, 4 * H:8 * H] + r[B:2 * B, 4 * H:8 * H]
        gates = jnp.concatenate([g_f, g_b], axis=0)                                   # [2B, 4H]
        h2, c2 = _lstm_cell_merged(gates, c2)
        hf_list[tf] = h2[0:B, :]
        hb_list[tb] = h2[B:2 * B, :]
    hf_all = jnp.concatenate(hf_list, axis=0)                                         # [N, H]
    hb_all = jnp.concatenate(hb_list, axis=0)                                         # [N, H]
    enc = jnp.concatenate([hf_all, hb_all], axis=1)                                   # [N, 2H]

    # decoder init state: cn0 = hx_dense([c_fwd, c_bwd]); hn0 = tanh(cn0)
    cn_cat = jnp.concatenate([c2[0:B, :], c2[B:2 * B, :]], axis=1)                    # [B, 2H]
    cn0 = jnp.dot(cn_cat, hxw_ref[...], preferred_element_type=jnp.float32) + hxb_ref[...]
    hn0 = jnp.tanh(cn0)

    # merged arc_c / type_c projection (ELU)
    ct = _elu(jnp.dot(enc, ctw_ref[...], preferred_element_type=jnp.float32) + ctb_ref[...])
    arc_c = ct[:, 0:ARC]                                                              # [N, ARC]
    type_c = ct[:, ARC:ARC + TYPE]                                                    # [N, TYPE]

    # ---------------- decoder-input gather as a one-hot matmul on the MXU -----------
    col_idx = lax.broadcasted_iota(jnp.int32, (M, N), 1)
    oh_h = (col_idx == heads_ref[...]).astype(jnp.float32)                            # [M, N]
    dec_in = jnp.dot(oh_h, src, preferred_element_type=jnp.float32)                   # [M, D_IN]

    # ---------------- unidirectional decoder LSTM -----------------------------------
    gxd = jnp.dot(dec_in, dwih_ref[...], preferred_element_type=jnp.float32) + db_ref[...]  # [M, 4H]
    dwhh = dwhh_ref[...]
    h = hn0
    c = cn0
    hs = []
    for t in range(LD):                        # fully unrolled
        gates = gxd[t * B:(t + 1) * B, :] + jnp.dot(h, dwhh, preferred_element_type=jnp.float32)
        h, c = _lstm_cell_merged(gates, c)
        hs.append(h)
    hseq = jnp.concatenate(hs, axis=0)                                                # [M, H]

    ht = _elu(jnp.dot(hseq, htw_ref[...], preferred_element_type=jnp.float32) + htb_ref[...])
    arc_h = ht[:, 0:ARC]                                                              # [M, ARC]
    type_h = ht[:, ARC:ARC + TYPE]                                                    # [M, TYPE]

    # ---------------- biaffine arc attention (batched over all decoder rows) --------
    # hU = [arc_h, 1] @ U_aug  (W_e row / W_d column / bias folded in, no lane append)
    hU = jnp.dot(arc_h, utop_ref[...], preferred_element_type=jnp.float32) + ubot_ref[...]   # [M, A+1]
    out_arc = (lax.dot_general(hU[:, 0:ARC], arc_c, (((1,), (1,)), ((), ())),
                               preferred_element_type=jnp.float32)
               + hU[:, ARC:ARC + 1])                                                  # [M, N]
    same_b = rowb_col_ref[...] == colb_row_ref[...]                                   # [M, N] bool
    out_arc = jnp.where(same_b, out_arc, -1e9)

    ma = jnp.max(out_arc, axis=1, keepdims=True)
    za = out_arc - ma
    la_full = za - jnp.log(jnp.sum(jnp.exp(za), axis=1, keepdims=True))               # [M, N]
    prob = jnp.exp(la_full)

    # coverage: block-diagonal lower-triangular cumsum over decoder steps (one matmul)
    r_i = lax.broadcasted_iota(jnp.int32, (M, M), 0)
    r_j = lax.broadcasted_iota(jnp.int32, (M, M), 1)
    tri = ((rowb_col_ref[...] == rowb_row_ref[...]) & (r_j <= r_i)).astype(jnp.float32)
    cov = jnp.dot(tri, prob, preferred_element_type=jnp.float32)                      # [M, N]
    cov_sum = _sum_all(jnp.maximum(cov - 2.0, 0.0))

    # arc gather + leaf masks
    oh_c = (col_idx == children_ref[...]).astype(jnp.float32)                         # [M, N]
    la = jnp.sum(la_full * oh_c, axis=1, keepdims=True)                               # [M, 1]
    mask_leaf = (children_ref[...] == heads_ref[...]).astype(jnp.float32)             # [M, 1]
    arc_leaf = _sum_all(la * mask_leaf)
    arc_non_leaf = _sum_all(la * (1.0 - mask_leaf))

    # ---------------- bilinear label scorer (collapsed onto the MXU) ----------------
    type_c_g = jnp.dot(oh_c, type_c, preferred_element_type=jnp.float32)              # [M, T]
    tall = jnp.dot(type_h, uflat_ref[...], preferred_element_type=jnp.float32)        # [M, nl*T]
    cvt = jnp.concatenate([type_c_g] * NUM_LABELS, axis=1)                            # [M, nl*T]
    out_type = (jnp.dot(tall * cvt, sel_ref[...], preferred_element_type=jnp.float32)
                + jnp.dot(type_h, wl_ref[...], preferred_element_type=jnp.float32)
                + jnp.dot(type_c_g, wr_ref[...], preferred_element_type=jnp.float32)
                + bb_ref[...])                                                        # [M, nl]
    mt = jnp.max(out_type, axis=1, keepdims=True)
    zt = out_type - mt
    lt_full = zt - jnp.log(jnp.sum(jnp.exp(zt), axis=1, keepdims=True))               # [M, nl]
    oh_t = (lax.broadcasted_iota(jnp.int32, (M, NUM_LABELS), 1)
            == types_ref[...]).astype(jnp.float32)
    lt = jnp.sum(lt_full * oh_t, axis=1, keepdims=True)                               # [M, 1]
    type_leaf = _sum_all(lt * mask_leaf)
    type_non_leaf = _sum_all(lt * (1.0 - mask_leaf))

    # ---------------- lane-dense [1, 128] output -------------------------------------
    sums_ref[...] = jnp.concatenate(
        [arc_leaf, arc_non_leaf, type_leaf, type_non_leaf, cov_sum,
         jnp.zeros((1, OUT_LANES - 5), jnp.float32)], axis=1)


# ----------------------------- model forward (loss) -----------------------------
def stackptr_loss(params, input_word, input_char, input_pos,
                  stacked_heads, children, stacked_types):
    H = HIDDEN
    K = KERNEL_SIZE
    M = M_ROWS

    # ---- parameter repacking (tiny XLA ops, hoisted out of the kernel) ----
    ewih = jnp.concatenate([params["enc_f_wih"], params["enc_b_wih"]], axis=1)        # [D_IN, 8H]
    ewhh = jnp.concatenate([params["enc_f_whh"], params["enc_b_whh"]], axis=1)        # [H, 8H]
    eb = jnp.concatenate([params["enc_f_b"], params["enc_b_b"]]).reshape(1, 8 * H)
    ct_w = jnp.concatenate([params["arc_c_w"], params["type_c_w"]], axis=1)           # [2H, ARC+TYPE]
    ct_b = jnp.concatenate([params["arc_c_b"], params["type_c_b"]]).reshape(1, ARC + TYPE)
    ht_w = jnp.concatenate([params["arc_h_w"], params["type_h_w"]], axis=1)           # [H, ARC+TYPE]
    ht_b = jnp.concatenate([params["arc_h_b"], params["type_h_b"]]).reshape(1, ARC + TYPE)
    conv_w2 = params["conv_w"].reshape(NUM_FILTERS, CHAR_DIM * K).T                   # [C*K, F]
    conv_b2 = params["conv_b"].reshape(1, NUM_FILTERS)
    hx_b = params["hx_dense_b"].reshape(1, H)
    dec_b = params["dec_b"].reshape(1, 4 * H)

    # augmented biaffine: u_top = [U | W_d], u_bot = [W_e | b]
    u_top = jnp.concatenate([params["att_U"], params["att_Wd"].reshape(ARC, 1)], axis=1)  # [A, A+1]
    u_bot = jnp.concatenate([params["att_We"], params["att_b"]]).reshape(1, ARC + 1)      # [1, A+1]
    u_flat = jnp.transpose(params["bil_U"], (1, 0, 2)).reshape(TYPE, NUM_LABELS * TYPE)
    lab = jnp.arange(NUM_LABELS, dtype=jnp.int32)
    sel_S = (jnp.repeat(lab, TYPE)[:, None] == lab[None, :]).astype(jnp.float32)          # [nl*T, nl]
    bil_b = params["bil_b"].reshape(1, NUM_LABELS)

    # ---- embeddings (time-major rows e*B + b) + char window unfold (glue) ----
    word_tm = params["word_embedd"][input_word.T].reshape(N_WORDS, WORD_DIM)
    pos_tm = params["pos_embedd"][input_pos.T].reshape(N_WORDS, POS_DIM)
    char_tm = params["char_embedd"][jnp.transpose(input_char, (1, 0, 2))]             # [LE, B, clen, CD]
    char_ncw = jnp.transpose(char_tm.reshape(N_WORDS, CHAR_LEN, CHAR_DIM), (0, 2, 1))  # [N, CD, clen]
    pad = K - 1
    x_pad = jnp.pad(char_ncw, ((0, 0), (0, 0), (pad, pad)))
    win = jnp.stack([x_pad[:, :, t:t + K] for t in range(T_OUT)], axis=0)             # [T_OUT, N, CD, K]
    char_unf = win.reshape(T_OUT * N_WORDS, CHAR_DIM * K)

    # ---- tiny int32 index helpers (time-major decoder rows t*B + b) ----
    bidx = jnp.arange(B, dtype=jnp.int32)
    heads_col = (stacked_heads.astype(jnp.int32).T * B + bidx[None, :]).reshape(M, 1)
    children_col = (children.astype(jnp.int32).T * B + bidx[None, :]).reshape(M, 1)
    types_tm = stacked_types.astype(jnp.int32).T.reshape(M, 1)
    rowb_col = jnp.tile(bidx, LD).reshape(M, 1)
    rowb_row = jnp.tile(bidx, LD).reshape(1, M)
    colb_row = jnp.tile(bidx, LE).reshape(1, N_WORDS)

    # ---- single fused Pallas call: everything stays in VMEM, one [1,128] output ----
    sums = pl.pallas_call(
        stackptr_fused_kernel,
        out_shape=jax.ShapeDtypeStruct((1, OUT_LANES), jnp.float32),
        in_specs=_vmem_specs(30),
        out_specs=pl.BlockSpec(memory_space=pltpu.MemorySpace.VMEM),
    )(word_tm, pos_tm, char_unf,
      heads_col, children_col, types_tm,
      rowb_col, rowb_row, colb_row,
      conv_w2, conv_b2,
      ewih, ewhh, eb,
      params["hx_dense_w"], hx_b,
      ct_w, ct_b,
      params["dec_wih"], params["dec_whh"], dec_b,
      ht_w, ht_b,
      u_top, u_bot,
      u_flat, sel_S, params["bil_Wl"], params["bil_Wr"], bil_b)

    num_leaf = jnp.float32(LE)
    num_non_leaf = jnp.float32(LE - 1)
    return (-sums[0, 0] / num_leaf,
            -sums[0, 1] / num_non_leaf,
            -sums[0, 2] / num_leaf,
            -sums[0, 3] / num_non_leaf,
            sums[0, 4] / (num_leaf + num_non_leaf),
            num_leaf, num_non_leaf)


# ----------------------------- deterministic parameter init -----------------------------
def init_params(key):
    keys = jax.random.split(key, 32)
    it = iter(keys)

    def nrm(shape, scale=0.1):
        return jax.random.normal(next(it), shape, jnp.float32) * scale

    p = {}
    p["word_embedd"] = nrm((NUM_WORDS, WORD_DIM))
    p["char_embedd"] = nrm((NUM_CHARS, CHAR_DIM))
    p["pos_embedd"] = nrm((NUM_POS, POS_DIM))
    p["conv_w"] = nrm((NUM_FILTERS, CHAR_DIM, KERNEL_SIZE))   # torch layout [F, C, K]
    p["conv_b"] = nrm((NUM_FILTERS,))
    for name in ["enc_f", "enc_b", "dec"]:
        p[name + "_wih"] = nrm((D_IN, 4 * HIDDEN))            # stored transposed: [Din, 4H]
        p[name + "_whh"] = nrm((HIDDEN, 4 * HIDDEN))          # [H, 4H]
        p[name + "_b"] = nrm((4 * HIDDEN,))                   # bias_ih + bias_hh combined
    p["hx_dense_w"] = nrm((2 * HIDDEN, HIDDEN)); p["hx_dense_b"] = nrm((HIDDEN,))
    p["arc_h_w"] = nrm((HIDDEN, ARC)); p["arc_h_b"] = nrm((ARC,))
    p["arc_c_w"] = nrm((2 * HIDDEN, ARC)); p["arc_c_b"] = nrm((ARC,))
    p["type_h_w"] = nrm((HIDDEN, TYPE)); p["type_h_b"] = nrm((TYPE,))
    p["type_c_w"] = nrm((2 * HIDDEN, TYPE)); p["type_c_b"] = nrm((TYPE,))
    p["att_U"] = nrm((ARC, ARC)); p["att_Wd"] = nrm((ARC,))
    p["att_We"] = nrm((ARC,)); p["att_b"] = nrm((1,))
    p["bil_U"] = nrm((NUM_LABELS, TYPE, TYPE))
    p["bil_Wl"] = nrm((TYPE, NUM_LABELS)); p["bil_Wr"] = nrm((TYPE, NUM_LABELS))
    p["bil_b"] = nrm((NUM_LABELS,))
    return p


if __name__ == "__main__":
    key = jax.random.PRNGKey(0)
    kp, k1, k2, k3, k4, k5, k6 = jax.random.split(key, 7)
    params = init_params(kp)

    input_word = jax.random.randint(k1, (B, LE), 0, NUM_WORDS, dtype=jnp.int32)
    input_char = jax.random.randint(k2, (B, LE, CHAR_LEN), 0, NUM_CHARS, dtype=jnp.int32)
    input_pos = jax.random.randint(k3, (B, LE), 0, NUM_POS, dtype=jnp.int32)
    stacked_heads = jax.random.randint(k4, (B, LD), 0, LE, dtype=jnp.int32)
    children = jax.random.randint(k5, (B, LD), 0, LE, dtype=jnp.int32)
    stacked_types = jax.random.randint(k6, (B, LD), 0, NUM_LABELS, dtype=jnp.int32)

    fn = jax.jit(stackptr_loss)
    out = fn(params, input_word, input_char, input_pos, stacked_heads, children, stacked_types)
    out = jax.block_until_ready(out)
    print("KERNEL_OK")
</pallas_src>

<mosaic_0001>
module attributes {stable_mosaic.version = 11 : i64} {
  func.func @stackptr_fused_kernel(%arg0: memref<16x16xf32, #tpu.memory_space<vmem>>, %arg1: memref<16x8xf32, #tpu.memory_space<vmem>>, %arg2: memref<96x24xf32, #tpu.memory_space<vmem>>, %arg3: memref<30x1xi32, #tpu.memory_space<vmem>>, %arg4: memref<30x1xi32, #tpu.memory_space<vmem>>, %arg5: memref<30x1xi32, #tpu.memory_space<vmem>>, %arg6: memref<30x1xi32, #tpu.memory_space<vmem>>, %arg7: memref<1x30xi32, #tpu.memory_space<vmem>>, %arg8: memref<1x16xi32, #tpu.memory_space<vmem>>, %arg9: memref<24x16xf32, #tpu.memory_space<vmem>>, %arg10: memref<1x16xf32, #tpu.memory_space<vmem>>, %arg11: memref<40x256xf32, #tpu.memory_space<vmem>>, %arg12: memref<32x256xf32, #tpu.memory_space<vmem>>, %arg13: memref<1x256xf32, #tpu.memory_space<vmem>>, %arg14: memref<64x32xf32, #tpu.memory_space<vmem>>, %arg15: memref<1x32xf32, #tpu.memory_space<vmem>>, %arg16: memref<64x48xf32, #tpu.memory_space<vmem>>, %arg17: memref<1x48xf32, #tpu.memory_space<vmem>>, %arg18: memref<40x128xf32, #tpu.memory_space<vmem>>, %arg19: memref<32x128xf32, #tpu.memory_space<vmem>>, %arg20: memref<1x128xf32, #tpu.memory_space<vmem>>, %arg21: memref<32x48xf32, #tpu.memory_space<vmem>>, %arg22: memref<1x48xf32, #tpu.memory_space<vmem>>, %arg23: memref<32x33xf32, #tpu.memory_space<vmem>>, %arg24: memref<1x33xf32, #tpu.memory_space<vmem>>, %arg25: memref<16x80xf32, #tpu.memory_space<vmem>>, %arg26: memref<80x5xf32, #tpu.memory_space<vmem>>, %arg27: memref<16x5xf32, #tpu.memory_space<vmem>>, %arg28: memref<16x5xf32, #tpu.memory_space<vmem>>, %arg29: memref<1x5xf32, #tpu.memory_space<vmem>>, %arg30: memref<1x128xf32, #tpu.memory_space<vmem>>) attributes {dimension_semantics = [], scalar_prefetch = 0 : i64, scratch_operands = 0 : i64, tpu.core_type = #tpu.core_type<tc>} {
    %c0 = arith.constant 0 : index
    %c0_0 = arith.constant 0 : index
    %0 = vector.load %arg2[%c0, %c0_0] : memref<96x24xf32, #tpu.memory_space<vmem>>, vector<96x24xf32>
    %c0_1 = arith.constant 0 : index
    %c0_2 = arith.constant 0 : index
    %1 = vector.load %arg9[%c0_1, %c0_2] : memref<24x16xf32, #tpu.memory_space<vmem>>, vector<24x16xf32>
    %cst = arith.constant dense<0.000000e+00> : vector<96x16xf32>
    %2 = tpu.matmul %0, %1, %cst {dimension_numbers = #tpu.dot_dimension_numbers<[1], [0], [0], [1], [0, 0, 1, 1], [], []>} : vector<96x24xf32>, vector<24x16xf32>, vector<96x16xf32> -> vector<96x16xf32>
    %3 = vector.extract_strided_slice %2 {offsets = [0, 0], sizes = [16, 16], strides = [1, 1]} : vector<96x16xf32> to vector<16x16xf32>
    %4 = vector.extract_strided_slice %2 {offsets = [16, 0], sizes = [16, 16], strides = [1, 1]} : vector<96x16xf32> to vector<16x16xf32>
    %5 = arith.maximumf %3, %4 : vector<16x16xf32>
    %6 = vector.extract_strided_slice %2 {offsets = [32, 0], sizes = [16, 16], strides = [1, 1]} : vector<96x16xf32> to vector<16x16xf32>
    %7 = arith.maximumf %5, %6 : vector<16x16xf32>
    %8 = vector.extract_strided_slice %2 {offsets = [48, 0], sizes = [16, 16], strides = [1, 1]} : vector<96x16xf32> to vector<16x16xf32>
    %9 = arith.maximumf %7, %8 : vector<16x16xf32>
    %10 = vector.extract_strided_slice %2 {offsets = [64, 0], sizes = [16, 16], strides = [1, 1]} : vector<96x16xf32> to vector<16x16xf32>
    %11 = arith.maximumf %9, %10 : vector<16x16xf32>
    %12 = vector.extract_strided_slice %2 {offsets = [80, 0], sizes = [16, 16], strides = [1, 1]} : vector<96x16xf32> to vector<16x16xf32>
    %13 = arith.maximumf %11, %12 : vector<16x16xf32>
    %c0_3 = arith.constant 0 : index
    %c0_4 = arith.constant 0 : index
    %14 = vector.load %arg10[%c0_3, %c0_4] : memref<1x16xf32, #tpu.memory_space<vmem>>, vector<1x16xf32>
    %15 = vector.broadcast %14 : vector<1x16xf32> to vector<16x16xf32>
    %16 = arith.addf %13, %15 : vector<16x16xf32>
    %17 = math.tanh %16 : vector<16x16xf32>
    %c0_5 = arith.constant 0 : index
    %c0_6 = arith.constant 0 : index
    %18 = vector.load %arg0[%c0_5, %c0_6] : memref<16x16xf32, #tpu.memory_space<vmem>>, vector<16x16xf32>
    %c0_7 = arith.constant 0 : index
    %c0_8 = arith.constant 0 : index
    %19 = vector.load %arg1[%c0_7, %c0_8] : memref<16x8xf32, #tpu.memory_space<vmem>>, vector<16x8xf32>
    %20 = tpu.concatenate %18, %17, %19 in 1 : vector<16x16xf32>, vector<16x16xf32>, vector<16x8xf32> -> vector<16x40xf32>
    %c0_9 = arith.constant 0 : index
    %c0_10 = arith.constant 0 : index
    %21 = vector.load %arg11[%c0_9, %c0_10] : memref<40x256xf32, #tpu.memory_space<vmem>>, vector<40x256xf32>
    %cst_11 = arith.constant dense<0.000000e+00> : vector<16x256xf32>
    %22 = tpu.matmul %20, %21, %cst_11 {dimension_numbers = #tpu.dot_dimension_numbers<[1], [0], [0], [1], [0, 0, 1, 1], [], []>} : vector<16x40xf32>, vector<40x256xf32>, vector<16x256xf32> -> vector<16x256xf32>
    %c0_12 = arith.constant 0 : index
    %c0_13 = arith.constant 0 : index
    %23 = vector.load %arg13[%c0_12, %c0_13] : memref<1x256xf32, #tpu.memory_space<vmem>>, vector<1x256xf32>
    %24 = vector.broadcast %23 : vector<1x256xf32> to vector<16x256xf32>
    %25 = arith.addf %22, %24 : vector<16x256xf32>
    %c0_14 = arith.constant 0 : index
    %c0_15 = arith.constant 0 : index
    %26 = vector.load %arg12[%c0_14, %c0_15] : memref<32x256xf32, #tpu.memory_space<vmem>>, vector<32x256xf32>
    %cst_16 = arith.constant 0.000000e+00 : f32
    %27 = vector.broadcast %cst_16 : f32 to vector<4x32xf32>
    %cst_17 = arith.constant 0.000000e+00 : f32
    %28 = vector.broadcast %cst_17 : f32 to vector<4x32xf32>
    %cst_18 = arith.constant dense<0.000000e+00> : vector<4x256xf32>
    %29 = tpu.matmul %27, %26, %cst_18 {dimension_numbers = #tpu.dot_dimension_numbers<[1], [0], [0], [1], [0, 0, 1, 1], [], []>} : vector<4x32xf32>, vector<32x256xf32>, vector<4x256xf32> -> vector<4x256xf32>
    %30 = vector.extract_strided_slice %25 {offsets = [0, 0], sizes = [2, 128], strides = [1, 1]} : vector<16x256xf32> to vector<2x128xf32>
    %31 = vector.extract_strided_slice %29 {offsets = [0, 0], sizes = [2, 128], strides = [1, 1]} : vector<4x256xf32> to vector<2x128xf32>
    %32 = arith.addf %30, %31 : vector<2x128xf32>
    %33 = vector.extract_strided_slice %25 {offsets = [14, 128], sizes = [2, 128], strides = [1, 1]} : vector<16x256xf32> to vector<2x128xf32>
    %34 = vector.extract_strided_slice %29 {offsets = [2, 128], sizes = [2, 128], strides = [1, 1]} : vector<4x256xf32> to vector<2x128xf32>
    %35 = arith.addf %33, %34 : vector<2x128xf32>
    %36 = tpu.concatenate %32, %35 in 0 : vector<2x128xf32>, vector<2x128xf32> -> vector<4x128xf32>
    %37 = tpu.iota {dimensions = array<i32: 1>} : vector<4x128xi32>
    %c64_i32 = arith.constant 64 : i32
    %38 = vector.broadcast %c64_i32 : i32 to vector<4x128xi32>
    %39 = arith.cmpi sge, %37, %38 : vector<4x128xi32>
    %c96_i32 = arith.constant 96 : i32
    %40 = vector.broadcast %c96_i32 : i32 to vector<4x128xi32>
    %41 = arith.cmpi slt, %37, %40 : vector<4x128xi32>
    %42 = arith.andi %39, %41 : vector<4x128xi1>
    %43 = math.tanh %36 : vector<4x128xf32>
    %44 = arith.negf %36 : vector<4x128xf32>
    %45 = math.exp %44 : vector<4x128xf32>
    %cst_19 = arith.constant 1.000000e+00 : f32
    %46 = vector.broadcast %cst_19 : f32 to vector<4x128xf32>
    %47 = arith.addf %46, %45 : vector<4x128xf32>
    %48 = arith.divf %46, %47 : vector<4x128xf32>
    %49 = arith.select %42, %43, %48 : vector<4x128xi1>, vector<4x128xf32>
    %50 = vector.extract_strided_slice %49 {offsets = [0, 0], sizes = [4, 32], strides = [1, 1]} : vector<4x128xf32> to vector<4x32xf32>
    %51 = vector.extract_strided_slice %49 {offsets = [0, 32], sizes = [4, 32], strides = [1, 1]} : vector<4x128xf32> to vector<4x32xf32>
    %52 = vector.extract_strided_slice %49 {offsets = [0, 64], sizes = [4, 32], strides = [1, 1]} : vector<4x128xf32> to vector<4x32xf32>
    %53 = vector.extract_strided_slice %49 {offsets = [0, 96], sizes = [4, 32], strides = [1, 1]} : vector<4x128xf32> to vector<4x32xf32>
    %54 = arith.mulf %51, %28 : vector<4x32xf32>
    %55 = arith.mulf %50, %52 : vector<4x32xf32>
    %56 = arith.addf %54, %55 : vector<4x32xf32>
    %57 = math.tanh %56 : vector<4x32xf32>
    %58 = arith.mulf %53, %57 : vector<4x32xf32>
    %59 = vector.extract_strided_slice %58 {offsets = [0, 0], sizes = [2, 32], strides = [1, 1]} : vector<4x32xf32> to vector<2x32xf32>
    %60 = vector.extract_strided_slice %58 {offsets = [2, 0], sizes = [2, 32], strides = [1, 1]} : vector<4x32xf32> to vector<2x32xf32>
    %cst_20 = arith.constant dense<0.000000e+00> : vector<4x256xf32>
    %61 = tpu.matmul %58, %26, %cst_20 {dimension_numbers = #tpu.dot_dimension_numbers<[1], [0], [0], [1], [0, 0, 1, 1], [], []>} : vector<4x32xf32>, vector<32x256xf32>, vector<4x256xf32> -> vector<4x256xf32>
    %62 = vector.extract_strided_slice %25 {offsets = [2, 0], sizes = [2, 128], strides = [1, 1]} : vector<16x256xf32> to vector<2x128xf32>
    %63 = vector.extract_strided_slice %61 {offsets = [0, 0], sizes = [2, 128], strides = [1, 1]} : vector<4x256xf32> to vector<2x128xf32>
    %64 = arith.addf %62, %63 : vector<2x128xf32>
    %65 = vector.extract_strided_slice %25 {offsets = [12, 128], sizes = [2, 128], strides = [1, 1]} : vector<16x256xf32> to vector<2x128xf32>
    %66 = vector.extract_strided_slice %61 {offsets = [2, 128], sizes = [2, 128], strides = [1, 1]} : vector<4x256xf32> to vector<2x128xf32>
    %67 = arith.addf %65, %66 : vector<2x128xf32>
    %68 = tpu.concatenate %64, %67 in 0 : vector<2x128xf32>, vector<2x128xf32> -> vector<4x128xf32>
    %69 = tpu.iota {dimensions = array<i32: 1>} : vector<4x128xi32>
    %c64_i32_21 = arith.constant 64 : i32
    %70 = vector.broadcast %c64_i32_21 : i32 to vector<4x128xi32>
    %71 = arith.cmpi sge, %69, %70 : vector<4x128xi32>
    %c96_i32_22 = arith.constant 96 : i32
    %72 = vector.broadcast %c96_i32_22 : i32 to vector<4x128xi32>
    %73 = arith.cmpi slt, %69, %72 : vector<4x128xi32>
    %74 = arith.andi %71, %73 : vector<4x128xi1>
    %75 = math.tanh %68 : vector<4x128xf32>
    %76 = arith.negf %68 : vector<4x128xf32>
    %77 = math.exp %76 : vector<4x128xf32>
    %cst_23 = arith.constant 1.000000e+00 : f32
    %78 = vector.broadcast %cst_23 : f32 to vector<4x128xf32>
    %79 = arith.addf %78, %77 : vector<4x128xf32>
    %80 = arith.divf %78, %79 : vector<4x128xf32>
    %81 = arith.select %74, %75, %80 : vector<4x128xi1>, vector<4x128xf32>
    %82 = vector.extract_strided_slice %81 {offsets = [0, 0], sizes = [4, 32], strides = [1, 1]} : vector<4x128xf32> to vector<4x32xf32>
    %83 = vector.extract_strided_slice %81 {offsets = [0, 32], sizes = [4, 32], strides = [1, 1]} : vector<4x128xf32> to vector<4x32xf32>
    %84 = vector.extract_strided_slice %81 {offsets = [0, 64], sizes = [4, 32], strides = [1, 1]} : vector<4x128xf32> to vector<4x32xf32>
    %85 = vector.extract_strided_slice %81 {offsets = [0, 96], sizes = [4, 32], strides = [1, 1]} : vector<4x128xf32> to vector<4x32xf32>
    %86 = arith.mulf %83, %56 : vector<4x32xf32>
    %87 = arith.mulf %82, %84 : vector<4x32xf32>
    %88 = arith.addf %86, %87 : vector<4x32xf32>
    %89 = math.tanh %88 : vector<4x32xf32>
    %90 = arith.mulf %85, %89 : vector<4x32xf32>
    %91 = vector.extract_strided_slice %90 {offsets = [0, 0], sizes = [2, 32], strides = [1, 1]} : vector<4x32xf32> to vector<2x32xf32>
    %92 = vector.extract_strided_slice %90 {offsets = [2, 0], sizes = [2, 32], strides = [1, 1]} : vector<4x32xf32> to vector<2x32xf32>
    %cst_24 = arith.constant dense<0.000000e+00> : vector<4x256xf32>
    %93 = tpu.matmul %90, %26, %cst_24 {dimension_numbers = #tpu.dot_dimension_numbers<[1], [0], [0], [1], [0, 0, 1, 1], [], []>} : vector<4x32xf32>, vector<32x256xf32>, vector<4x256xf32> -> vector<4x256xf32>
    %94 = vector.extract_strided_slice %25 {offsets = [4, 0], sizes = [2, 128], strides = [1, 1]} : vector<16x256xf32> to vector<2x128xf32>
    %95 = vector.extract_strided_slice %93 {offsets = [0, 0], sizes = [2, 128], strides = [1, 1]} : vector<4x256xf32> to vector<2x128xf32>
    %96 = arith.addf %94, %95 : vector<2x128xf32>
    %97 = vector.extract_strided_slice %25 {offsets = [10, 128], sizes = [2, 128], strides = [1, 1]} : vector<16x256xf32> to vector<2x128xf32>
    %98 = vector.extract_strided_slice %93 {offsets = [2, 128], sizes = [2, 128], strides = [1, 1]} : vector<4x256xf32> to vector<2x128xf32>
    %99 = arith.addf %97, %98 : vector<2x128xf32>
    %100 = tpu.concatenate %96, %99 in 0 : vector<2x128xf32>, vector<2x128xf32> -> vector<4x128xf32>
    %101 = tpu.iota {dimensions = array<i32: 1>} : vector<4x128xi32>
    %c64_i32_25 = arith.constant 64 : i32
    %102 = vector.broadcast %c64_i32_25 : i32 to vector<4x128xi32>
    %103 = arith.cmpi sge, %101, %102 : vector<4x128xi32>
    %c96_i32_26 = arith.constant 96 : i32
    %104 = vector.broadcast %c96_i32_26 : i32 to vector<4x128xi32>
    %105 = arith.cmpi slt, %101, %104 : vector<4x128xi32>
    %106 = arith.andi %103, %105 : vector<4x128xi1>
    %107 = math.tanh %100 : vector<4x128xf32>
    %108 = arith.negf %100 : vector<4x128xf32>
    %109 = math.exp %108 : vector<4x128xf32>
    %cst_27 = arith.constant 1.000000e+00 : f32
    %110 = vector.broadcast %cst_27 : f32 to vector<4x128xf32>
    %111 = arith.addf %110, %109 : vector<4x128xf32>
    %112 = arith.divf %110, %111 : vector<4x128xf32>
    %113 = arith.select %106, %107, %112 : vector<4x128xi1>, vector<4x128xf32>
    %114 = vector.extract_strided_slice %113 {offsets = [0, 0], sizes = [4, 32], strides = [1, 1]} : vector<4x128xf32> to vector<4x32xf32>
    %115 = vector.extract_strided_slice %113 {offsets = [0, 32], sizes = [4, 32], strides = [1, 1]} : vector<4x128xf32> to vector<4x32xf32>
    %116 = vector.extract_strided_slice %113 {offsets = [0, 64], sizes = [4, 32], strides = [1, 1]} : vector<4x128xf32> to vector<4x32xf32>
    %117 = vector.extract_strided_slice %113 {offsets = [0, 96], sizes = [4, 32], strides = [1, 1]} : vector<4x128xf32> to vector<4x32xf32>
    %118 = arith.mulf %115, %88 : vector<4x32xf32>
    %119 = arith.mulf %114, %116 : vector<4x32xf32>
    %120 = arith.addf %118, %119 : vector<4x32xf32>
    %121 = math.tanh %120 : vector<4x32xf32>
    %122 = arith.mulf %117, %121 : vector<4x32xf32>
    %123 = vector.extract_strided_slice %122 {offsets = [0, 0], sizes = [2, 32], strides = [1, 1]} : vector<4x32xf32> to vector<2x32xf32>
    %124 = vector.extract_strided_slice %122 {offsets = [2, 0], sizes = [2, 32], strides = [1, 1]} : vector<4x32xf32> to vector<2x32xf32>
    %cst_28 = arith.constant dense<0.000000e+00> : vector<4x256xf32>
    %125 = tpu.matmul %122, %26, %cst_28 {dimension_numbers = #tpu.dot_dimension_numbers<[1], [0], [0], [1], [0, 0, 1, 1], [], []>} : vector<4x32xf32>, vector<32x256xf32>, vector<4x256xf32> -> vector<4x256xf32>
    %126 = vector.extract_strided_slice %25 {offsets = [6, 0], sizes = [2, 128], strides = [1, 1]} : vector<16x256xf32> to vector<2x128xf32>
    %127 = vector.extract_strided_slice %125 {offsets = [0, 0], sizes = [2, 128], strides = [1, 1]} : vector<4x256xf32> to vector<2x128xf32>
    %128 = arith.addf %126, %127 : vector<2x128xf32>
    %129 = vector.extract_strided_slice %25 {offsets = [8, 128], sizes = [2, 128], strides = [1, 1]} : vector<16x256xf32> to vector<2x128xf32>
    %130 = vector.extract_strided_slice %125 {offsets = [2, 128], sizes = [2, 128], strides = [1, 1]} : vector<4x256xf32> to vector<2x128xf32>
    %131 = arith.addf %129, %130 : vector<2x128xf32>
    %132 = tpu.concatenate %128, %131 in 0 : vector<2x128xf32>, vector<2x128xf32> -> vector<4x128xf32>
    %133 = tpu.iota {dimensions = array<i32: 1>} : vector<4x128xi32>
    %c64_i32_29 = arith.constant 64 : i32
    %134 = vector.broadcast %c64_i32_29 : i32 to vector<4x128xi32>
    %135 = arith.cmpi sge, %133, %134 : vector<4x128xi32>
    %c96_i32_30 = arith.constant 96 : i32
    %136 = vector.broadcast %c96_i32_30 : i32 to vector<4x128xi32>
    %137 = arith.cmpi slt, %133, %136 : vector<4x128xi32>
    %138 = arith.andi %135, %137 : vector<4x128xi1>
    %139 = math.tanh %132 : vector<4x128xf32>
    %140 = arith.negf %132 : vector<4x128xf32>
    %141 = math.exp %140 : vector<4x128xf32>
    %cst_31 = arith.constant 1.000000e+00 : f32
    %142 = vector.broadcast %cst_31 : f32 to vector<4x128xf32>
    %143 = arith.addf %142, %141 : vector<4x128xf32>
    %144 = arith.divf %142, %143 : vector<4x128xf32>
    %145 = arith.select %138, %139, %144 : vector<4x128xi1>, vector<4x128xf32>
    %146 = vector.extract_strided_slice %145 {offsets = [0, 0], sizes = [4, 32], strides = [1, 1]} : vector<4x128xf32> to vector<4x32xf32>
    %147 = vector.extract_strided_slice %145 {offsets = [0, 32], sizes = [4, 32], strides = [1, 1]} : vector<4x128xf32> to vector<4x32xf32>
    %148 = vector.extract_strided_slice %145 {offsets = [0, 64], sizes = [4, 32], strides = [1, 1]} : vector<4x128xf32> to vector<4x32xf32>
    %149 = vector.extract_strided_slice %145 {offsets = [0, 96], sizes = [4, 32], strides = [1, 1]} : vector<4x128xf32> to vector<4x32xf32>
    %150 = arith.mulf %147, %120 : vector<4x32xf32>
    %151 = arith.mulf %146, %148 : vector<4x32xf32>
    %152 = arith.addf %150, %151 : vector<4x32xf32>
    %153 = math.tanh %152 : vector<4x32xf32>
    %154 = arith.mulf %149, %153 : vector<4x32xf32>
    %155 = vector.extract_strided_slice %154 {offsets = [0, 0], sizes = [2, 32], strides = [1, 1]} : vector<4x32xf32> to vector<2x32xf32>
    %156 = vector.extract_strided_slice %154 {offsets = [2, 0], sizes = [2, 32], strides = [1, 1]} : vector<4x32xf32> to vector<2x32xf32>
    %cst_32 = arith.constant dense<0.000000e+00> : vector<4x256xf32>
    %157 = tpu.matmul %154, %26, %cst_32 {dimension_numbers = #tpu.dot_dimension_numbers<[1], [0], [0], [1], [0, 0, 1, 1], [], []>} : vector<4x32xf32>, vector<32x256xf32>, vector<4x256xf32> -> vector<4x256xf32>
    %158 = vector.extract_strided_slice %25 {offsets = [8, 0], sizes = [2, 128], strides = [1, 1]} : vector<16x256xf32> to vector<2x128xf32>
    %159 = vector.extract_strided_slice %157 {offsets = [0, 0], sizes = [2, 128], strides = [1, 1]} : vector<4x256xf32> to vector<2x128xf32>
    %160 = arith.addf %158, %159 : vector<2x128xf32>
    %161 = vector.extract_strided_slice %25 {offsets = [6, 128], sizes = [2, 128], strides = [1, 1]} : vector<16x256xf32> to vector<2x128xf32>
    %162 = vector.extract_strided_slice %157 {offsets = [2, 128], sizes = [2, 128], strides = [1, 1]} : vector<4x256xf32> to vector<2x128xf32>
    %163 = arith.addf %161, %162 : vector<2x128xf32>
    %164 = tpu.concatenate %160, %163 in 0 : vector<2x128xf32>, vector<2x128xf32> -> vector<4x128xf32>
    %165 = tpu.iota {dimensions = array<i32: 1>} : vector<4x128xi32>
    %c64_i32_33 = arith.constant 64 : i32
    %166 = vector.broadcast %c64_i32_33 : i32 to vector<4x128xi32>
    %167 = arith.cmpi sge, %165, %166 : vector<4x128xi32>
    %c96_i32_34 = arith.constant 96 : i32
    %168 = vector.broadcast %c96_i32_34 : i32 to vector<4x128xi32>
    %169 = arith.cmpi slt, %165, %168 : vector<4x128xi32>
    %170 = arith.andi %167, %169 : vector<4x128xi1>
    %171 = math.tanh %164 : vector<4x128xf32>
    %172 = arith.negf %164 : vector<4x128xf32>
    %173 = math.exp %172 : vector<4x128xf32>
    %cst_35 = arith.constant 1.000000e+00 : f32
    %174 = vector.broadcast %cst_35 : f32 to vector<4x128xf32>
    %175 = arith.addf %174, %173 : vector<4x128xf32>
    %176 = arith.divf %174, %175 : vector<4x128xf32>
    %177 = arith.select %170, %171, %176 : vector<4x128xi1>, vector<4x128xf32>
    %178 = vector.extract_strided_slice %177 {offsets = [0, 0], sizes = [4, 32], strides = [1, 1]} : vector<4x128xf32> to vector<4x32xf32>
    %179 = vector.extract_strided_slice %177 {offsets = [0, 32], sizes = [4, 32], strides = [1, 1]} : vector<4x128xf32> to vector<4x32xf32>
    %180 = vector.extract_strided_slice %177 {offsets = [0, 64], sizes = [4, 32], strides = [1, 1]} : vector<4x128xf32> to vector<4x32xf32>
    %181 = vector.extract_strided_slice %177 {offsets = [0, 96], sizes = [4, 32], strides = [1, 1]} : vector<4x128xf32> to vector<4x32xf32>
    %182 = arith.mulf %179, %152 : vector<4x32xf32>
    %183 = arith.mulf %178, %180 : vector<4x32xf32>
    %184 = arith.addf %182, %183 : vector<4x32xf32>
    %185 = math.tanh %184 : vector<4x32xf32>
    %186 = arith.mulf %181, %185 : vector<4x32xf32>
    %187 = vector.extract_strided_slice %186 {offsets = [0, 0], sizes = [2, 32], strides = [1, 1]} : vector<4x32xf32> to vector<2x32xf32>
    %188 = vector.extract_strided_slice %186 {offsets = [2, 0], sizes = [2, 32], strides = [1, 1]} : vector<4x32xf32> to vector<2x32xf32>
    %cst_36 = arith.constant dense<0.000000e+00> : vector<4x256xf32>
    %189 = tpu.matmul %186, %26, %cst_36 {dimension_numbers = #tpu.dot_dimension_numbers<[1], [0], [0], [1], [0, 0, 1, 1], [], []>} : vector<4x32xf32>, vector<32x256xf32>, vector<4x256xf32> -> vector<4x256xf32>
    %190 = vector.extract_strided_slice %25 {offsets = [10, 0], sizes = [2, 128], strides = [1, 1]} : vector<16x256xf32> to vector<2x128xf32>
    %191 = vector.extract_strided_slice %189 {offsets = [0, 0], sizes = [2, 128], strides = [1, 1]} : vector<4x256xf32> to vector<2x128xf32>
    %192 = arith.addf %190, %191 : vector<2x128xf32>
    %193 = vector.extract_strided_slice %25 {offsets = [4, 128], sizes = [2, 128], strides = [1, 1]} : vector<16x256xf32> to vector<2x128xf32>
    %194 = vector.extract_strided_slice %189 {offsets = [2, 128], sizes = [2, 128], strides = [1, 1]} : vector<4x256xf32> to vector<2x128xf32>
    %195 = arith.addf %193, %194 : vector<2x128xf32>
    %196 = tpu.concatenate %192, %195 in 0 : vector<2x128xf32>, vector<2x128xf32> -> vector<4x128xf32>
    %197 = tpu.iota {dimensions = array<i32: 1>} : vector<4x128xi32>
    %c64_i32_37 = arith.constant 64 : i32
    %198 = vector.broadcast %c64_i32_37 : i32 to vector<4x128xi32>
    %199 = arith.cmpi sge, %197, %198 : vector<4x128xi32>
    %c96_i32_38 = arith.constant 96 : i32
    %200 = vector.broadcast %c96_i32_38 : i32 to vector<4x128xi32>
    %201 = arith.cmpi slt, %197, %200 : vector<4x128xi32>
    %202 = arith.andi %199, %201 : vector<4x128xi1>
    %203 = math.tanh %196 : vector<4x128xf32>
    %204 = arith.negf %196 : vector<4x128xf32>
    %205 = math.exp %204 : vector<4x128xf32>
    %cst_39 = arith.constant 1.000000e+00 : f32
    %206 = vector.broadcast %cst_39 : f32 to vector<4x128xf32>
    %207 = arith.addf %206, %205 : vector<4x128xf32>
    %208 = arith.divf %206, %207 : vector<4x128xf32>
    %209 = arith.select %202, %203, %208 : vector<4x128xi1>, vector<4x128xf32>
    %210 = vector.extract_strided_slice %209 {offsets = [0, 0], sizes = [4, 32], strides = [1, 1]} : vector<4x128xf32> to vector<4x32xf32>
    %211 = vector.extract_strided_slice %209 {offsets = [0, 32], sizes = [4, 32], strides = [1, 1]} : vector<4x128xf32> to vector<4x32xf32>
    %212 = vector.extract_strided_slice %209 {offsets = [0, 64], sizes = [4, 32], strides = [1, 1]} : vector<4x128xf32> to vector<4x32xf32>
    %213 = vector.extract_strided_slice %209 {offsets = [0, 96], sizes = [4, 32], strides = [1, 1]} : vector<4x128xf32> to vector<4x32xf32>
    %214 = arith.mulf %211, %184 : vector<4x32xf32>
    %215 = arith.mulf %210, %212 : vector<4x32xf32>
    %216 = arith.addf %214, %215 : vector<4x32xf32>
    %217 = math.tanh %216 : vector<4x32xf32>
    %218 = arith.mulf %213, %217 : vector<4x32xf32>
    %219 = vector.extract_strided_slice %218 {offsets = [0, 0], sizes = [2, 32], strides = [1, 1]} : vector<4x32xf32> to vector<2x32xf32>
    %220 = vector.extract_strided_slice %218 {offsets = [2, 0], sizes = [2, 32], strides = [1, 1]} : vector<4x32xf32> to vector<2x32xf32>
    %cst_40 = arith.constant dense<0.000000e+00> : vector<4x256xf32>
    %221 = tpu.matmul %218, %26, %cst_40 {dimension_numbers = #tpu.dot_dimension_numbers<[1], [0], [0], [1], [0, 0, 1, 1], [], []>} : vector<4x32xf32>, vector<32x256xf32>, vector<4x256xf32> -> vector<4x256xf32>
    %222 = vector.extract_strided_slice %25 {offsets = [12, 0], sizes = [2, 128], strides = [1, 1]} : vector<16x256xf32> to vector<2x128xf32>
    %223 = vector.extract_strided_slice %221 {offsets = [0, 0], sizes = [2, 128], strides = [1, 1]} : vector<4x256xf32> to vector<2x128xf32>
    %224 = arith.addf %222, %223 : vector<2x128xf32>
    %225 = vector.extract_strided_slice %25 {offsets = [2, 128], sizes = [2, 128], strides = [1, 1]} : vector<16x256xf32> to vector<2x128xf32>
    %226 = vector.extract_strided_slice %221 {offsets = [2, 128], sizes = [2, 128], strides = [1, 1]} : vector<4x256xf32> to vector<2x128xf32>
    %227 = arith.addf %225, %226 : vector<2x128xf32>
    %228 = tpu.concatenate %224, %227 in 0 : vector<2x128xf32>, vector<2x128xf32> -> vector<4x128xf32>
    %229 = tpu.iota {dimensions = array<i32: 1>} : vector<4x128xi32>
    %c64_i32_41 = arith.constant 64 : i32
    %230 = vector.broadcast %c64_i32_41 : i32 to vector<4x128xi32>
    %231 = arith.cmpi sge, %229, %230 : vector<4x128xi32>
    %c96_i32_42 = arith.constant 96 : i32
    %232 = vector.broadcast %c96_i32_42 : i32 to vector<4x128xi32>
    %233 = arith.cmpi slt, %229, %232 : vector<4x128xi32>
    %234 = arith.andi %231, %233 : vector<4x128xi1>
    %235 = math.tanh %228 : vector<4x128xf32>
    %236 = arith.negf %228 : vector<4x128xf32>
    %237 = math.exp %236 : vector<4x128xf32>
    %cst_43 = arith.constant 1.000000e+00 : f32
    %238 = vector.broadcast %cst_43 : f32 to vector<4x128xf32>
    %239 = arith.addf %238, %237 : vector<4x128xf32>
    %240 = arith.divf %238, %239 : vector<4x128xf32>
    %241 = arith.select %234, %235, %240 : vector<4x128xi1>, vector<4x128xf32>
    %242 = vector.extract_strided_slice %241 {offsets = [0, 0], sizes = [4, 32], strides = [1, 1]} : vector<4x128xf32> to vector<4x32xf32>
    %243 = vector.extract_strided_slice %241 {offsets = [0, 32], sizes = [4, 32], strides = [1, 1]} : vector<4x128xf32> to vector<4x32xf32>
    %244 = vector.extract_strided_slice %241 {offsets = [0, 64], sizes = [4, 32], strides = [1, 1]} : vector<4x128xf32> to vector<4x32xf32>
    %245 = vector.extract_strided_slice %241 {offsets = [0, 96], sizes = [4, 32], strides = [1, 1]} : vector<4x128xf32> to vector<4x32xf32>
    %246 = arith.mulf %243, %216 : vector<4x32xf32>
    %247 = arith.mulf %242, %244 : vector<4x32xf32>
    %248 = arith.addf %246, %247 : vector<4x32xf32>
    %249 = math.tanh %248 : vector<4x32xf32>
    %250 = arith.mulf %245, %249 : vector<4x32xf32>
    %251 = vector.extract_strided_slice %250 {offsets = [0, 0], sizes = [2, 32], strides = [1, 1]} : vector<4x32xf32> to vector<2x32xf32>
    %252 = vector.extract_strided_slice %250 {offsets = [2, 0], sizes = [2, 32], strides = [1, 1]} : vector<4x32xf32> to vector<2x32xf32>
    %cst_44 = arith.constant dense<0.000000e+00> : vector<4x256xf32>
    %253 = tpu.matmul %250, %26, %cst_44 {dimension_numbers = #tpu.dot_dimension_numbers<[1], [0], [0], [1], [0, 0, 1, 1], [], []>} : vector<4x32xf32>, vector<32x256xf32>, vector<4x256xf32> -> vector<4x256xf32>
    %254 = vector.extract_strided_slice %25 {offsets = [14, 0], sizes = [2, 128], strides = [1, 1]} : vector<16x256xf32> to vector<2x128xf32>
    %255 = vector.extract_strided_slice %253 {offsets = [0, 0], sizes = [2, 128], strides = [1, 1]} : vector<4x256xf32> to vector<2x128xf32>
    %256 = arith.addf %254, %255 : vector<2x128xf32>
    %257 = vector.extract_strided_slice %25 {offsets = [0, 128], sizes = [2, 128], strides = [1, 1]} : vector<16x256xf32> to vector<2x128xf32>
    %258 = vector.extract_strided_slice %253 {offsets = [2, 128], sizes = [2, 128], strides = [1, 1]} : vector<4x256xf32> to vector<2x128xf32>
    %259 = arith.addf %257, %258 : vector<2x128xf32>
    %260 = tpu.concatenate %256, %259 in 0 : vector<2x128xf32>, vector<2x128xf32> -> vector<4x128xf32>
    %261 = tpu.iota {dimensions = array<i32: 1>} : vector<4x128xi32>
    %c64_i32_45 = arith.constant 64 : i32
    %262 = vector.broadcast %c64_i32_45 : i32 to vector<4x128xi32>
    %263 = arith.cmpi sge, %261, %262 : vector<4x128xi32>
    %c96_i32_46 = arith.constant 96 : i32
    %264 = vector.broadcast %c96_i32_46 : i32 to vector<4x128xi32>
    %265 = arith.cmpi slt, %261, %264 : vector<4x128xi32>
    %266 = arith.andi %263, %265 : vector<4x128xi1>
    %267 = math.tanh %260 : vector<4x128xf32>
    %268 = arith.negf %260 : vector<4x128xf32>
    %269 = math.exp %268 : vector<4x128xf32>
    %cst_47 = arith.constant 1.000000e+00 : f32
    %270 = vector.broadcast %cst_47 : f32 to vector<4x128xf32>
    %271 = arith.addf %270, %269 : vector<4x128xf32>
    %272 = arith.divf %270, %271 : vector<4x128xf32>
    %273 = arith.select %266, %267, %272 : vector<4x128xi1>, vector<4x128xf32>
    %274 = vector.extract_strided_slice %273 {offsets = [0, 0], sizes = [4, 32], strides = [1, 1]} : vector<4x128xf32> to vector<4x32xf32>
    %275 = vector.extract_strided_slice %273 {offsets = [0, 32], sizes = [4, 32], strides = [1, 1]} : vector<4x128xf32> to vector<4x32xf32>
    %276 = vector.extract_strided_slice %273 {offsets = [0, 64], sizes = [4, 32], strides = [1, 1]} : vector<4x128xf32> to vector<4x32xf32>
    %277 = vector.extract_strided_slice %273 {offsets = [0, 96], sizes = [4, 32], strides = [1, 1]} : vector<4x128xf32> to vector<4x32xf32>
    %278 = arith.mulf %275, %248 : vector<4x32xf32>
    %279 = arith.mulf %274, %276 : vector<4x32xf32>
    %280 = arith.addf %278, %279 : vector<4x32xf32>
    %281 = math.tanh %280 : vector<4x32xf32>
    %282 = arith.mulf %277, %281 : vector<4x32xf32>
    %283 = vector.extract_strided_slice %282 {offsets = [0, 0], sizes = [2, 32], strides = [1, 1]} : vector<4x32xf32> to vector<2x32xf32>
    %284 = vector.extract_strided_slice %282 {offsets = [2, 0], sizes = [2, 32], strides = [1, 1]} : vector<4x32xf32> to vector<2x32xf32>
    %285 = tpu.concatenate %59, %91, %123, %155, %187, %219, %251, %283 in 0 : vector<2x32xf32>, vector<2x32xf32>, vector<2x32xf32>, vector<2x32xf32>, vector<2x32xf32>, vector<2x32xf32>, vector<2x32xf32>, vector<2x32xf32> -> vector<16x32xf32>
    %286 = tpu.concatenate %284, %252, %220, %188, %156, %124, %92, %60 in 0 : vector<2x32xf32>, vector<2x32xf32>, vector<2x32xf32>, vector<2x32xf32>, vector<2x32xf32>, vector<2x32xf32>, vector<2x32xf32>, vector<2x32xf32> -> vector<16x32xf32>
    %287 = tpu.concatenate %285, %286 in 1 : vector<16x32xf32>, vector<16x32xf32> -> vector<16x64xf32>
    %288 = vector.extract_strided_slice %280 {offsets = [0, 0], sizes = [2, 32], strides = [1, 1]} : vector<4x32xf32> to vector<2x32xf32>
    %289 = vector.extract_strided_slice %280 {offsets = [2, 0], sizes = [2, 32], strides = [1, 1]} : vector<4x32xf32> to vector<2x32xf32>
    %290 = tpu.concatenate %288, %289 in 1 : vector<2x32xf32>, vector<2x32xf32> -> vector<2x64xf32>
    %c0_48 = arith.constant 0 : index
    %c0_49 = arith.constant 0 : index
    %291 = vector.load %arg14[%c0_48, %c0_49] : memref<64x32xf32, #tpu.memory_space<vmem>>, vector<64x32xf32>
    %cst_50 = arith.constant dense<0.000000e+00> : vector<2x32xf32>
    %292 = tpu.matmul %290, %291, %cst_50 {dimension_numbers = #tpu.dot_dimension_numbers<[1], [0], [0], [1], [0, 0, 1, 1], [], []>} : vector<2x64xf32>, vector<64x32xf32>, vector<2x32xf32> -> vector<2x32xf32>
    %c0_51 = arith.constant 0 : index
    %c0_52 = arith.constant 0 : index
    %293 = vector.load %arg15[%c0_51, %c0_52] : memref<1x32xf32, #tpu.memory_space<vmem>>, vector<1x32xf32>
    %294 = vector.broadcast %293 : vector<1x32xf32> to vector<2x32xf32>
    %295 = arith.addf %292, %294 : vector<2x32xf32>
    %296 = math.tanh %295 : vector<2x32xf32>
    %c0_53 = arith.constant 0 : index
    %c0_54 = arith.constant 0 : index
    %297 = vector.load %arg16[%c0_53, %c0_54] : memref<64x48xf32, #tpu.memory_space<vmem>>, vector<64x48xf32>
    %cst_55 = arith.constant dense<0.000000e+00> : vector<16x48xf32>
    %298 = tpu.matmul %287, %297, %cst_55 {dimension_numbers = #tpu.dot_dimension_numbers<[1], [0], [0], [1], [0, 0, 1, 1], [], []>} : vector<16x64xf32>, vector<64x48xf32>, vector<16x48xf32> -> vector<16x48xf32>
    %c0_56 = arith.constant 0 : index
    %c0_57 = arith.constant 0 : index
    %299 = vector.load %arg17[%c0_56, %c0_57] : memref<1x48xf32, #tpu.memory_space<vmem>>, vector<1x48xf32>
    %300 = vector.broadcast %299 : vector<1x48xf32> to vector<16x48xf32>
    %301 = arith.addf %298, %300 : vector<16x48xf32>
    %cst_58 = arith.constant 0.000000e+00 : f32
    %302 = vector.broadcast %cst_58 : f32 to vector<16x48xf32>
    %303 = arith.cmpf ogt, %301, %302 : vector<16x48xf32>
    %cst_59 = arith.constant 0.000000e+00 : f32
    %304 = vector.broadcast %cst_59 : f32 to vector<16x48xf32>
    %305 = arith.minimumf %301, %304 : vector<16x48xf32>
    %306 = math.exp %305 : vector<16x48xf32>
    %cst_60 = arith.constant 1.000000e+00 : f32
    %307 = vector.broadcast %cst_60 : f32 to vector<16x48xf32>
    %308 = arith.subf %306, %307 : vector<16x48xf32>
    %309 = arith.select %303, %301, %308 : vector<16x48xi1>, vector<16x48xf32>
    %310 = vector.extract_strided_slice %309 {offsets = [0, 0], sizes = [16, 32], strides = [1, 1]} : vector<16x48xf32> to vector<16x32xf32>
    %311 = vector.extract_strided_slice %309 {offsets = [0, 32], sizes = [16, 16], strides = [1, 1]} : vector<16x48xf32> to vector<16x16xf32>
    %312 = tpu.iota {dimensions = array<i32: 1>} : vector<30x16xi32>
    %c0_61 = arith.constant 0 : index
    %c0_62 = arith.constant 0 : index
    %313 = vector.load %arg3[%c0_61, %c0_62] : memref<30x1xi32, #tpu.memory_space<vmem>>, vector<30x1xi32>
    %314 = vector.broadcast %313 : vector<30x1xi32> to vector<30x16xi32>
    %315 = arith.cmpi eq, %312, %314 : vector<30x16xi32>
    %316 = arith.extui %315 : vector<30x16xi1> to vector<30x16xi32>
    %317 = arith.sitofp %316 : vector<30x16xi32> to vector<30x16xf32>
    %cst_63 = arith.constant dense<0.000000e+00> : vector<30x40xf32>
    %318 = tpu.matmul %317, %20, %cst_63 {dimension_numbers = #tpu.dot_dimension_numbers<[1], [0], [0], [1], [0, 0, 1, 1], [], []>} : vector<30x16xf32>, vector<16x40xf32>, vector<30x40xf32> -> vector<30x40xf32>
    %c0_64 = arith.constant 0 : index
    %c0_65 = arith.constant 0 : index
    %319 = vector.load %arg18[%c0_64, %c0_65] : memref<40x128xf32, #tpu.memory_space<vmem>>, vector<40x128xf32>
    %cst_66 = arith.constant dense<0.000000e+00> : vector<30x128xf32>
    %320 = tpu.matmul %318, %319, %cst_66 {dimension_numbers = #tpu.dot_dimension_numbers<[1], [0], [0], [1], [0, 0, 1, 1], [], []>} : vector<30x40xf32>, vector<40x128xf32>, vector<30x128xf32> -> vector<30x128xf32>
    %c0_67 = arith.constant 0 : index
    %c0_68 = arith.constant 0 : index
    %321 = vector.load %arg20[%c0_67, %c0_68] : memref<1x128xf32, #tpu.memory_space<vmem>>, vector<1x128xf32>
    %322 = vector.broadcast %321 : vector<1x128xf32> to vector<30x128xf32>
    %323 = arith.addf %320, %322 : vector<30x128xf32>
    %c0_69 = arith.constant 0 : index
    %c0_70 = arith.constant 0 : index
    %324 = vector.load %arg19[%c0_69, %c0_70] : memref<32x128xf32, #tpu.memory_space<vmem>>, vector<32x128xf32>
    %325 = vector.extract_strided_slice %323 {offsets = [0, 0], sizes = [2, 128], strides = [1, 1]} : vector<30x128xf32> to vector<2x128xf32>
    %cst_71 = arith.constant dense<0.000000e+00> : vector<2x128xf32>
    %326 = tpu.matmul %296, %324, %cst_71 {dimension_numbers = #tpu.dot_dimension_numbers<[1], [0], [0], [1], [0, 0, 1, 1], [], []>} : vector<2x32xf32>, vector<32x128xf32>, vector<2x128xf32> -> vector<2x128xf32>
    %327 = arith.addf %325, %326 : vector<2x128xf32>
    %328 = tpu.iota {dimensions = array<i32: 1>} : vector<2x128xi32>
    %c64_i32_72 = arith.constant 64 : i32
    %329 = vector.broadcast %c64_i32_72 : i32 to vector<2x128xi32>
    %330 = arith.cmpi sge, %328, %329 : vector<2x128xi32>
    %c96_i32_73 = arith.constant 96 : i32
    %331 = vector.broadcast %c96_i32_73 : i32 to vector<2x128xi32>
    %332 = arith.cmpi slt, %328, %331 : vector<2x128xi32>
    %333 = arith.andi %330, %332 : vector<2x128xi1>
    %334 = math.tanh %327 : vector<2x128xf32>
    %335 = arith.negf %327 : vector<2x128xf32>
    %336 = math.exp %335 : vector<2x128xf32>
    %cst_74 = arith.constant 1.000000e+00 : f32
    %337 = vector.broadcast %cst_74 : f32 to vector<2x128xf32>
    %338 = arith.addf %337, %336 : vector<2x128xf32>
    %339 = arith.divf %337, %338 : vector<2x128xf32>
    %340 = arith.select %333, %334, %339 : vector<2x128xi1>, vector<2x128xf32>
    %341 = vector.extract_strided_slice %340 {offsets = [0, 0], sizes = [2, 32], strides = [1, 1]} : vector<2x128xf32> to vector<2x32xf32>
    %342 = vector.extract_strided_slice %340 {offsets = [0, 32], sizes = [2, 32], strides = [1, 1]} : vector<2x128xf32> to vector<2x32xf32>
    %343 = vector.extract_strided_slice %340 {offsets = [0, 64], sizes = [2, 32], strides = [1, 1]} : vector<2x128xf32> to vector<2x32xf32>
    %344 = vector.extract_strided_slice %340 {offsets = [0, 96], sizes = [2, 32], strides = [1, 1]} : vector<2x128xf32> to vector<2x32xf32>
    %345 = arith.mulf %342, %295 : vector<2x32xf32>
    %346 = arith.mulf %341, %343 : vector<2x32xf32>
    %347 = arith.addf %345, %346 : vector<2x32xf32>
    %348 = math.tanh %347 : vector<2x32xf32>
    %349 = arith.mulf %344, %348 : vector<2x32xf32>
    %350 = vector.extract_strided_slice %323 {offsets = [2, 0], sizes = [2, 128], strides = [1, 1]} : vector<30x128xf32> to vector<2x128xf32>
    %cst_75 = arith.constant dense<0.000000e+00> : vector<2x128xf32>
    %351 = tpu.matmul %349, %324, %cst_75 {dimension_numbers = #tpu.dot_dimension_numbers<[1], [0], [0], [1], [0, 0, 1, 1], [], []>} : vector<2x32xf32>, vector<32x128xf32>, vector<2x128xf32> -> vector<2x128xf32>
    %352 = arith.addf %350, %351 : vector<2x128xf32>
    %353 = tpu.iota {dimensions = array<i32: 1>} : vector<2x128xi32>
    %c64_i32_76 = arith.constant 64 : i32
    %354 = vector.broadcast %c64_i32_76 : i32 to vector<2x128xi32>
    %355 = arith.cmpi sge, %353, %354 : vector<2x128xi32>
    %c96_i32_77 = arith.constant 96 : i32
    %356 = vector.broadcast %c96_i32_77 : i32 to vector<2x128xi32>
    %357 = arith.cmpi slt, %353, %356 : vector<2x128xi32>
    %358 = arith.andi %355, %357 : vector<2x128xi1>
    %359 = math.tanh %352 : vector<2x128xf32>
    %360 = arith.negf %352 : vector<2x128xf32>
    %361 = math.exp %360 : vector<2x128xf32>
    %cst_78 = arith.constant 1.000000e+00 : f32
    %362 = vector.broadcast %cst_78 : f32 to vector<2x128xf32>
    %363 = arith.addf %362, %361 : vector<2x128xf32>
    %364 = arith.divf %362, %363 : vector<2x128xf32>
    %365 = arith.select %358, %359, %364 : vector<2x128xi1>, vector<2x128xf32>
    %366 = vector.extract_strided_slice %365 {offsets = [0, 0], sizes = [2, 32], strides = [1, 1]} : vector<2x128xf32> to vector<2x32xf32>
    %367 = vector.extract_strided_slice %365 {offsets = [0, 32], sizes = [2, 32], strides = [1, 1]} : vector<2x128xf32> to vector<2x32xf32>
    %368 = vector.extract_strided_slice %365 {offsets = [0, 64], sizes = [2, 32], strides = [1, 1]} : vector<2x128xf32> to vector<2x32xf32>
    %369 = vector.extract_strided_slice %365 {offsets = [0, 96], sizes = [2, 32], strides = [1, 1]} : vector<2x128xf32> to vector<2x32xf32>
    %370 = arith.mulf %367, %347 : vector<2x32xf32>
    %371 = arith.mulf %366, %368 : vector<2x32xf32>
    %372 = arith.addf %370, %371 : vector<2x32xf32>
    %373 = math.tanh %372 : vector<2x32xf32>
    %374 = arith.mulf %369, %373 : vector<2x32xf32>
    %375 = vector.extract_strided_slice %323 {offsets = [4, 0], sizes = [2, 128], strides = [1, 1]} : vector<30x128xf32> to vector<2x128xf32>
    %cst_79 = arith.constant dense<0.000000e+00> : vector<2x128xf32>
    %376 = tpu.matmul %374, %324, %cst_79 {dimension_numbers = #tpu.dot_dimension_numbers<[1], [0], [0], [1], [0, 0, 1, 1], [], []>} : vector<2x32xf32>, vector<32x128xf32>, vector<2x128xf32> -> vector<2x128xf32>
    %377 = arith.addf %375, %376 : vector<2x128xf32>
    %378 = tpu.iota {dimensions = array<i32: 1>} : vector<2x128xi32>
    %c64_i32_80 = arith.constant 64 : i32
    %379 = vector.broadcast %c64_i32_80 : i32 to vector<2x128xi32>
    %380 = arith.cmpi sge, %378, %379 : vector<2x128xi32>
    %c96_i32_81 = arith.constant 96 : i32
    %381 = vector.broadcast %c96_i32_81 : i32 to vector<2x128xi32>
    %382 = arith.cmpi slt, %378, %381 : vector<2x128xi32>
    %383 = arith.andi %380, %382 : vector<2x128xi1>
    %384 = math.tanh %377 : vector<2x128xf32>
    %385 = arith.negf %377 : vector<2x128xf32>
    %386 = math.exp %385 : vector<2x128xf32>
    %cst_82 = arith.constant 1.000000e+00 : f32
    %387 = vector.broadcast %cst_82 : f32 to vector<2x128xf32>
    %388 = arith.addf %387, %386 : vector<2x128xf32>
    %389 = arith.divf %387, %388 : vector<2x128xf32>
    %390 = arith.select %383, %384, %389 : vector<2x128xi1>, vector<2x128xf32>
    %391 = vector.extract_strided_slice %390 {offsets = [0, 0], sizes = [2, 32], strides = [1, 1]} : vector<2x128xf32> to vector<2x32xf32>
    %392 = vector.extract_strided_slice %390 {offsets = [0, 32], sizes = [2, 32], strides = [1, 1]} : vector<2x128xf32> to vector<2x32xf32>
    %393 = vector.extract_strided_slice %390 {offsets = [0, 64], sizes = [2, 32], strides = [1, 1]} : vector<2x128xf32> to vector<2x32xf32>
    %394 = vector.extract_strided_slice %390 {offsets = [0, 96], sizes = [2, 32], strides = [1, 1]} : vector<2x128xf32> to vector<2x32xf32>
    %395 = arith.mulf %392, %372 : vector<2x32xf32>
    %396 = arith.mulf %391, %393 : vector<2x32xf32>
    %397 = arith.addf %395, %396 : vector<2x32xf32>
    %398 = math.tanh %397 : vector<2x32xf32>
    %399 = arith.mulf %394, %398 : vector<2x32xf32>
    %400 = vector.extract_strided_slice %323 {offsets = [6, 0], sizes = [2, 128], strides = [1, 1]} : vector<30x128xf32> to vector<2x128xf32>
    %cst_83 = arith.constant dense<0.000000e+00> : vector<2x128xf32>
    %401 = tpu.matmul %399, %324, %cst_83 {dimension_numbers = #tpu.dot_dimension_numbers<[1], [0], [0], [1], [0, 0, 1, 1], [], []>} : vector<2x32xf32>, vector<32x128xf32>, vector<2x128xf32> -> vector<2x128xf32>
    %402 = arith.addf %400, %401 : vector<2x128xf32>
    %403 = tpu.iota {dimensions = array<i32: 1>} : vector<2x128xi32>
    %c64_i32_84 = arith.constant 64 : i32
    %404 = vector.broadcast %c64_i32_84 : i32 to vector<2x128xi32>
    %405 = arith.cmpi sge, %403, %404 : vector<2x128xi32>
    %c96_i32_85 = arith.constant 96 : i32
    %406 = vector.broadcast %c96_i32_85 : i32 to vector<2x128xi32>
    %407 = arith.cmpi slt, %403, %406 : vector<2x128xi32>
    %408 = arith.andi %405, %407 : vector<2x128xi1>
    %409 = math.tanh %402 : vector<2x128xf32>
    %410 = arith.negf %402 : vector<2x128xf32>
    %411 = math.exp %410 : vector<2x128xf32>
    %cst_86 = arith.constant 1.000000e+00 : f32
    %412 = vector.broadcast %cst_86 : f32 to vector<2x128xf32>
    %413 = arith.addf %412, %411 : vector<2x128xf32>
    %414 = arith.divf %412, %413 : vector<2x128xf32>
    %415 = arith.select %408, %409, %414 : vector<2x128xi1>, vector<2x128xf32>
    %416 = vector.extract_strided_slice %415 {offsets = [0, 0], sizes = [2, 32], strides = [1, 1]} : vector<2x128xf32> to vector<2x32xf32>
    %417 = vector.extract_strided_slice %415 {offsets = [0, 32], sizes = [2, 32], strides = [1, 1]} : vector<2x128xf32> to vector<2x32xf32>
    %418 = vector.extract_strided_slice %415 {offsets = [0, 64], sizes = [2, 32], strides = [1, 1]} : vector<2x128xf32> to vector<2x32xf32>
    %419 = vector.extract_strided_slice %415 {offsets = [0, 96], sizes = [2, 32], strides = [1, 1]} : vector<2x128xf32> to vector<2x32xf32>
    %420 = arith.mulf %417, %397 : vector<2x32xf32>
    %421 = arith.mulf %416, %418 : vector<2x32xf32>
    %422 = arith.addf %420, %421 : vector<2x32xf32>
    %423 = math.tanh %422 : vector<2x32xf32>
    %424 = arith.mulf %419, %423 : vector<2x32xf32>
    %425 = vector.extract_strided_slice %323 {offsets = [8, 0], sizes = [2, 128], strides = [1, 1]} : vector<30x128xf32> to vector<2x128xf32>
    %cst_87 = arith.constant dense<0.000000e+00> : vector<2x128xf32>
    %426 = tpu.matmul %424, %324, %cst_87 {dimension_numbers = #tpu.dot_dimension_numbers<[1], [0], [0], [1], [0, 0, 1, 1], [], []>} : vector<2x32xf32>, vector<32x128xf32>, vector<2x128xf32> -> vector<2x128xf32>
    %427 = arith.addf %425, %426 : vector<2x128xf32>
    %428 = tpu.iota {dimensions = array<i32: 1>} : vector<2x128xi32>
    %c64_i32_88 = arith.constant 64 : i32
    %429 = vector.broadcast %c64_i32_88 : i32 to vector<2x128xi32>
    %430 = arith.cmpi sge, %428, %429 : vector<2x128xi32>
    %c96_i32_89 = arith.constant 96 : i32
    %431 = vector.broadcast %c96_i32_89 : i32 to vector<2x128xi32>
    %432 = arith.cmpi slt, %428, %431 : vector<2x128xi32>
    %433 = arith.andi %430, %432 : vector<2x128xi1>
    %434 = math.tanh %427 : vector<2x128xf32>
    %435 = arith.negf %427 : vector<2x128xf32>
    %436 = math.exp %435 : vector<2x128xf32>
    %cst_90 = arith.constant 1.000000e+00 : f32
    %437 = vector.broadcast %cst_90 : f32 to vector<2x128xf32>
    %438 = arith.addf %437, %436 : vector<2x128xf32>
    %439 = arith.divf %437, %438 : vector<2x128xf32>
    %440 = arith.select %433, %434, %439 : vector<2x128xi1>, vector<2x128xf32>
    %441 = vector.extract_strided_slice %440 {offsets = [0, 0], sizes = [2, 32], strides = [1, 1]} : vector<2x128xf32> to vector<2x32xf32>
    %442 = vector.extract_strided_slice %440 {offsets = [0, 32], sizes = [2, 32], strides = [1, 1]} : vector<2x128xf32> to vector<2x32xf32>
    %443 = vector.extract_strided_slice %440 {offsets = [0, 64], sizes = [2, 32], strides = [1, 1]} : vector<2x128xf32> to vector<2x32xf32>
    %444 = vector.extract_strided_slice %440 {offsets = [0, 96], sizes = [2, 32], strides = [1, 1]} : vector<2x128xf32> to vector<2x32xf32>
    %445 = arith.mulf %442, %422 : vector<2x32xf32>
    %446 = arith.mulf %441, %443 : vector<2x32xf32>
    %447 = arith.addf %445, %446 : vector<2x32xf32>
    %448 = math.tanh %447 : vector<2x32xf32>
    %449 = arith.mulf %444, %448 : vector<2x32xf32>
    %450 = vector.extract_strided_slice %323 {offsets = [10, 0], sizes = [2, 128], strides = [1, 1]} : vector<30x128xf32> to vector<2x128xf32>
    %cst_91 = arith.constant dense<0.000000e+00> : vector<2x128xf32>
    %451 = tpu.matmul %449, %324, %cst_91 {dimension_numbers = #tpu.dot_dimension_numbers<[1], [0], [0], [1], [0, 0, 1, 1], [], []>} : vector<2x32xf32>, vector<32x128xf32>, vector<2x128xf32> -> vector<2x128xf32>
    %452 = arith.addf %450, %451 : vector<2x128xf32>
    %453 = tpu.iota {dimensions = array<i32: 1>} : vector<2x128xi32>
    %c64_i32_92 = arith.constant 64 : i32
    %454 = vector.broadcast %c64_i32_92 : i32 to vector<2x128xi32>
    %455 = arith.cmpi sge, %453, %454 : vector<2x128xi32>
    %c96_i32_93 = arith.constant 96 : i32
    %456 = vector.broadcast %c96_i32_93 : i32 to vector<2x128xi32>
    %457 = arith.cmpi slt, %453, %456 : vector<2x128xi32>
    %458 = arith.andi %455, %457 : vector<2x128xi1>
    %459 = math.tanh %452 : vector<2x128xf32>
    %460 = arith.negf %452 : vector<2x128xf32>
    %461 = math.exp %460 : vector<2x128xf32>
    %cst_94 = arith.constant 1.000000e+00 : f32
    %462 = vector.broadcast %cst_94 : f32 to vector<2x128xf32>
    %463 = arith.addf %462, %461 : vector<2x128xf32>
    %464 = arith.divf %462, %463 : vector<2x128xf32>
    %465 = arith.select %458, %459, %464 : vector<2x128xi1>, vector<2x128xf32>
    %466 = vector.extract_strided_slice %465 {offsets = [0, 0], sizes = [2, 32], strides = [1, 1]} : vector<2x128xf32> to vector<2x32xf32>
    %467 = vector.extract_strided_slice %465 {offsets = [0, 32], sizes = [2, 32], strides = [1, 1]} : vector<2x128xf32> to vector<2x32xf32>
    %468 = vector.extract_strided_slice %465 {offsets = [0, 64], sizes = [2, 32], strides = [1, 1]} : vector<2x128xf32> to vector<2x32xf32>
    %469 = vector.extract_strided_slice %465 {offsets = [0, 96], sizes = [2, 32], strides = [1, 1]} : vector<2x128xf32> to vector<2x32xf32>
    %470 = arith.mulf %467, %447 : vector<2x32xf32>
    %471 = arith.mulf %466, %468 : vector<2x32xf32>
    %472 = arith.addf %470, %471 : vector<2x32xf32>
    %473 = math.tanh %472 : vector<2x32xf32>
    %474 = arith.mulf %469, %473 : vector<2x32xf32>
    %475 = vector.extract_strided_slice %323 {offsets = [12, 0], sizes = [2, 128], strides = [1, 1]} : vector<30x128xf32> to vector<2x128xf32>
    %cst_95 = arith.constant dense<0.000000e+00> : vector<2x128xf32>
    %476 = tpu.matmul %474, %324, %cst_95 {dimension_numbers = #tpu.dot_dimension_numbers<[1], [0], [0], [1], [0, 0, 1, 1], [], []>} : vector<2x32xf32>, vector<32x128xf32>, vector<2x128xf32> -> vector<2x128xf32>
    %477 = arith.addf %475, %476 : vector<2x128xf32>
    %478 = tpu.iota {dimensions = array<i32: 1>} : vector<2x128xi32>
    %c64_i32_96 = arith.constant 64 : i32
    %479 = vector.broadcast %c64_i32_96 : i32 to vector<2x128xi32>
    %480 = arith.cmpi sge, %478, %479 : vector<2x128xi32>
    %c96_i32_97 = arith.constant 96 : i32
    %481 = vector.broadcast %c96_i32_97 : i32 to vector<2x128xi32>
    %482 = arith.cmpi slt, %478, %481 : vector<2x128xi32>
    %483 = arith.andi %480, %482 : vector<2x128xi1>
    %484 = math.tanh %477 : vector<2x128xf32>
    %485 = arith.negf %477 : vector<2x128xf32>
    %486 = math.exp %485 : vector<2x128xf32>
    %cst_98 = arith.constant 1.000000e+00 : f32
    %487 = vector.broadcast %cst_98 : f32 to vector<2x128xf32>
    %488 = arith.addf %487, %486 : vector<2x128xf32>
    %489 = arith.divf %487, %488 : vector<2x128xf32>
    %490 = arith.select %483, %484, %489 : vector<2x128xi1>, vector<2x128xf32>
    %491 = vector.extract_strided_slice %490 {offsets = [0, 0], sizes = [2, 32], strides = [1, 1]} : vector<2x128xf32> to vector<2x32xf32>
    %492 = vector.extract_strided_slice %490 {offsets = [0, 32], sizes = [2, 32], strides = [1, 1]} : vector<2x128xf32> to vector<2x32xf32>
    %493 = vector.extract_strided_slice %490 {offsets = [0, 64], sizes = [2, 32], strides = [1, 1]} : vector<2x128xf32> to vector<2x32xf32>
    %494 = vector.extract_strided_slice %490 {offsets = [0, 96], sizes = [2, 32], strides = [1, 1]} : vector<2x128xf32> to vector<2x32xf32>
    %495 = arith.mulf %492, %472 : vector<2x32xf32>
    %496 = arith.mulf %491, %493 : vector<2x32xf32>
    %497 = arith.addf %495, %496 : vector<2x32xf32>
    %498 = math.tanh %497 : vector<2x32xf32>
    %499 = arith.mulf %494, %498 : vector<2x32xf32>
    %500 = vector.extract_strided_slice %323 {offsets = [14, 0], sizes = [2, 128], strides = [1, 1]} : vector<30x128xf32> to vector<2x128xf32>
    %cst_99 = arith.constant dense<0.000000e+00> : vector<2x128xf32>
    %501 = tpu.matmul %499, %324, %cst_99 {dimension_numbers = #tpu.dot_dimension_numbers<[1], [0], [0], [1], [0, 0, 1, 1], [], []>} : vector<2x32xf32>, vector<32x128xf32>, vector<2x128xf32> -> vector<2x128xf32>
    %502 = arith.addf %500, %501 : vector<2x128xf32>
    %503 = tpu.iota {dimensions = array<i32: 1>} : vector<2x128xi32>
    %c64_i32_100 = arith.constant 64 : i32
    %504 = vector.broadcast %c64_i32_100 : i32 to vector<2x128xi32>
    %505 = arith.cmpi sge, %503, %504 : vector<2x128xi32>
    %c96_i32_101 = arith.constant 96 : i32
    %506 = vector.broadcast %c96_i32_101 : i32 to vector<2x128xi32>
    %507 = arith.cmpi slt, %503, %506 : vector<2x128xi32>
    %508 = arith.andi %505, %507 : vector<2x128xi1>
    %509 = math.tanh %502 : vector<2x128xf32>
    %510 = arith.negf %502 : vector<2x128xf32>
    %511 = math.exp %510 : vector<2x128xf32>
    %cst_102 = arith.constant 1.000000e+00 : f32
    %512 = vector.broadcast %cst_102 : f32 to vector<2x128xf32>
    %513 = arith.addf %512, %511 : vector<2x128xf32>
    %514 = arith.divf %512, %513 : vector<2x128xf32>
    %515 = arith.select %508, %509, %514 : vector<2x128xi1>, vector<2x128xf32>
    %516 = vector.extract_strided_slice %515 {offsets = [0, 0], sizes = [2, 32], strides = [1, 1]} : vector<2x128xf32> to vector<2x32xf32>
    %517 = vector.extract_strided_slice %515 {offsets = [0, 32], sizes = [2, 32], strides = [1, 1]} : vector<2x128xf32> to vector<2x32xf32>
    %518 = vector.extract_strided_slice %515 {offsets = [0, 64], sizes = [2, 32], strides = [1, 1]} : vector<2x128xf32> to vector<2x32xf32>
    %519 = vector.extract_strided_slice %515 {offsets = [0, 96], sizes = [2, 32], strides = [1, 1]} : vector<2x128xf32> to vector<2x32xf32>
    %520 = arith.mulf %517, %497 : vector<2x32xf32>
    %521 = arith.mulf %516, %518 : vector<2x32xf32>
    %522 = arith.addf %520, %521 : vector<2x32xf32>
    %523 = math.tanh %522 : vector<2x32xf32>
    %524 = arith.mulf %519, %523 : vector<2x32xf32>
    %525 = vector.extract_strided_slice %323 {offsets = [16, 0], sizes = [2, 128], strides = [1, 1]} : vector<30x128xf32> to vector<2x128xf32>
    %cst_103 = arith.constant dense<0.000000e+00> : vector<2x128xf32>
    %526 = tpu.matmul %524, %324, %cst_103 {dimension_numbers = #tpu.dot_dimension_numbers<[1], [0], [0], [1], [0, 0, 1, 1], [], []>} : vector<2x32xf32>, vector<32x128xf32>, vector<2x128xf32> -> vector<2x128xf32>
    %527 = arith.addf %525, %526 : vector<2x128xf32>
    %528 = tpu.iota {dimensions = array<i32: 1>} : vector<2x128xi32>
    %c64_i32_104 = arith.constant 64 : i32
    %529 = vector.broadcast %c64_i32_104 : i32 to vector<2x128xi32>
    %530 = arith.cmpi sge, %528, %529 : vector<2x128xi32>
    %c96_i32_105 = arith.constant 96 : i32
    %531 = vector.broadcast %c96_i32_105 : i32 to vector<2x128xi32>
    %532 = arith.cmpi slt, %528, %531 : vector<2x128xi32>
    %533 = arith.andi %530, %532 : vector<2x128xi1>
    %534 = math.tanh %527 : vector<2x128xf32>
    %535 = arith.negf %527 : vector<2x128xf32>
    %536 = math.exp %535 : vector<2x128xf32>
    %cst_106 = arith.constant 1.000000e+00 : f32
    %537 = vector.broadcast %cst_106 : f32 to vector<2x128xf32>
    %538 = arith.addf %537, %536 : vector<2x128xf32>
    %539 = arith.divf %537, %538 : vector<2x128xf32>
    %540 = arith.select %533, %534, %539 : vector<2x128xi1>, vector<2x128xf32>
    %541 = vector.extract_strided_slice %540 {offsets = [0, 0], sizes = [2, 32], strides = [1, 1]} : vector<2x128xf32> to vector<2x32xf32>
    %542 = vector.extract_strided_slice %540 {offsets = [0, 32], sizes = [2, 32], strides = [1, 1]} : vector<2x128xf32> to vector<2x32xf32>
    %543 = vector.extract_strided_slice %540 {offsets = [0, 64], sizes = [2, 32], strides = [1, 1]} : vector<2x128xf32> to vector<2x32xf32>
    %544 = vector.extract_strided_slice %540 {offsets = [0, 96], sizes = [2, 32], strides = [1, 1]} : vector<2x128xf32> to vector<2x32xf32>
    %545 = arith.mulf %542, %522 : vector<2x32xf32>
    %546 = arith.mulf %541, %543 : vector<2x32xf32>
    %547 = arith.addf %545, %546 : vector<2x32xf32>
    %548 = math.tanh %547 : vector<2x32xf32>
    %549 = arith.mulf %544, %548 : vector<2x32xf32>
    %550 = vector.extract_strided_slice %323 {offsets = [18, 0], sizes = [2, 128], strides = [1, 1]} : vector<30x128xf32> to vector<2x128xf32>
    %cst_107 = arith.constant dense<0.000000e+00> : vector<2x128xf32>
    %551 = tpu.matmul %549, %324, %cst_107 {dimension_numbers = #tpu.dot_dimension_numbers<[1], [0], [0], [1], [0, 0, 1, 1], [], []>} : vector<2x32xf32>, vector<32x128xf32>, vector<2x128xf32> -> vector<2x128xf32>
    %552 = arith.addf %550, %551 : vector<2x128xf32>
    %553 = tpu.iota {dimensions = array<i32: 1>} : vector<2x128xi32>
    %c64_i32_108 = arith.constant 64 : i32
    %554 = vector.broadcast %c64_i32_108 : i32 to vector<2x128xi32>
    %555 = arith.cmpi sge, %553, %554 : vector<2x128xi32>
    %c96_i32_109 = arith.constant 96 : i32
    %556 = vector.broadcast %c96_i32_109 : i32 to vector<2x128xi32>
    %557 = arith.cmpi slt, %553, %556 : vector<2x128xi32>
    %558 = arith.andi %555, %557 : vector<2x128xi1>
    %559 = math.tanh %552 : vector<2x128xf32>
    %560 = arith.negf %552 : vector<2x128xf32>
    %561 = math.exp %560 : vector<2x128xf32>
    %cst_110 = arith.constant 1.000000e+00 : f32
    %562 = vector.broadcast %cst_110 : f32 to vector<2x128xf32>
    %563 = arith.addf %562, %561 : vector<2x128xf32>
    %564 = arith.divf %562, %563 : vector<2x128xf32>
    %565 = arith.select %558, %559, %564 : vector<2x128xi1>, vector<2x128xf32>
    %566 = vector.extract_strided_slice %565 {offsets = [0, 0], sizes = [2, 32], strides = [1, 1]} : vector<2x128xf32> to vector<2x32xf32>
    %567 = vector.extract_strided_slice %565 {offsets = [0, 32], sizes = [2, 32], strides = [1, 1]} : vector<2x128xf32> to vector<2x32xf32>
    %568 = vector.extract_strided_slice %565 {offsets = [0, 64], sizes = [2, 32], strides = [1, 1]} : vector<2x128xf32> to vector<2x32xf32>
    %569 = vector.extract_strided_slice %565 {offsets = [0, 96], sizes = [2, 32], strides = [1, 1]} : vector<2x128xf32> to vector<2x32xf32>
    %570 = arith.mulf %567, %547 : vector<2x32xf32>
    %571 = arith.mulf %566, %568 : vector<2x32xf32>
    %572 = arith.addf %570, %571 : vector<2x32xf32>
    %573 = math.tanh %572 : vector<2x32xf32>
    %574 = arith.mulf %569, %573 : vector<2x32xf32>
    %575 = vector.extract_strided_slice %323 {offsets = [20, 0], sizes = [2, 128], strides = [1, 1]} : vector<30x128xf32> to vector<2x128xf32>
    %cst_111 = arith.constant dense<0.000000e+00> : vector<2x128xf32>
    %576 = tpu.matmul %574, %324, %cst_111 {dimension_numbers = #tpu.dot_dimension_numbers<[1], [0], [0], [1], [0, 0, 1, 1], [], []>} : vector<2x32xf32>, vector<32x128xf32>, vector<2x128xf32> -> vector<2x128xf32>
    %577 = arith.addf %575, %576 : vector<2x128xf32>
    %578 = tpu.iota {dimensions = array<i32: 1>} : vector<2x128xi32>
    %c64_i32_112 = arith.constant 64 : i32
    %579 = vector.broadcast %c64_i32_112 : i32 to vector<2x128xi32>
    %580 = arith.cmpi sge, %578, %579 : vector<2x128xi32>
    %c96_i32_113 = arith.constant 96 : i32
    %581 = vector.broadcast %c96_i32_113 : i32 to vector<2x128xi32>
    %582 = arith.cmpi slt, %578, %581 : vector<2x128xi32>
    %583 = arith.andi %580, %582 : vector<2x128xi1>
    %584 = math.tanh %577 : vector<2x128xf32>
    %585 = arith.negf %577 : vector<2x128xf32>
    %586 = math.exp %585 : vector<2x128xf32>
    %cst_114 = arith.constant 1.000000e+00 : f32
    %587 = vector.broadcast %cst_114 : f32 to vector<2x128xf32>
    %588 = arith.addf %587, %586 : vector<2x128xf32>
    %589 = arith.divf %587, %588 : vector<2x128xf32>
    %590 = arith.select %583, %584, %589 : vector<2x128xi1>, vector<2x128xf32>
    %591 = vector.extract_strided_slice %590 {offsets = [0, 0], sizes = [2, 32], strides = [1, 1]} : vector<2x128xf32> to vector<2x32xf32>
    %592 = vector.extract_strided_slice %590 {offsets = [0, 32], sizes = [2, 32], strides = [1, 1]} : vector<2x128xf32> to vector<2x32xf32>
    %593 = vector.extract_strided_slice %590 {offsets = [0, 64], sizes = [2, 32], strides = [1, 1]} : vector<2x128xf32> to vector<2x32xf32>
    %594 = vector.extract_strided_slice %590 {offsets = [0, 96], sizes = [2, 32], strides = [1, 1]} : vector<2x128xf32> to vector<2x32xf32>
    %595 = arith.mulf %592, %572 : vector<2x32xf32>
    %596 = arith.mulf %591, %593 : vector<2x32xf32>
    %597 = arith.addf %595, %596 : vector<2x32xf32>
    %598 = math.tanh %597 : vector<2x32xf32>
    %599 = arith.mulf %594, %598 : vector<2x32xf32>
    %600 = vector.extract_strided_slice %323 {offsets = [22, 0], sizes = [2, 128], strides = [1, 1]} : vector<30x128xf32> to vector<2x128xf32>
    %cst_115 = arith.constant dense<0.000000e+00> : vector<2x128xf32>
    %601 = tpu.matmul %599, %324, %cst_115 {dimension_numbers = #tpu.dot_dimension_numbers<[1], [0], [0], [1], [0, 0, 1, 1], [], []>} : vector<2x32xf32>, vector<32x128xf32>, vector<2x128xf32> -> vector<2x128xf32>
    %602 = arith.addf %600, %601 : vector<2x128xf32>
    %603 = tpu.iota {dimensions = array<i32: 1>} : vector<2x128xi32>
    %c64_i32_116 = arith.constant 64 : i32
    %604 = vector.broadcast %c64_i32_116 : i32 to vector<2x128xi32>
    %605 = arith.cmpi sge, %603, %604 : vector<2x128xi32>
    %c96_i32_117 = arith.constant 96 : i32
    %606 = vector.broadcast %c96_i32_117 : i32 to vector<2x128xi32>
    %607 = arith.cmpi slt, %603, %606 : vector<2x128xi32>
    %608 = arith.andi %605, %607 : vector<2x128xi1>
    %609 = math.tanh %602 : vector<2x128xf32>
    %610 = arith.negf %602 : vector<2x128xf32>
    %611 = math.exp %610 : vector<2x128xf32>
    %cst_118 = arith.constant 1.000000e+00 : f32
    %612 = vector.broadcast %cst_118 : f32 to vector<2x128xf32>
    %613 = arith.addf %612, %611 : vector<2x128xf32>
    %614 = arith.divf %612, %613 : vector<2x128xf32>
    %615 = arith.select %608, %609, %614 : vector<2x128xi1>, vector<2x128xf32>
    %616 = vector.extract_strided_slice %615 {offsets = [0, 0], sizes = [2, 32], strides = [1, 1]} : vector<2x128xf32> to vector<2x32xf32>
    %617 = vector.extract_strided_slice %615 {offsets = [0, 32], sizes = [2, 32], strides = [1, 1]} : vector<2x128xf32> to vector<2x32xf32>
    %618 = vector.extract_strided_slice %615 {offsets = [0, 64], sizes = [2, 32], strides = [1, 1]} : vector<2x128xf32> to vector<2x32xf32>
    %619 = vector.extract_strided_slice %615 {offsets = [0, 96], sizes = [2, 32], strides = [1, 1]} : vector<2x128xf32> to vector<2x32xf32>
    %620 = arith.mulf %617, %597 : vector<2x32xf32>
    %621 = arith.mulf %616, %618 : vector<2x32xf32>
    %622 = arith.addf %620, %621 : vector<2x32xf32>
    %623 = math.tanh %622 : vector<2x32xf32>
    %624 = arith.mulf %619, %623 : vector<2x32xf32>
    %625 = vector.extract_strided_slice %323 {offsets = [24, 0], sizes = [2, 128], strides = [1, 1]} : vector<30x128xf32> to vector<2x128xf32>
    %cst_119 = arith.constant dense<0.000000e+00> : vector<2x128xf32>
    %626 = tpu.matmul %624, %324, %cst_119 {dimension_numbers = #tpu.dot_dimension_numbers<[1], [0], [0], [1], [0, 0, 1, 1], [], []>} : vector<2x32xf32>, vector<32x128xf32>, vector<2x128xf32> -> vector<2x128xf32>
    %627 = arith.addf %625, %626 : vector<2x128xf32>
    %628 = tpu.iota {dimensions = array<i32: 1>} : vector<2x128xi32>
    %c64_i32_120 = arith.constant 64 : i32
    %629 = vector.broadcast %c64_i32_120 : i32 to vector<2x128xi32>
    %630 = arith.cmpi sge, %628, %629 : vector<2x128xi32>
    %c96_i32_121 = arith.constant 96 : i32
    %631 = vector.broadcast %c96_i32_121 : i32 to vector<2x128xi32>
    %632 = arith.cmpi slt, %628, %631 : vector<2x128xi32>
    %633 = arith.andi %630, %632 : vector<2x128xi1>
    %634 = math.tanh %627 : vector<2x128xf32>
    %635 = arith.negf %627 : vector<2x128xf32>
    %636 = math.exp %635 : vector<2x128xf32>
    %cst_122 = arith.constant 1.000000e+00 : f32
    %637 = vector.broadcast %cst_122 : f32 to vector<2x128xf32>
    %638 = arith.addf %637, %636 : vector<2x128xf32>
    %639 = arith.divf %637, %638 : vector<2x128xf32>
    %640 = arith.select %633, %634, %639 : vector<2x128xi1>, vector<2x128xf32>
    %641 = vector.extract_strided_slice %640 {offsets = [0, 0], sizes = [2, 32], strides = [1, 1]} : vector<2x128xf32> to vector<2x32xf32>
    %642 = vector.extract_strided_slice %640 {offsets = [0, 32], sizes = [2, 32], strides = [1, 1]} : vector<2x128xf32> to vector<2x32xf32>
    %643 = vector.extract_strided_slice %640 {offsets = [0, 64], sizes = [2, 32], strides = [1, 1]} : vector<2x128xf32> to vector<2x32xf32>
    %644 = vector.extract_strided_slice %640 {offsets = [0, 96], sizes = [2, 32], strides = [1, 1]} : vector<2x128xf32> to vector<2x32xf32>
    %645 = arith.mulf %642, %622 : vector<2x32xf32>
    %646 = arith.mulf %641, %643 : vector<2x32xf32>
    %647 = arith.addf %645, %646 : vector<2x32xf32>
    %648 = math.tanh %647 : vector<2x32xf32>
    %649 = arith.mulf %644, %648 : vector<2x32xf32>
    %650 = vector.extract_strided_slice %323 {offsets = [26, 0], sizes = [2, 128], strides = [1, 1]} : vector<30x128xf32> to vector<2x128xf32>
    %cst_123 = arith.constant dense<0.000000e+00> : vector<2x128xf32>
    %651 = tpu.matmul %649, %324, %cst_123 {dimension_numbers = #tpu.dot_dimension_numbers<[1], [0], [0], [1], [0, 0, 1, 1], [], []>} : vector<2x32xf32>, vector<32x128xf32>, vector<2x128xf32> -> vector<2x128xf32>
    %652 = arith.addf %650, %651 : vector<2x128xf32>
    %653 = tpu.iota {dimensions = array<i32: 1>} : vector<2x128xi32>
    %c64_i32_124 = arith.constant 64 : i32
    %654 = vector.broadcast %c64_i32_124 : i32 to vector<2x128xi32>
    %655 = arith.cmpi sge, %653, %654 : vector<2x128xi32>
    %c96_i32_125 = arith.constant 96 : i32
    %656 = vector.broadcast %c96_i32_125 : i32 to vector<2x128xi32>
    %657 = arith.cmpi slt, %653, %656 : vector<2x128xi32>
    %658 = arith.andi %655, %657 : vector<2x128xi1>
    %659 = math.tanh %652 : vector<2x128xf32>
    %660 = arith.negf %652 : vector<2x128xf32>
    %661 = math.exp %660 : vector<2x128xf32>
    %cst_126 = arith.constant 1.000000e+00 : f32
    %662 = vector.broadcast %cst_126 : f32 to vector<2x128xf32>
    %663 = arith.addf %662, %661 : vector<2x128xf32>
    %664 = arith.divf %662, %663 : vector<2x128xf32>
    %665 = arith.select %658, %659, %664 : vector<2x128xi1>, vector<2x128xf32>
    %666 = vector.extract_strided_slice %665 {offsets = [0, 0], sizes = [2, 32], strides = [1, 1]} : vector<2x128xf32> to vector<2x32xf32>
    %667 = vector.extract_strided_slice %665 {offsets = [0, 32], sizes = [2, 32], strides = [1, 1]} : vector<2x128xf32> to vector<2x32xf32>
    %668 = vector.extract_strided_slice %665 {offsets = [0, 64], sizes = [2, 32], strides = [1, 1]} : vector<2x128xf32> to vector<2x32xf32>
    %669 = vector.extract_strided_slice %665 {offsets = [0, 96], sizes = [2, 32], strides = [1, 1]} : vector<2x128xf32> to vector<2x32xf32>
    %670 = arith.mulf %667, %647 : vector<2x32xf32>
    %671 = arith.mulf %666, %668 : vector<2x32xf32>
    %672 = arith.addf %670, %671 : vector<2x32xf32>
    %673 = math.tanh %672 : vector<2x32xf32>
    %674 = arith.mulf %669, %673 : vector<2x32xf32>
    %675 = vector.extract_strided_slice %323 {offsets = [28, 0], sizes = [2, 128], strides = [1, 1]} : vector<30x128xf32> to vector<2x128xf32>
    %cst_127 = arith.constant dense<0.000000e+00> : vector<2x128xf32>
    %676 = tpu.matmul %674, %324, %cst_127 {dimension_numbers = #tpu.dot_dimension_numbers<[1], [0], [0], [1], [0, 0, 1, 1], [], []>} : vector<2x32xf32>, vector<32x128xf32>, vector<2x128xf32> -> vector<2x128xf32>
    %677 = arith.addf %675, %676 : vector<2x128xf32>
    %678 = tpu.iota {dimensions = array<i32: 1>} : vector<2x128xi32>
    %c64_i32_128 = arith.constant 64 : i32
    %679 = vector.broadcast %c64_i32_128 : i32 to vector<2x128xi32>
    %680 = arith.cmpi sge, %678, %679 : vector<2x128xi32>
    %c96_i32_129 = arith.constant 96 : i32
    %681 = vector.broadcast %c96_i32_129 : i32 to vector<2x128xi32>
    %682 = arith.cmpi slt, %678, %681 : vector<2x128xi32>
    %683 = arith.andi %680, %682 : vector<2x128xi1>
    %684 = math.tanh %677 : vector<2x128xf32>
    %685 = arith.negf %677 : vector<2x128xf32>
    %686 = math.exp %685 : vector<2x128xf32>
    %cst_130 = arith.constant 1.000000e+00 : f32
    %687 = vector.broadcast %cst_130 : f32 to vector<2x128xf32>
    %688 = arith.addf %687, %686 : vector<2x128xf32>
    %689 = arith.divf %687, %688 : vector<2x128xf32>
    %690 = arith.select %683, %684, %689 : vector<2x128xi1>, vector<2x128xf32>
    %691 = vector.extract_strided_slice %690 {offsets = [0, 0], sizes = [2, 32], strides = [1, 1]} : vector<2x128xf32> to vector<2x32xf32>
    %692 = vector.extract_strided_slice %690 {offsets = [0, 32], sizes = [2, 32], strides = [1, 1]} : vector<2x128xf32> to vector<2x32xf32>
    %693 = vector.extract_strided_slice %690 {offsets = [0, 64], sizes = [2, 32], strides = [1, 1]} : vector<2x128xf32> to vector<2x32xf32>
    %694 = vector.extract_strided_slice %690 {offsets = [0, 96], sizes = [2, 32], strides = [1, 1]} : vector<2x128xf32> to vector<2x32xf32>
    %695 = arith.mulf %692, %672 : vector<2x32xf32>
    %696 = arith.mulf %691, %693 : vector<2x32xf32>
    %697 = arith.addf %695, %696 : vector<2x32xf32>
    %698 = math.tanh %697 : vector<2x32xf32>
    %699 = arith.mulf %694, %698 : vector<2x32xf32>
    %700 = tpu.concatenate %349, %374, %399, %424, %449, %474, %499, %524, %549, %574, %599, %624, %649, %674, %699 in 0 : vector<2x32xf32>, vector<2x32xf32>, vector<2x32xf32>, vector<2x32xf32>, vector<2x32xf32>, vector<2x32xf32>, vector<2x32xf32>, vector<2x32xf32>, vector<2x32xf32>, vector<2x32xf32>, vector<2x32xf32>, vector<2x32xf32>, vector<2x32xf32>, vector<2x32xf32>, vector<2x32xf32> -> vector<30x32xf32>
    %c0_131 = arith.constant 0 : index
    %c0_132 = arith.constant 0 : index
    %701 = vector.load %arg21[%c0_131, %c0_132] : memref<32x48xf32, #tpu.memory_space<vmem>>, vector<32x48xf32>
    %cst_133 = arith.constant dense<0.000000e+00> : vector<30x48xf32>
    %702 = tpu.matmul %700, %701, %cst_133 {dimension_numbers = #tpu.dot_dimension_numbers<[1], [0], [0], [1], [0, 0, 1, 1], [], []>} : vector<30x32xf32>, vector<32x48xf32>, vector<30x48xf32> -> vector<30x48xf32>
    %c0_134 = arith.constant 0 : index
    %c0_135 = arith.constant 0 : index
    %703 = vector.load %arg22[%c0_134, %c0_135] : memref<1x48xf32, #tpu.memory_space<vmem>>, vector<1x48xf32>
    %704 = vector.broadcast %703 : vector<1x48xf32> to vector<30x48xf32>
    %705 = arith.addf %702, %704 : vector<30x48xf32>
    %cst_136 = arith.constant 0.000000e+00 : f32
    %706 = vector.broadcast %cst_136 : f32 to vector<30x48xf32>
    %707 = arith.cmpf ogt, %705, %706 : vector<30x48xf32>
    %cst_137 = arith.constant 0.000000e+00 : f32
    %708 = vector.broadcast %cst_137 : f32 to vector<30x48xf32>
    %709 = arith.minimumf %705, %708 : vector<30x48xf32>
    %710 = math.exp %709 : vector<30x48xf32>
    %cst_138 = arith.constant 1.000000e+00 : f32
    %711 = vector.broadcast %cst_138 : f32 to vector<30x48xf32>
    %712 = arith.subf %710, %711 : vector<30x48xf32>
    %713 = arith.select %707, %705, %712 : vector<30x48xi1>, vector<30x48xf32>
    %714 = vector.extract_strided_slice %713 {offsets = [0, 0], sizes = [30, 32], strides = [1, 1]} : vector<30x48xf32> to vector<30x32xf32>
    %715 = vector.extract_strided_slice %713 {offsets = [0, 32], sizes = [30, 16], strides = [1, 1]} : vector<30x48xf32> to vector<30x16xf32>
    %c0_139 = arith.constant 0 : index
    %c0_140 = arith.constant 0 : index
    %716 = vector.load %arg23[%c0_139, %c0_140] : memref<32x33xf32, #tpu.memory_space<vmem>>, vector<32x33xf32>
    %cst_141 = arith.constant dense<0.000000e+00> : vector<30x33xf32>
    %717 = tpu.matmul %714, %716, %cst_141 {dimension_numbers = #tpu.dot_dimension_numbers<[1], [0], [0], [1], [0, 0, 1, 1], [], []>} : vector<30x32xf32>, vector<32x33xf32>, vector<30x33xf32> -> vector<30x33xf32>
    %c0_142 = arith.constant 0 : index
    %c0_143 = arith.constant 0 : index
    %718 = vector.load %arg24[%c0_142, %c0_143] : memref<1x33xf32, #tpu.memory_space<vmem>>, vector<1x33xf32>
    %719 = vector.broadcast %718 : vector<1x33xf32> to vector<30x33xf32>
    %720 = arith.addf %717, %719 : vector<30x33xf32>
    %721 = vector.extract_strided_slice %720 {offsets = [0, 0], sizes = [30, 32], strides = [1, 1]} : vector<30x33xf32> to vector<30x32xf32>
    %cst_144 = arith.constant dense<0.000000e+00> : vector<30x16xf32>
    %722 = tpu.matmul %721, %310, %cst_144 {dimension_numbers = #tpu.dot_dimension_numbers<[1], [1], [0], [0], [0, 0, 1, 0], [], []>} : vector<30x32xf32>, vector<16x32xf32>, vector<30x16xf32> -> vector<30x16xf32>
    %723 = vector.extract_strided_slice %720 {offsets = [0, 32], sizes = [30, 1], strides = [1, 1]} : vector<30x33xf32> to vector<30x1xf32>
    %724 = vector.broadcast %723 : vector<30x1xf32> to vector<30x16xf32>
    %725 = arith.addf %722, %724 : vector<30x16xf32>
    %c0_145 = arith.constant 0 : index
    %c0_146 = arith.constant 0 : index
    %726 = vector.load %arg6[%c0_145, %c0_146] : memref<30x1xi32, #tpu.memory_space<vmem>>, vector<30x1xi32>
    %c0_147 = arith.constant 0 : index
    %c0_148 = arith.constant 0 : index
    %727 = vector.load %arg8[%c0_147, %c0_148] : memref<1x16xi32, #tpu.memory_space<vmem>>, vector<1x16xi32>
    %728 = vector.broadcast %726 : vector<30x1xi32> to vector<30x16xi32>
    %729 = vector.broadcast %727 : vector<1x16xi32> to vector<30x16xi32>
    %730 = arith.cmpi eq, %728, %729 : vector<30x16xi32>
    %cst_149 = arith.constant -1.000000e+09 : f32
    %731 = vector.broadcast %cst_149 : f32 to vector<30x16xf32>
    %732 = arith.select %730, %725, %731 : vector<30x16xi1>, vector<30x16xf32>
    %cst_150 = arith.constant dense<0xFF800000> : vector<30xf32>
    %733 = vector.multi_reduction <maximumf>, %732, %cst_150 [1] : vector<30x16xf32> to vector<30xf32>
    %734 = vector.shape_cast %733 : vector<30xf32> to vector<30x1xf32>
    %735 = vector.broadcast %734 : vector<30x1xf32> to vector<30x16xf32>
    %736 = arith.subf %732, %735 : vector<30x16xf32>
    %737 = math.exp %736 : vector<30x16xf32>
    %cst_151 = arith.constant dense<0.000000e+00> : vector<30xf32>
    %738 = vector.multi_reduction <add>, %737, %cst_151 [1] : vector<30x16xf32> to vector<30xf32>
    %739 = vector.shape_cast %738 : vector<30xf32> to vector<30x1xf32>
    %740 = math.log %739 : vector<30x1xf32>
    %741 = vector.broadcast %740 : vector<30x1xf32> to vector<30x16xf32>
    %742 = arith.subf %736, %741 : vector<30x16xf32>
    %743 = math.exp %742 : vector<30x16xf32>
    %744 = tpu.iota {dimensions = array<i32: 0>} : vector<30x30xi32>
    %745 = tpu.iota {dimensions = array<i32: 1>} : vector<30x30xi32>
    %c0_152 = arith.constant 0 : index
    %c0_153 = arith.constant 0 : index
    %746 = vector.load %arg6[%c0_152, %c0_153] : memref<30x1xi32, #tpu.memory_space<vmem>>, vector<30x1xi32>
    %c0_154 = arith.constant 0 : index
    %c0_155 = arith.constant 0 : index
    %747 = vector.load %arg7[%c0_154, %c0_155] : memref<1x30xi32, #tpu.memory_space<vmem>>, vector<1x30xi32>
    %748 = vector.broadcast %746 : vector<30x1xi32> to vector<30x30xi32>
    %749 = vector.broadcast %747 : vector<1x30xi32> to vector<30x30xi32>
    %750 = arith.cmpi eq, %748, %749 : vector<30x30xi32>
    %751 = arith.cmpi sle, %745, %744 : vector<30x30xi32>
    %752 = arith.andi %750, %751 : vector<30x30xi1>
    %753 = arith.extui %752 : vector<30x30xi1> to vector<30x30xi32>
    %754 = arith.sitofp %753 : vector<30x30xi32> to vector<30x30xf32>
    %cst_156 = arith.constant dense<0.000000e+00> : vector<30x16xf32>
    %755 = tpu.matmul %754, %743, %cst_156 {dimension_numbers = #tpu.dot_dimension_numbers<[1], [0], [0], [1], [0, 0, 1, 1], [], []>} : vector<30x30xf32>, vector<30x16xf32>, vector<30x16xf32> -> vector<30x16xf32>
    %cst_157 = arith.constant 2.000000e+00 : f32
    %756 = vector.broadcast %cst_157 : f32 to vector<30x16xf32>
    %757 = arith.subf %755, %756 : vector<30x16xf32>
    %cst_158 = arith.constant 0.000000e+00 : f32
    %758 = vector.broadcast %cst_158 : f32 to vector<30x16xf32>
    %759 = arith.maximumf %757, %758 : vector<30x16xf32>
    %cst_159 = arith.constant dense<0.000000e+00> : vector<30xf32>
    %760 = vector.multi_reduction <add>, %759, %cst_159 [1] : vector<30x16xf32> to vector<30xf32>
    %761 = vector.shape_cast %760 : vector<30xf32> to vector<30x1xf32>
    %cst_160 = arith.constant dense<0.000000e+00> : vector<1xf32>
    %762 = vector.multi_reduction <add>, %761, %cst_160 [0] : vector<30x1xf32> to vector<1xf32>
    %763 = vector.shape_cast %762 : vector<1xf32> to vector<1x1xf32>
    %c0_161 = arith.constant 0 : index
    %c0_162 = arith.constant 0 : index
    %764 = vector.load %arg4[%c0_161, %c0_162] : memref<30x1xi32, #tpu.memory_space<vmem>>, vector<30x1xi32>
    %765 = vector.broadcast %764 : vector<30x1xi32> to vector<30x16xi32>
    %766 = arith.cmpi eq, %312, %765 : vector<30x16xi32>
    %767 = arith.extui %766 : vector<30x16xi1> to vector<30x16xi32>
    %768 = arith.sitofp %767 : vector<30x16xi32> to vector<30x16xf32>
    %769 = arith.mulf %742, %768 : vector<30x16xf32>
    %cst_163 = arith.constant dense<0.000000e+00> : vector<30xf32>
    %770 = vector.multi_reduction <add>, %769, %cst_163 [1] : vector<30x16xf32> to vector<30xf32>
    %771 = vector.shape_cast %770 : vector<30xf32> to vector<30x1xf32>
    %c0_164 = arith.constant 0 : index
    %c0_165 = arith.constant 0 : index
    %772 = vector.load %arg4[%c0_164, %c0_165] : memref<30x1xi32, #tpu.memory_space<vmem>>, vector<30x1xi32>
    %c0_166 = arith.constant 0 : index
    %c0_167 = arith.constant 0 : index
    %773 = vector.load %arg3[%c0_166, %c0_167] : memref<30x1xi32, #tpu.memory_space<vmem>>, vector<30x1xi32>
    %774 = arith.cmpi eq, %772, %773 : vector<30x1xi32>
    %775 = arith.extui %774 : vector<30x1xi1> to vector<30x1xi32>
    %776 = arith.sitofp %775 : vector<30x1xi32> to vector<30x1xf32>
    %777 = arith.mulf %771, %776 : vector<30x1xf32>
    %cst_168 = arith.constant dense<0.000000e+00> : vector<30xf32>
    %778 = vector.multi_reduction <add>, %777, %cst_168 [1] : vector<30x1xf32> to vector<30xf32>
    %779 = vector.shape_cast %778 : vector<30xf32> to vector<30x1xf32>
    %cst_169 = arith.constant dense<0.000000e+00> : vector<1xf32>
    %780 = vector.multi_reduction <add>, %779, %cst_169 [0] : vector<30x1xf32> to vector<1xf32>
    %781 = vector.shape_cast %780 : vector<1xf32> to vector<1x1xf32>
    %cst_170 = arith.constant 1.000000e+00 : f32
    %782 = vector.broadcast %cst_170 : f32 to vector<30x1xf32>
    %783 = arith.subf %782, %776 : vector<30x1xf32>
    %784 = arith.mulf %771, %783 : vector<30x1xf32>
    %cst_171 = arith.constant dense<0.000000e+00> : vector<30xf32>
    %785 = vector.multi_reduction <add>, %784, %cst_171 [1] : vector<30x1xf32> to vector<30xf32>
    %786 = vector.shape_cast %785 : vector<30xf32> to vector<30x1xf32>
    %cst_172 = arith.constant dense<0.000000e+00> : vector<1xf32>
    %787 = vector.multi_reduction <add>, %786, %cst_172 [0] : vector<30x1xf32> to vector<1xf32>
    %788 = vector.shape_cast %787 : vector<1xf32> to vector<1x1xf32>
    %cst_173 = arith.constant dense<0.000000e+00> : vector<30x16xf32>
    %789 = tpu.matmul %768, %311, %cst_173 {dimension_numbers = #tpu.dot_dimension_numbers<[1], [0], [0], [1], [0, 0, 1, 1], [], []>} : vector<30x16xf32>, vector<16x16xf32>, vector<30x16xf32> -> vector<30x16xf32>
    %c0_174 = arith.constant 0 : index
    %c0_175 = arith.constant 0 : index
    %790 = vector.load %arg25[%c0_174, %c0_175] : memref<16x80xf32, #tpu.memory_space<vmem>>, vector<16x80xf32>
    %cst_176 = arith.constant dense<0.000000e+00> : vector<30x80xf32>
    %791 = tpu.matmul %715, %790, %cst_176 {dimension_numbers = #tpu.dot_dimension_numbers<[1], [0], [0], [1], [0, 0, 1, 1], [], []>} : vector<30x16xf32>, vector<16x80xf32>, vector<30x80xf32> -> vector<30x80xf32>
    %792 = tpu.concatenate %789, %789, %789, %789, %789 in 1 : vector<30x16xf32>, vector<30x16xf32>, vector<30x16xf32>, vector<30x16xf32>, vector<30x16xf32> -> vector<30x80xf32>
    %793 = arith.mulf %791, %792 : vector<30x80xf32>
    %c0_177 = arith.constant 0 : index
    %c0_178 = arith.constant 0 : index
    %794 = vector.load %arg26[%c0_177, %c0_178] : memref<80x5xf32, #tpu.memory_space<vmem>>, vector<80x5xf32>
    %cst_179 = arith.constant dense<0.000000e+00> : vector<30x5xf32>
    %795 = tpu.matmul %793, %794, %cst_179 {dimension_numbers = #tpu.dot_dimension_numbers<[1], [0], [0], [1], [0, 0, 1, 1], [], []>} : vector<30x80xf32>, vector<80x5xf32>, vector<30x5xf32> -> vector<30x5xf32>
    %c0_180 = arith.constant 0 : index
    %c0_181 = arith.constant 0 : index
    %796 = vector.load %arg27[%c0_180, %c0_181] : memref<16x5xf32, #tpu.memory_space<vmem>>, vector<16x5xf32>
    %cst_182 = arith.constant dense<0.000000e+00> : vector<30x5xf32>
    %797 = tpu.matmul %715, %796, %cst_182 {dimension_numbers = #tpu.dot_dimension_numbers<[1], [0], [0], [1], [0, 0, 1, 1], [], []>} : vector<30x16xf32>, vector<16x5xf32>, vector<30x5xf32> -> vector<30x5xf32>
    %798 = arith.addf %795, %797 : vector<30x5xf32>
    %c0_183 = arith.constant 0 : index
    %c0_184 = arith.constant 0 : index
    %799 = vector.load %arg28[%c0_183, %c0_184] : memref<16x5xf32, #tpu.memory_space<vmem>>, vector<16x5xf32>
    %cst_185 = arith.constant dense<0.000000e+00> : vector<30x5xf32>
    %800 = tpu.matmul %789, %799, %cst_185 {dimension_numbers = #tpu.dot_dimension_numbers<[1], [0], [0], [1], [0, 0, 1, 1], [], []>} : vector<30x16xf32>, vector<16x5xf32>, vector<30x5xf32> -> vector<30x5xf32>
    %801 = arith.addf %798, %800 : vector<30x5xf32>
    %c0_186 = arith.constant 0 : index
    %c0_187 = arith.constant 0 : index
    %802 = vector.load %arg29[%c0_186, %c0_187] : memref<1x5xf32, #tpu.memory_space<vmem>>, vector<1x5xf32>
    %803 = vector.broadcast %802 : vector<1x5xf32> to vector<30x5xf32>
    %804 = arith.addf %801, %803 : vector<30x5xf32>
    %cst_188 = arith.constant dense<0xFF800000> : vector<30xf32>
    %805 = vector.multi_reduction <maximumf>, %804, %cst_188 [1] : vector<30x5xf32> to vector<30xf32>
    %806 = vector.shape_cast %805 : vector<30xf32> to vector<30x1xf32>
    %807 = vector.broadcast %806 : vector<30x1xf32> to vector<30x5xf32>
    %808 = arith.subf %804, %807 : vector<30x5xf32>
    %809 = math.exp %808 : vector<30x5xf32>
    %cst_189 = arith.constant dense<0.000000e+00> : vector<30xf32>
    %810 = vector.multi_reduction <add>, %809, %cst_189 [1] : vector<30x5xf32> to vector<30xf32>
    %811 = vector.shape_cast %810 : vector<30xf32> to vector<30x1xf32>
    %812 = math.log %811 : vector<30x1xf32>
    %813 = vector.broadcast %812 : vector<30x1xf32> to vector<30x5xf32>
    %814 = arith.subf %808, %813 : vector<30x5xf32>
    %815 = tpu.iota {dimensions = array<i32: 1>} : vector<30x5xi32>
    %c0_190 = arith.constant 0 : index
    %c0_191 = arith.constant 0 : index
    %816 = vector.load %arg5[%c0_190, %c0_191] : memref<30x1xi32, #tpu.memory_space<vmem>>, vector<30x1xi32>
    %817 = vector.broadcast %816 : vector<30x1xi32> to vector<30x5xi32>
    %818 = arith.cmpi eq, %815, %817 : vector<30x5xi32>
    %819 = arith.extui %818 : vector<30x5xi1> to vector<30x5xi32>
    %820 = arith.sitofp %819 : vector<30x5xi32> to vector<30x5xf32>
    %821 = arith.mulf %814, %820 : vector<30x5xf32>
    %cst_192 = arith.constant dense<0.000000e+00> : vector<30xf32>
    %822 = vector.multi_reduction <add>, %821, %cst_192 [1] : vector<30x5xf32> to vector<30xf32>
    %823 = vector.shape_cast %822 : vector<30xf32> to vector<30x1xf32>
    %824 = arith.mulf %823, %776 : vector<30x1xf32>
    %cst_193 = arith.constant dense<0.000000e+00> : vector<30xf32>
    %825 = vector.multi_reduction <add>, %824, %cst_193 [1] : vector<30x1xf32> to vector<30xf32>
    %826 = vector.shape_cast %825 : vector<30xf32> to vector<30x1xf32>
    %cst_194 = arith.constant dense<0.000000e+00> : vector<1xf32>
    %827 = vector.multi_reduction <add>, %826, %cst_194 [0] : vector<30x1xf32> to vector<1xf32>
    %828 = vector.shape_cast %827 : vector<1xf32> to vector<1x1xf32>
    %cst_195 = arith.constant 1.000000e+00 : f32
    %829 = vector.broadcast %cst_195 : f32 to vector<30x1xf32>
    %830 = arith.subf %829, %776 : vector<30x1xf32>
    %831 = arith.mulf %823, %830 : vector<30x1xf32>
    %cst_196 = arith.constant dense<0.000000e+00> : vector<30xf32>
    %832 = vector.multi_reduction <add>, %831, %cst_196 [1] : vector<30x1xf32> to vector<30xf32>
    %833 = vector.shape_cast %832 : vector<30xf32> to vector<30x1xf32>
    %cst_197 = arith.constant dense<0.000000e+00> : vector<1xf32>
    %834 = vector.multi_reduction <add>, %833, %cst_197 [0] : vector<30x1xf32> to vector<1xf32>
    %835 = vector.shape_cast %834 : vector<1xf32> to vector<1x1xf32>
    %cst_198 = arith.constant 0.000000e+00 : f32
    %836 = vector.broadcast %cst_198 : f32 to vector<1x123xf32>
    %837 = tpu.concatenate %781, %788, %828, %835, %763, %836 in 1 : vector<1x1xf32>, vector<1x1xf32>, vector<1x1xf32>, vector<1x1xf32>, vector<1x1xf32>, vector<1x123xf32> -> vector<1x128xf32>
    %c0_199 = arith.constant 0 : index
    %c0_200 = arith.constant 0 : index
    %838 = vector.load %arg30[%c0_199, %c0_200] : memref<1x128xf32, #tpu.memory_space<vmem>>, vector<1x128xf32>
    tpu.vector_store %arg30[%c0_199, %c0_200], %837 {strides = array<i32>} : memref<1x128xf32, #tpu.memory_space<vmem>>, vector<1x128xf32>,
    return
  }
}

</mosaic_0001>

<bundles_post_ra>
// kernel: tile.0
= control target key start
LH: loop header
LB: loop body
LE: loop exit
PB: predicated region body
PF: predicated region fallthrough
CT: control target
= control target key end

     0   :  { %vm3_vm0 = vcmask 7168   ;;  %s29_s10 = smov 127   ;;  %s61_s0 = inlined_call_operand.vmem [shape: s32[15,2], index: 0, kind: input, shape index: {}]   ;;  %s62_s1 = inlined_call_operand.vmem [shape: s32[30,1], index: 1, kind: output, shape index: {}]  }
   0x1   :  { %v10_v0 = vld [vmem:[%s61_s0] sm:$0xff]   ;;  %v23_v1 = vld [vmem:[%s61_s0 + $0x8] sm:$0x7f]  }
   0x2   :  { %11 = vrot.lane.b32.xlu0 %v10_v0, %s29_s10  ;;  %4 = vst.msk [vmem:[%s62_s1] ss:$2 sm:$0xff] %vm3_vm0, %v10_v0   ;;  %24 = vst.msk [vmem:[%s62_s1 + $0x10] ss:$2 sm:$0x7f] %vm3_vm0, %v23_v1  }
   0x3   :  { %v26_v2 = vld [vmem:[%s61_s0 + $0x8] sm:$0x7f]  }
   0x6   :  { %18 = vrot.lane.b32.xlu0 %v26_v2, %s29_s10 }
  0x74   :  { %v12_v3 = vpop.permute.xlu0 %11  }
  0x75   :  { %25 = vst.msk [vmem:[%s62_s1 + $0x1] ss:$2 sm:$0xff] %vm3_vm0, %v12_v3  }
  0x78   :  { %v19_v4 = vpop.permute.xlu0 %18  }
  0x79   :  { %27 = vst.msk [vmem:[%s62_s1 + $0x11] ss:$2 sm:$0x7f] %vm3_vm0, %v19_v4  }

// kernel: tile.24
= control target key start
LH: loop header
LB: loop body
LE: loop exit
PB: predicated region body
PF: predicated region fallthrough
CT: control target
= control target key end

     0   :  { %s123_s10 = smov 28   ;;  %s124_s11 = smov 24   ;;  %vm3_vm0 = vcmask 15360   ;;  %vm9_vm1 = vcmask 244960   ;;  %vm15_vm2 = vcmask 228560   ;;  %vm21_vm3 = vcmask 212160   ;;  %s195_s0 = inlined_call_operand.vmem [shape: s32[15,2], index: 0, kind: input, shape index: {}]   ;;  %s196_s1 = inlined_call_operand.vmem [shape: s32[1,30], index: 1, kind: output, shape index: {}]  }
   0x1   :  { %v95_v0 = vld [vmem:[%s195_s0 + $0xe] sm:$0x1]   ;;  %v97_v1 = vld [vmem:[%s195_s0 + $0xc] sm:$0x1]   ;;  %v96_v2 = vld [vmem:[%s195_s0 + $0xd] sm:$0x1]  }
   0x2   :  { %7 = vrot.lane.b32.xlu0 %v95_v0, %s123_s10  ;;  %19 = vrot.lane.b32.xlu1 %v97_v1, %s124_s11  ;;  %v98_v3 = vld [vmem:[%s195_s0 + $0xb] sm:$0x1]   ;;  %s125_s16 = smov 26   ;;  %s126_s17 = smov 22   ;;  %v99_v4 = vld [vmem:[%s195_s0 + $0xa] sm:$0x1]  }
   0x3   :  { %v100_v5 = vld [vmem:[%s195_s0 + $0x9] sm:$0x1]   ;;  %v2_v6 = vld [vmem:[%s195_s0] sm:$0x1]   ;;  %s127_s24 = smov 20   ;;  %s128_s25 = smov 18  }
   0x4   :  { %4 = vst.msk [vmem:[#allocation0] sm:$0x1] %vm3_vm0, %v2_v6   ;;  %v101_v7 = vld [vmem:[%s195_s0 + $0x8] sm:$0x1]   ;;  %v102_v8 = vld [vmem:[%s195_s0 + $0x7] sm:$0x1]  }
   0x5   :  { %s129_s30 = smov 16   ;;  %s130_s2 = smov 14   ;;  %v103_v9 = vld [vmem:[%s195_s0 + $0x6] sm:$0x1]   ;;  %v104_v10 = vld [vmem:[%s195_s0 + $0x5] sm:$0x1]  }
   0x6   :  { %13 = vrot.lane.b32.xlu0 %v96_v2, %s125_s16  ;;  %25 = vrot.lane.b32.xlu1 %v98_v3, %s126_s17  ;;  %s131_s7 = smov 12   ;;  %s132_s8 = smov 10   ;;  %v105_v11 = vld [vmem:[%s195_s0 + $0x4] sm:$0x1]   ;;  %v106_v12 = vld [vmem:[%s195_s0 + $0x3] sm:$0x1]  }
   0x7   :  { %s133_s13 = smov 8   ;;  %s134_s14 = smov 6   ;;  %v107_v13 = vld [vmem:[%s195_s0 + $0x2] sm:$0x1]   ;;  %v108_v14 = vld [vmem:[%s195_s0 + $0x1] sm:$0x1]  }
   0x8   :  { %s135_s0 = smov 4   ;;  %s136_s19 = smov 2   ;;  %vm27_vm4 = vcmask 195760   ;;  %vm33_vm5 = vcmask 179360   ;;  %vm39_vm6 = vcmask 162960   ;;  %vm45_vm7 = vcmask 146560  }
   0x9   :  { %vm51_vm8 = vcmask 130160   ;;  %vm57_vm9 = vcmask 113760   ;;  %vm63_vm10 = vcmask 97360   ;;  %vm69_vm11 = vcmask 80960  }
   0xa   :  { %31 = vrot.lane.b32.xlu0 %v99_v4, %s127_s24  ;;  %37 = vrot.lane.b32.xlu1 %v100_v5, %s128_s25  ;;  %vm75_vm12 = vcmask 64560   ;;  %vm81_vm13 = vcmask 48160   ;;  %vm87_vm14 = vcmask 31760  }
   0xe   :  { %43 = vrot.lane.b32.xlu0 %v101_v7, %s129_s30  ;;  %49 = vrot.lane.b32.xlu1 %v102_v8, %s130_s2 }
  0x12   :  { %55 = vrot.lane.b32.xlu0 %v103_v9, %s131_s7  ;;  %61 = vrot.lane.b32.xlu1 %v104_v10, %s132_s8 }
  0x16   :  { %67 = vrot.lane.b32.xlu0 %v105_v11, %s133_s13  ;;  %73 = vrot.lane.b32.xlu1 %v106_v12, %s134_s14 }
  0x1a   :  { %79 = vrot.lane.b32.xlu0 %v107_v13, %s135_s0  ;;  %85 = vrot.lane.b32.xlu1 %v108_v14, %s136_s19 }
  0x74   :  { %v8_v15 = vpop.permute.xlu0 %7   ;;  %v20_v16 = vpop.permute.xlu1 %19  }
  0x75   :  { %10 = vst.msk [vmem:[#allocation0] sm:$0x1] %vm9_vm1, %v8_v15  }
  0x78   :  { %v14_v17 = vpop.permute.xlu0 %13   ;;  %v26_v18 = vpop.permute.xlu1 %25  }
  0x79   :  { %16 = vst.msk [vmem:[#allocation0] sm:$0x1] %vm15_vm2, %v14_v17  }
  0x7a   :  { %22 = vst.msk [vmem:[#allocation0] sm:$0x1] %vm21_vm3, %v20_v16  }
  0x7b   :  { %28 = vst.msk [vmem:[#allocation0] sm:$0x1] %vm27_vm4, %v26_v18  }
  0x7c   :  { %v32_v19 = vpop.permute.xlu0 %31   ;;  %v38_v20 = vpop.permute.xlu1 %37  }
  0x7d   :  { %34 = vst.msk [vmem:[#allocation0] sm:$0x1] %vm33_vm5, %v32_v19  }
  0x7e   :  { %40 = vst.msk [vmem:[#allocation0] sm:$0x1] %vm39_vm6, %v38_v20  }
  0x80   :  { %v44_v21 = vpop.permute.xlu0 %43   ;;  %v50_v22 = vpop.permute.xlu1 %49  }
  0x81   :  { %46 = vst.msk [vmem:[#allocation0] sm:$0x1] %vm45_vm7, %v44_v21  }
  0x82   :  { %52 = vst.msk [vmem:[#allocation0] sm:$0x1] %vm51_vm8, %v50_v22  }
  0x84   :  { %v56_v23 = vpop.permute.xlu0 %55   ;;  %v62_v24 = vpop.permute.xlu1 %61  }
  0x85   :  { %58 = vst.msk [vmem:[#allocation0] sm:$0x1] %vm57_vm9, %v56_v23  }
  0x86   :  { %64 = vst.msk [vmem:[#allocation0] sm:$0x1] %vm63_vm10, %v62_v24  }
  0x88   :  { %v68_v25 = vpop.permute.xlu0 %67   ;;  %v74_v26 = vpop.permute.xlu1 %73  }
  0x89   :  { %70 = vst.msk [vmem:[#allocation0] sm:$0x1] %vm69_vm11, %v68_v25  }
  0x8a   :  { %76 = vst.msk [vmem:[#allocation0] sm:$0x1] %vm75_vm12, %v74_v26  }
  0x8c   :  { %v80_v27 = vpop.permute.xlu0 %79   ;;  %v86_v28 = vpop.permute.xlu1 %85  }
  0x8d   :  { %82 = vst.msk [vmem:[#allocation0] sm:$0x1] %vm81_vm13, %v80_v27  }
  0x8e   :  { %88 = vst.msk [vmem:[#allocation0] sm:$0x1] %vm87_vm14, %v86_v28  }
  0x95   :  { %v92_v29 = vld [vmem:[#allocation0] sm:$0x1] }
  0x96   :  { %94 = vst [vmem:[%s196_s1] sm:$0x1] %v92_v29 }

// kernel: eq.8
= control target key start
LH: loop header
LB: loop body
LE: loop exit
PB: predicated region body
PF: predicated region fallthrough
CT: control target
= control target key end

     0   :  { %s43_s10 = smov 64   ;;  %s44_s11 = smov 32   ;;  %vm3_vm0 = vcmask 130048   ;;  %vm9_vm1 = vcmask 654848   ;;  %vm15_vm2 = vcmask 523648   ;;  %vm21_vm3 = vcmask 392448   ;;  %s75_s0 = inlined_call_operand.vmem [shape: s32[5,16], index: 0, kind: input, shape index: {}]   ;;  %s76_s1 = inlined_call_operand.vmem [shape: s32[80], index: 1, kind: output, shape index: {}]  }
   0x1   :  { %v35_v0 = vld [vmem:[%s75_s0 + $0x4] sm:$0x1]   ;;  %v37_v1 = vld [vmem:[%s75_s0 + $0x2] sm:$0x1]   ;;  %v36_v2 = vld [vmem:[%s75_s0 + $0x3] sm:$0x1]  }
   0x2   :  { %7 = vrot.lane.b32.xlu0 %v35_v0, %s43_s10  ;;  %19 = vrot.lane.b32.xlu1 %v37_v1, %s44_s11  ;;  %v38_v3 = vld [vmem:[%s75_s0 + $0x1] sm:$0x1]   ;;  %v2_v4 = vld [vmem:[%s75_s0] sm:$0x1]   ;;  %s45_s0 = smov 48   ;;  %s46_s18 = smov 16  }
   0x3   :  { %4 = vst.msk [vmem:[#allocation0] sm:$0x1] %vm3_vm0, %v2_v4   ;;  %vm27_vm4 = vcmask 261248  }
   0x6   :  { %13 = vrot.lane.b32.xlu0 %v36_v2, %s45_s0  ;;  %25 = vrot.lane.b32.xlu1 %v38_v3, %s46_s18 }
  0x74   :  { %v8_v5 = vpop.permute.xlu0 %7   ;;  %v20_v6 = vpop.permute.xlu1 %19  }
  0x75   :  { %10 = vst.msk [vmem:[#allocation0] sm:$0x1] %vm9_vm1, %v8_v5  }
  0x78   :  { %v14_v7 = vpop.permute.xlu0 %13   ;;  %v26_v8 = vpop.permute.xlu1 %25  }
  0x79   :  { %16 = vst.msk [vmem:[#allocation0] sm:$0x1] %vm15_vm2, %v14_v7  }
  0x7a   :  { %22 = vst.msk [vmem:[#allocation0] sm:$0x1] %vm21_vm3, %v20_v6  }
  0x7b   :  { %28 = vst.msk [vmem:[#allocation0] sm:$0x1] %vm27_vm4, %v26_v8  }
  0x82   :  { %v32_v9 = vld [vmem:[#allocation0] sm:$0x1] }
  0x83   :  { %34 = vst [vmem:[%s76_s1] sm:$0x1] %v32_v9 }

// kernel: tile.29
= control target key start
LH: loop header
LB: loop body
LE: loop exit
PB: predicated region body
PF: predicated region fallthrough
CT: control target
= control target key end

     0   :  { %s67_s10 = smov 14   ;;  %s68_s11 = smov 10   ;;  %vm3_vm0 = vcmask 15360   ;;  %vm9_vm1 = vcmask 130160   ;;  %vm15_vm2 = vcmask 113760   ;;  %vm21_vm3 = vcmask 97360   ;;  %s111_s0 = inlined_call_operand.vmem [shape: s32[8,2], index: 0, kind: input, shape index: {}]   ;;  %s112_s1 = inlined_call_operand.vmem [shape: s32[1,16], index: 1, kind: output, shape index: {}]  }
   0x1   :  { %v53_v0 = vld [vmem:[%s111_s0 + $0x7] sm:$0x1]   ;;  %v55_v1 = vld [vmem:[%s111_s0 + $0x5] sm:$0x1]   ;;  %v54_v2 = vld [vmem:[%s111_s0 + $0x6] sm:$0x1]  }
   0x2   :  { %7 = vrot.lane.b32.xlu0 %v53_v0, %s67_s10  ;;  %19 = vrot.lane.b32.xlu1 %v55_v1, %s68_s11  ;;  %v56_v3 = vld [vmem:[%s111_s0 + $0x4] sm:$0x1]   ;;  %v2_v4 = vld [vmem:[%s111_s0] sm:$0x1]   ;;  %s69_s18 = smov 12   ;;  %s70_s19 = smov 8  }
   0x3   :  { %4 = vst.msk [vmem:[#allocation0] sm:$0x1] %vm3_vm0, %v2_v4   ;;  %v57_v5 = vld [vmem:[%s111_s0 + $0x3] sm:$0x1]   ;;  %v58_v6 = vld [vmem:[%s111_s0 + $0x2] sm:$0x1]  }
   0x4   :  { %s71_s24 = smov 6   ;;  %s72_s25 = smov 4   ;;  %v59_v7 = vld [vmem:[%s111_s0 + $0x1] sm:$0x1]   ;;  %vm27_vm4 = vcmask 80960   ;;  %vm33_vm5 = vcmask 64560  }
   0x5   :  { %s73_s0 = smov 2   ;;  %vm39_vm6 = vcmask 48160   ;;  %vm45_vm7 = vcmask 31760  }
   0x6   :  { %13 = vrot.lane.b32.xlu0 %v54_v2, %s69_s18  ;;  %25 = vrot.lane.b32.xlu1 %v56_v3, %s70_s19 }
   0xa   :  { %31 = vrot.lane.b32.xlu0 %v57_v5, %s71_s24  ;;  %37 = vrot.lane.b32.xlu1 %v58_v6, %s72_s25 }
   0xe   :  { %43 = vrot.lane.b32.xlu0 %v59_v7, %s73_s0 }
  0x74   :  { %v8_v8 = vpop.permute.xlu0 %7   ;;  %v20_v9 = vpop.permute.xlu1 %19  }
  0x75   :  { %10 = vst.msk [vmem:[#allocation0] sm:$0x1] %vm9_vm1, %v8_v8  }
  0x78   :  { %v14_v10 = vpop.permute.xlu0 %13   ;;  %v26_v11 = vpop.permute.xlu1 %25  }
  0x79   :  { %16 = vst.msk [vmem:[#allocation0] sm:$0x1] %vm15_vm2, %v14_v10  }
  0x7a   :  { %22 = vst.msk [vmem:[#allocation0] sm:$0x1] %vm21_vm3, %v20_v9  }
  0x7b   :  { %28 = vst.msk [vmem:[#allocation0] sm:$0x1] %vm27_vm4, %v26_v11  }
  0x7c   :  { %v32_v12 = vpop.permute.xlu0 %31   ;;  %v38_v13 = vpop.permute.xlu1 %37  }
  0x7d   :  { %34 = vst.msk [vmem:[#allocation0] sm:$0x1] %vm33_vm5, %v32_v12  }
  0x7e   :  { %40 = vst.msk [vmem:[#allocation0] sm:$0x1] %vm39_vm6, %v38_v13  }
  0x80   :  { %v44_v14 = vpop.permute.xlu0 %43  }
  0x81   :  { %46 = vst.msk [vmem:[#allocation0] sm:$0x1] %vm45_vm7, %v44_v14  }
  0x88   :  { %v50_v15 = vld [vmem:[#allocation0] sm:$0x1] }
  0x89   :  { %52 = vst [vmem:[%s112_s1] sm:$0x1] %v50_v15 }

// kernel: stackptr_loss.1
= control target key start
LH: loop header
LB: loop body
LE: loop exit
PB: predicated region body
PF: predicated region fallthrough
CT: control target
= control target key end

     0   :  { %s6262_s3 = smov 9   ;;  %s6263_s7 = smov 2   ;;  %vm141_vm0 = vcmask 195584   ;;  %v6267_v60 = vmov 0.0   ;;  %vm344_vm1 = vcmask 130048   ;;  %vm347_vm2 = vcmask 261120   ;;  %s7324_s0 = inlined_call_operand.smem [shape: u32[31], index: -1, kind: input, shape index: {}] }
   0x1   :  { %s4948_s6 = sld [smem:[%s7324_s0 + %s6262_s3]]   ;;  %s6264_s11 = smov 11   ;;  %443 = vmatprep.mubr.f32.mxu1 %v6267_v60  ;;  %vm372_vm3 = vcmask 326656   ;;  %vm546_vm4 = vcmask 1041408   ;;  %vm6276_vm8 = vmmov 0   ;;  %vm1386_vm9 = vcmask 1043456  }
   0x2   :  { %s6314_s10 = sld [smem:[%s7324_s0 + %s6263_s7]]   ;;  %s6265_s15 = smov 10   ;;  %vm1388_vm10 = vcmask 1045504   ;;  %vm1443_vm11 = vcmask 523264  }
   0x3   :  { %s6343_s14 = sld [smem:[%s7324_s0 + %s6264_s11]]   ;;  %s6266_s19 = smov 12  }
   0x4   :  { %s4949_s18 = sld [smem:[%s7324_s0 + %s6265_s15]]   ;;  %s6268_s23 = smov 1  }
   0x5   :  { %s6357_s22 = sld [smem:[%s7324_s0 + %s6266_s19]]   ;;  %s6269_s27 = smov 16  }
   0x6   :  { %s4940_s26 = sld [smem:[%s7324_s0 + %s6268_s23]]   ;;  %s6270_s28 = smov 32  }
   0x7   :  { %v138_v0 = vld [vmem:[%s4948_s6] sm:$0xff]  ;;  %v139_v1 = vld [vmem:[%s4948_s6 + $0x8] sm:$0xff]  ;;  %v140_v4 = vld [vmem:[%s4948_s6 + $0x10] sm:$0xff]  ;;  %s1_s1 = sld [smem:[%s7324_s0]]   ;;  %s6271_s2 = smov 13  }
   0x8   :  { %v5681_v2 = vpack.c.bf16 %v139_v1, %v138_v0  ;;  %v126_v3 = vld [vmem:[%s6314_s10] sm:$0xff]  ;;  %v127_v5 = vld [vmem:[%s6314_s10 + $0x8] sm:$0xff]  ;;  %v128_v6 = vld [vmem:[%s6314_s10 + $0x10] sm:$0xff]  ;;  %s4952_s5 = sld [smem:[%s7324_s0 + %s6271_s2]]   ;;  %s6272_s6 = smov 64  }
   0x9   :  { %5316 = vmatprep.mubr.msk.f32.mxu0 %vm141_vm0, %v126_v3  ;;  %v129_v7 = vld [vmem:[%s6314_s10 + $0x18] sm:$0xff]  ;;  %v130_v8 = vld [vmem:[%s6314_s10 + $0x20] sm:$0xff]  ;;  %v131_v9 = vld [vmem:[%s6314_s10 + $0x28] sm:$0xff]  ;;  %s6275_s8 = smov 14   ;;  %s6277_s15 = smov 3  }
   0xa   :  { %5682 = vmatprep.subr.bf16.mxu0 %v5681_v2  ;;  %v132_v10 = vld [vmem:[%s6314_s10 + $0x30] sm:$0xff]  ;;  %v133_v11 = vld [vmem:[%s6314_s10 + $0x38] sm:$0xff]  ;;  %v134_v12 = vld [vmem:[%s6314_s10 + $0x40] sm:$0xff]  ;;  %s4953_s11 = sld [smem:[%s7324_s0 + %s6275_s8]]   ;;  %s6278_s19 = smov 96  }
   0xb   :  { %5684 = vmatpush3.bf16.msra.mxu0 %v5681_v2  ;;  %v135_v13 = vld [vmem:[%s6314_s10 + $0x48] sm:$0xff]  ;;  %v136_v14 = vld [vmem:[%s6314_s10 + $0x50] sm:$0xff]  ;;  %v137_v15 = vld [vmem:[%s6314_s10 + $0x58] sm:$0xff]  ;;  %s6279_s20 = smov 19   ;;  %s6280_s25 = smov 15  }
   0xc   :  { %5314 = vmatprep.subr.mxu0 %v140_v4  ;;  %v351_v16 = vld [vmem:[%s6343_s14 + $0x8] sm:$0xff]  ;;  %v353_v17 = vld [vmem:[%s6343_s14 + $0x18] sm:$0xff]  ;;  %v350_v18 = vld [vmem:[%s6343_s14] sm:$0xff]  ;;  %s4958_s24 = sld [smem:[%s7324_s0 + %s6279_s20]]   ;;  %s6284_s16 = smov 21  }
   0xd   :  { %v5685_v19 = vpack.c.bf16 %v353_v17, %v351_v16  ;;  %v352_v20 = vld [vmem:[%s6343_s14 + $0x10] sm:$0xff]  ;;  %v4982_v41 = vld [vmem:[%s4949_s18] ss:$0 sm:$0xff]  ;;  %v355_v42 = vld [vmem:[%s6343_s14 + $0x28] sm:$0xff]  ;;  %s6595_s18 = sld [smem:[%s7324_s0 + %s6277_s15]]   ;;  %s6286_s29 = smov 22  }
   0xe   :  { %v5687_v21 = vpack.c.bf16 %v352_v20, %v350_v18  ;;  %v357_v43 = vld [vmem:[%s6343_s14 + $0x38] sm:$0xff]  ;;  %v354_v47 = vld [vmem:[%s6343_s14 + $0x20] sm:$0xff]  ;;  %v356_v48 = vld [vmem:[%s6343_s14 + $0x30] sm:$0xff]  ;;  %s4954_s30 = sld [smem:[%s7324_s0 + %s6280_s25]]   ;;  %s6288_s3 = smov 24  }
   0xf   :  { %5315 = vmatpush3.msra.mxu0 %v140_v4  ;;  %5686 = vmatprep.subr.bf16.mxu1 %v5685_v19  ;;  %v5689_v46 = vpack.c.bf16 %v357_v43, %v355_v42  ;;  %v5691_v50 = vpack.c.bf16 %v356_v48, %v354_v47  ;;  %v359_v53 = vld [vmem:[%s6343_s14 + $0x48] sm:$0xff]  ;;  %v459_v55 = vld [vmem:[%s6357_s22 + $0x18] sm:$0xff]  ;;  %v358_v56 = vld [vmem:[%s6343_s14 + $0x40] sm:$0xff]  ;;  %v362_v19 = vlaneseq  ;;  %s6583_s14 = sld [smem:[%s7324_s0 + %s6269_s27]]   ;;  %s6289_s9 = smov 6  }
  0x10   :  { %5317 = vmatmul.mubr.msk.f32.vlgmr.msra.gmra.mrb[0].mxu0 %vm141_vm0, %v127_v5  ;;  %5688 = vmatpush1.bf16.msra.mxu1 %v5687_v21  ;;  %v457_v54 = vld [vmem:[%s6357_s22 + $0x8] sm:$0xff]  ;;  %v456_v58 = vld [vmem:[%s6357_s22] sm:$0xff]  ;;  %v458_v59 = vld [vmem:[%s6357_s22 + $0x10] sm:$0xff]  ;;  %s4960_s21 = sld [smem:[%s7324_s0 + %s6284_s16]]   ;;  %s6290_s13 = smov 7  }
  0x11   :  { %5319 = vmatprep.mubr.msk.f32.mxu0 %vm141_vm0, %v128_v6  ;;  %5690 = vmatprep.subr.bf16.mxu1 %v5689_v46  ;;  %v6365_v57 = vpack.c.bf16 %v459_v55, %v457_v54  ;;  %v6370_v61 = vpack.c.bf16 %v458_v59, %v456_v58  ;;  %v461_v62 = vld [vmem:[%s6357_s22 + $0x28] sm:$0xff]  ;;  %v463_v63 = vld [vmem:[%s6357_s22 + $0x38] sm:$0xff]  ;;  %v460_v1 = vld [vmem:[%s6357_s22 + $0x20] sm:$0xff]  ;;  %v6421_v20 = vshrl.u32 %v362_v19, 7  ;;  %s4961_s2 = sld [smem:[%s7324_s0 + %s6286_s29]]   ;;  %s6291_s20 = smov 8  }
  0x12   :  { %v6382_v0 = vpack.c.bf16 %v463_v63, %v461_v62  ;;  %v462_v2 = vld [vmem:[%s6357_s22 + $0x30] sm:$0xff]  ;;  %v327_v6 = vld [vmem:[%s4940_s26 + $0x8] sm:$0xff]  ;;  %s6285_s22 = smov 23   ;;  %s4963_s8 = sld [smem:[%s7324_s0 + %s6288_s3]]  }
  0x13   :  { %5710 = vmatprep.subr.bf16.mxu0 %v6365_v57  ;;  %v6386_v3 = vpack.c.bf16 %v462_v2, %v460_v1  ;;  %v368_v21 = vsub.s32 1, %v6421_v20  ;;  %s4945_s12 = sld [smem:[%s7324_s0 + %s6289_s9]]   ;;  %s6292_s25 = smov 4  }
  0x14   :  { %5320 = vmatmul.mubr.msk.f32.gmra.mrb[2].mxu0 %vm141_vm0, %v129_v7  ;;  %5692 = vmatpush1.bf16.msra.mxu1 %v5691_v50  ;;  %v326_v7 = vld [vmem:[%s4940_s26] sm:$0xff]  ;;  %s4962_s26 = sld [smem:[%s7324_s0 + %s6285_s22]]  }
  0x15   :  { %5322 = vmatprep.mubr.msk.f32.mxu0 %vm141_vm0, %v130_v8  ;;  %387 = vmatprep.subr.mxu1 %v359_v53  ;;  %s4946_s17 = sld [smem:[%s7324_s0 + %s6290_s13]]  }
  0x16   :  { %5712 = vmatpush1.bf16.msra.mxu0 %v6370_v61 }
  0x17   :  { %5714 = vmatprep.subr.bf16.mxu0 %v6382_v0 }
  0x18   :  { %5323 = vmatmul.mubr.msk.f32.gmra.mrb[4].mxu0 %vm141_vm0, %v131_v9  ;;  %388 = vmatpush1.msra.mxu1 %v358_v56  ;;  %v325_v9 = vld [vmem:[%s1_s1 + $0x8] sm:$0xff] }
  0x19   :  { %5325 = vmatprep.mubr.msk.f32.mxu0 %vm141_vm0, %v132_v10  ;;  %5694 = vmatprep.subr.bf16.mxu1 %v6365_v57 }
  0x1a   :  { %5716 = vmatpush1.bf16.msra.mxu0 %v6386_v3 }
  0x1b   :  { %5726 = vmatprep.subr.bf16.mxu0 %v6365_v57 }
  0x1c   :  { %5326 = vmatmul.mubr.msk.f32.gmra.mrb[6].mxu0 %vm141_vm0, %v133_v11  ;;  %v324_v11 = vld [vmem:[%s1_s1] sm:$0xff]  ;;  %s6281_s1 = smov 18  }
  0x1d   :  { %5328 = vmatprep.mubr.msk.f32.mxu0 %vm141_vm0, %v134_v12  ;;  %s4957_s4 = sld [smem:[%s7324_s0 + %s6281_s1]]   ;;  %s6293_s1 = smov 27  }
  0x20   :  { %5329 = vmatmul.mubr.msk.f32.gmra.mrb[8].mxu0 %vm141_vm0, %v135_v13 }
  0x21   :  { %5331 = vmatprep.mubr.msk.f32.mxu0 %vm141_vm0, %v136_v14 }
  0x24   :  { %5332 = vmatmul.mubr.msk.f32.gmra.mrb[10].mxu0 %vm141_vm0, %v137_v15 }
  0x25   :  { %763 = vmatprep.mubr.f32.mxu0 %v6267_v60 }
  0xe3   :  { %v5318_v22 = vpop.f32.mrb[0].mxu0 }
  0xe4   :  { %v244_v23 = vpop.f32.mrb[1].mxu0 }
  0xe7   :  { %v5321_v24 = vpop.f32.mrb[2].mxu0 }
  0xe8   :  { %v304_v25 = vmax.f32 %v5318_v22, %v5321_v24  ;;  %v254_v26 = vpop.f32.mrb[3].mxu0  ;;  %v360_v22 = vld [vmem:[%s4952_s5] sm:$0x3]  ;;  %v364_v24 = vsub.s32 0, %v6421_v20  ;;  %s6282_s5 = smov 17  }
  0xe9   :  { %v303_v27 = vmax.f32 %v244_v23, %v254_v26  ;;  %v369_v23 = vrot.slane %v360_v22, %v368_v21  ;;  %s4956_s10 = sld [smem:[%s7324_s0 + %s6282_s5]]  }
  0xeb   :  { %v5324_v28 = vpop.f32.mrb[4].mxu0 }
  0xec   :  { %v306_v29 = vmax.f32 %v304_v25, %v5324_v28  ;;  %v264_v30 = vpop.f32.mrb[5].mxu0  ;;  %v365_v28 = vrot.slane %v360_v22, %v364_v24 }
  0xed   :  { %v305_v31 = vmax.f32 %v303_v27, %v264_v30 }
  0xef   :  { %v5327_v32 = vpop.f32.mrb[6].mxu0 }
  0xf0   :  { %v308_v33 = vmax.f32 %v306_v29, %v5327_v32  ;;  %v274_v34 = vpop.f32.mrb[7].mxu0 }
  0xf1   :  { %v307_v35 = vmax.f32 %v305_v31, %v274_v34 }
  0xf3   :  { %v5330_v36 = vpop.f32.mrb[8].mxu0 }
  0xf4   :  { %v310_v37 = vmax.f32 %v308_v33, %v5330_v36  ;;  %v284_v38 = vpop.f32.mrb[9].mxu0 }
  0xf5   :  { %v309_v39 = vmax.f32 %v307_v35, %v284_v38 }
  0xf7   :  { %v5333_v40 = vpop.f32.mrb[10].mxu0 }
  0xf8   :  { %v312_v44 = vmax.f32 %v310_v37, %v5333_v40  ;;  %v294_v45 = vpop.f32.mrb[11].mxu0 }
  0xf9   :  { %v311_v49 = vmax.f32 %v309_v39, %v294_v45 }
  0xfa   :  { %v321_v51 = vadd.f32 %v4982_v41, %v312_v44  ;;  %v6436_v44 = vand.u32 127, %v362_v19 }
  0xfb   :  { %v320_v52 = vadd.f32 %v4982_v41, %v311_v49 }
  0xfc   :  { %6016 = vtanh.f32 %v321_v51  ;;  %vm550_vm5 = vcmp.ge.s32.totalorder %v6436_v44, 64  ;;  %vm551_vm6 = vcmp.lt.s32.totalorder %v6436_v44, 96 }
  0xfd   :  { %6018 = vtanh.f32 %v320_v52  ;;  %vm6440_vm7 = vmand %vm550_vm5, %vm551_vm6 }
 0x106   :  { %v6017_v4 = vpop.eup %6016 }
 0x107   :  { %v6019_v5 = vpop.eup %6018  ;;  %332 = vrot.lane.b32.xlu1 %v6017_v4, %s6269_s27 }
 0x108   :  { %330 = vrot.lane.b32.xlu0 %v6019_v5, %s6269_s27 }
 0x10b   :  { %340 = vrot.lane.b32.xlu1 %v327_v6, %s6270_s28 }
 0x10c   :  { %338 = vrot.lane.b32.xlu0 %v326_v7, %s6270_s28 }
 0x179   :  { %v333_v8 = vpop.permute.xlu1 %332 }
 0x17a   :  { %v331_v10 = vpop.permute.xlu0 %330  ;;  %v346_v12 = vsel %vm344_vm1, %v325_v9, %v333_v8 }
 0x17b   :  { %v345_v14 = vsel %vm344_vm1, %v324_v11, %v331_v10 }
 0x17d   :  { %v341_v13 = vpop.permute.xlu1 %340 }
 0x17e   :  { %v349_v15 = vsel %vm347_vm2, %v346_v12, %v341_v13  ;;  %v339_v16 = vpop.permute.xlu0 %338 }
 0x17f   :  { %v348_v17 = vsel %vm347_vm2, %v345_v14, %v339_v16 }
 0x180   :  { %v6402_v18 = vpack.c.bf16 %v349_v15, %v348_v17  ;;  %4983 = vmatmul.mubr.msk.f32.vlgmr.msra.gmra.mrb[0].mxu1 %vm372_vm3, %v348_v17 }
 0x181   :  { %5696 = vmatpush1.bf16.msra.mxu1 %v6370_v61  ;;  %449 = vmatprep.mubr.f32.mxu1 %v6267_v60 }
 0x182   :  { %5698 = vmatprep.subr.bf16.mxu1 %v6382_v0 }
 0x184   :  { %4984 = vmatmul.mubr.msk.f32.gmra.mrb[2].mxu1 %vm372_vm3, %v349_v15 }
 0x185   :  { %5700 = vmatpush1.bf16.msra.mxu1 %v6386_v3  ;;  %531 = vmatprep.mubr.f32.mxu1 %v6267_v60 }
 0x186   :  { %5702 = vmatprep.subr.bf16.mxu1 %v6365_v57 }
 0x188   :  { %532 = vmatmul.mubr.f32.vlgmr.msra.gmra.mrb[4].mxu1 %v6267_v60 }
 0x189   :  { %5704 = vmatpush1.bf16.msra.mxu1 %v6370_v61  ;;  %647 = vmatprep.mubr.f32.mxu1 %v6267_v60 }
 0x18a   :  { %5706 = vmatprep.subr.bf16.mxu1 %v6382_v0 }
 0x18d   :  { %5708 = vmatpush1.bf16.msra.mxu1 %v6386_v3 }
 0x18e   :  { %5718 = vmatprep.subr.bf16.mxu1 %v6365_v57 }
 0x253   :  { %v445_v25 = vpop.f32.mrb[0].mxu1 }
 0x254   :  { %v447_v26 = vpop.f32.mrb[1].mxu1  ;;  %v6431_v36 = vadd.f32 %v445_v25, %v365_v28 }
 0x255   :  { %v6425_v27 = vadd.f32 %v447_v26, %v369_v23 }
 0x257   :  { %v451_v29 = vpop.f32.mrb[2].mxu1 }
 0x258   :  { %v6427_v30 = vadd.f32 %v451_v29, %v365_v28  ;;  %v453_v31 = vpop.f32.mrb[3].mxu1 }
 0x259   :  { %v6429_v34 = vadd.f32 %v453_v31, %v369_v23 }
 0x25b   :  { %v533_v32 = vpop.f32.mrb[4].mxu1 }
 0x25c   :  { %v535_v33 = vpop.f32.mrb[5].mxu1  ;;  %v538_v38 = vadd.f32 %v533_v32, %v6431_v36 }
 0x25d   :  { %v540_v35 = vrot.slane %v535_v33, 4 }
 0x25f   :  { %v542_v37 = vadd.f32 %v540_v35, %v6429_v34 }
 0x261   :  { %v544_v39 = vrot.slane %v542_v37, 4 }
 0x263   :  { %v547_v40 = vsel %vm546_vm4, %v538_v38, %v544_v39 }
 0x264   :  { %v4985_v41 = vmul.f32 -1.442695, %v547_v40 }
 0x266   :  { %6020 = vpow2.f32 %v4985_v41 }
 0x267   :  { %6022 = vtanh.f32 %v547_v40 }
 0x270   :  { %v6021_v42 = vpop.eup %6020 }
 0x271   :  { %v557_v43 = vadd.f32 1.0, %v6021_v42  ;;  %v6023_v46 = vpop.eup %6022 }
 0x273   :  { %6024 = vrcp.f32 %v557_v43 }
 0x27d   :  { %v6025_v47 = vpop.eup %6024 }
 0x27e   :  { %v560_v48 = vsel %vm6440_vm7, %v6023_v46, %v6025_v47 }
 0x27f   :  { %563 = vrot.lane.b32.xlu0 %v560_v48, %s6272_s6  ;;  %v561_v51 = vmul.f32 0.0, %v560_v48 }
 0x2f1   :  { %v564_v49 = vpop.permute.xlu0 %563 }
 0x2f2   :  { %v566_v50 = vmul.f32 %v564_v49, %v560_v48 }
 0x2f4   :  { %568 = vrot.lane.b32.xlu1 %v566_v50, %s6270_s28 }
 0x366   :  { %v569_v52 = vpop.permute.xlu1 %568 }
 0x367   :  { %v571_v53 = vadd.f32 %v569_v52, %v561_v51 }
 0x369   :  { %6026 = vtanh.f32 %v571_v53 }
 0x373   :  { %v6027_v54 = vpop.eup %6026 }
 0x374   :  { %574 = vrot.lane.b32.xlu0 %v6027_v54, %s6272_s6 }
 0x3e6   :  { %v575_v55 = vpop.permute.xlu0 %574 }
 0x3e7   :  { %v6449_v56 = vmul.f32 %v575_v55, %v560_v48 }
 0x3e9   :  { %579 = vrot.lane.b32.xlu1 %v6449_v56, %s6270_s28 }
 0x45b   :  { %v580_v58 = vpop.permute.xlu1 %579 }
 0x45c   :  { %4986 = vmatmul.mubr.msk.f32.vlgmr.msra.gmra.mrb[6].mxu1 %vm347_vm2, %v580_v58 }
 0x45d   :  { %5720 = vmatpush1.bf16.msra.mxu1 %v6370_v61  ;;  %873 = vmatprep.mubr.f32.mxu1 %v6267_v60 }
 0x45e   :  { %5722 = vmatprep.subr.bf16.mxu1 %v6382_v0 }
 0x461   :  { %5724 = vmatpush1.bf16.msra.mxu1 %v6386_v3 }
 0x462   :  { %5734 = vmatprep.subr.bf16.mxu1 %v6365_v57 }
 0x52f   :  { %v649_v59 = vpop.f32.mrb[6].mxu1 }
 0x530   :  { %v655_v62 = vrot.slane %v649_v59, 6  ;;  %v651_v63 = vpop.f32.mrb[7].mxu1 }
 0x531   :  { %v659_v1 = vrot.slane %v651_v63, 6 }
 0x532   :  { %v657_v2 = vadd.f32 %v655_v62, %v6431_v36 }
 0x533   :  { %v661_v4 = vadd.f32 %v659_v1, %v6429_v34 }
 0x534   :  { %v663_v5 = vrot.slane %v657_v2, 2 }
 0x535   :  { %v666_v6 = vrot.slane %v661_v4, 2 }
 0x537   :  { %v668_v7 = vsel %vm546_vm4, %v663_v5, %v666_v6 }
 0x538   :  { %v4987_v8 = vmul.f32 -1.442695, %v668_v7 }
 0x53a   :  { %6028 = vpow2.f32 %v4987_v8 }
 0x53b   :  { %6030 = vtanh.f32 %v668_v7 }
 0x544   :  { %v6029_v9 = vpop.eup %6028 }
 0x545   :  { %v673_v10 = vadd.f32 1.0, %v6029_v9  ;;  %v6031_v11 = vpop.eup %6030 }
 0x547   :  { %6032 = vrcp.f32 %v673_v10 }
 0x551   :  { %v6033_v12 = vpop.eup %6032 }
 0x552   :  { %v676_v13 = vsel %vm6440_vm7, %v6031_v11, %v6033_v12 }
 0x553   :  { %679 = vrot.lane.b32.xlu0 %v676_v13, %s6272_s6  ;;  %v677_v16 = vmul.f32 %v676_v13, %v571_v53 }
 0x5c5   :  { %v680_v14 = vpop.permute.xlu0 %679 }
 0x5c6   :  { %v682_v15 = vmul.f32 %v680_v14, %v676_v13 }
 0x5c8   :  { %684 = vrot.lane.b32.xlu1 %v682_v15, %s6270_s28 }
 0x63a   :  { %v685_v17 = vpop.permute.xlu1 %684 }
 0x63b   :  { %v687_v19 = vadd.f32 %v685_v17, %v677_v16 }
 0x63d   :  { %6034 = vtanh.f32 %v687_v19 }
 0x647   :  { %v6035_v21 = vpop.eup %6034 }
 0x648   :  { %690 = vrot.lane.b32.xlu0 %v6035_v21, %s6272_s6 }
 0x6ba   :  { %v691_v22 = vpop.permute.xlu0 %690 }
 0x6bb   :  { %v6467_v23 = vmul.f32 %v691_v22, %v676_v13 }
 0x6bd   :  { %695 = vrot.lane.b32.xlu1 %v6467_v23, %s6270_s28 }
 0x72f   :  { %v696_v24 = vpop.permute.xlu1 %695 }
 0x730   :  { %4988 = vmatmul.mubr.msk.f32.vlgmr.msra.gmra.mrb[12].mxu0 %vm347_vm2, %v696_v24 }
 0x731   :  { %5728 = vmatpush1.bf16.msra.mxu0 %v6370_v61  ;;  %989 = vmatprep.mubr.f32.mxu0 %v6267_v60 }
 0x732   :  { %5730 = vmatprep.subr.bf16.mxu0 %v6382_v0 }
 0x735   :  { %5732 = vmatpush1.bf16.msra.mxu0 %v6386_v3 }
 0x736   :  { %5742 = vmatprep.subr.bf16.mxu0 %v6365_v57 }
 0x803   :  { %v765_v25 = vpop.f32.mrb[12].mxu0 }
 0x804   :  { %v771_v26 = vrot.slane %v765_v25, 4  ;;  %v767_v28 = vpop.f32.mrb[13].mxu0 }
 0x805   :  { %v774_v32 = vadd.f32 %v767_v28, %v6429_v34 }
 0x806   :  { %v773_v29 = vadd.f32 %v771_v26, %v6431_v36 }
 0x808   :  { %v776_v31 = vrot.slane %v773_v29, 4 }
 0x80a   :  { %v778_v33 = vsel %vm546_vm4, %v776_v31, %v774_v32 }
 0x80b   :  { %v4989_v35 = vmul.f32 -1.442695, %v778_v33 }
 0x80d   :  { %6036 = vpow2.f32 %v4989_v35 }
 0x80e   :  { %6038 = vtanh.f32 %v778_v33 }
 0x817   :  { %v6037_v37 = vpop.eup %6036 }
 0x818   :  { %v783_v38 = vadd.f32 1.0, %v6037_v37  ;;  %v6039_v39 = vpop.eup %6038 }
 0x81a   :  { %6040 = vrcp.f32 %v783_v38 }
 0x824   :  { %v6041_v40 = vpop.eup %6040 }
 0x825   :  { %v786_v41 = vsel %vm6440_vm7, %v6039_v39, %v6041_v40 }
 0x826   :  { %789 = vrot.lane.b32.xlu0 %v786_v41, %s6272_s6  ;;  %v787_v46 = vmul.f32 %v786_v41, %v687_v19 }
 0x898   :  { %v790_v42 = vpop.permute.xlu0 %789 }
 0x899   :  { %v792_v43 = vmul.f32 %v790_v42, %v786_v41 }
 0x89b   :  { %794 = vrot.lane.b32.xlu1 %v792_v43, %s6270_s28 }
 0x90d   :  { %v795_v47 = vpop.permute.xlu1 %794 }
 0x90e   :  { %v797_v48 = vadd.f32 %v795_v47, %v787_v46 }
 0x910   :  { %6042 = vtanh.f32 %v797_v48 }
 0x91a   :  { %v6043_v49 = vpop.eup %6042 }
 0x91b   :  { %800 = vrot.lane.b32.xlu0 %v6043_v49, %s6272_s6 }
 0x98d   :  { %v801_v50 = vpop.permute.xlu0 %800 }
 0x98e   :  { %v6485_v51 = vmul.f32 %v801_v50, %v786_v41 }
 0x990   :  { %805 = vrot.lane.b32.xlu1 %v6485_v51, %s6270_s28 }
 0xa02   :  { %v806_v52 = vpop.permute.xlu1 %805 }
 0xa03   :  { %4990 = vmatmul.mubr.msk.f32.vlgmr.msra.gmra.mrb[8].mxu1 %vm347_vm2, %v806_v52 }
 0xa04   :  { %5736 = vmatpush1.bf16.msra.mxu1 %v6370_v61  ;;  %1099 = vmatprep.mubr.f32.mxu1 %v6267_v60 }
 0xa05   :  { %5738 = vmatprep.subr.bf16.mxu1 %v6382_v0 }
 0xa08   :  { %5740 = vmatpush1.bf16.msra.mxu1 %v6386_v3 }
 0xa09   :  { %5750 = vmatprep.subr.bf16.mxu1 %v6365_v57 }
 0xad6   :  { %v875_v53 = vpop.f32.mrb[8].mxu1 }
 0xad7   :  { %v881_v54 = vrot.slane %v875_v53, 2  ;;  %v877_v55 = vpop.f32.mrb[9].mxu1 }
 0xad8   :  { %v885_v58 = vrot.slane %v877_v55, 2 }
 0xad9   :  { %v883_v59 = vadd.f32 %v881_v54, %v6431_v36 }
 0xada   :  { %v887_v62 = vadd.f32 %v885_v58, %v6429_v34 }
 0xadb   :  { %v889_v63 = vrot.slane %v883_v59, 6 }
 0xadc   :  { %v892_v1 = vrot.slane %v887_v62, 6 }
 0xade   :  { %v894_v2 = vsel %vm546_vm4, %v889_v63, %v892_v1 }
 0xadf   :  { %v4991_v4 = vmul.f32 -1.442695, %v894_v2 }
 0xae1   :  { %6044 = vpow2.f32 %v4991_v4 }
 0xae2   :  { %6046 = vtanh.f32 %v894_v2 }
 0xaeb   :  { %v6045_v5 = vpop.eup %6044 }
 0xaec   :  { %v899_v6 = vadd.f32 1.0, %v6045_v5  ;;  %v6047_v7 = vpop.eup %6046 }
 0xaee   :  { %6048 = vrcp.f32 %v899_v6 }
 0xaf8   :  { %v6049_v57 = vpop.eup %6048 }
 0xaf9   :  { %v902_v8 = vsel %vm6440_vm7, %v6047_v7, %v6049_v57 }
 0xafa   :  { %905 = vrot.lane.b32.xlu0 %v902_v8, %s6272_s6  ;;  %v903_v34 = vmul.f32 %v902_v8, %v797_v48 }
 0xb6c   :  { %v906_v36 = vpop.permute.xlu0 %905 }
 0xb6d   :  { %v908_v9 = vmul.f32 %v906_v36, %v902_v8 }
 0xb6f   :  { %910 = vrot.lane.b32.xlu1 %v908_v9, %s6270_s28 }
 0xbe1   :  { %v911_v10 = vpop.permute.xlu1 %910 }
 0xbe2   :  { %v913_v11 = vadd.f32 %v911_v10, %v903_v34 }
 0xbe4   :  { %6050 = vtanh.f32 %v913_v11 }
 0xbee   :  { %v6051_v12 = vpop.eup %6050 }
 0xbef   :  { %916 = vrot.lane.b32.xlu0 %v6051_v12, %s6272_s6 }
 0xc61   :  { %v917_v13 = vpop.permute.xlu0 %916 }
 0xc62   :  { %v6503_v14 = vmul.f32 %v917_v13, %v902_v8 }
 0xc64   :  { %921 = vrot.lane.b32.xlu1 %v6503_v14, %s6270_s28 }
 0xcd6   :  { %v922_v15 = vpop.permute.xlu1 %921 }
 0xcd7   :  { %4992 = vmatmul.mubr.msk.f32.vlgmr.msra.gmra.mrb[14].mxu0 %vm347_vm2, %v922_v15 }
 0xcd8   :  { %5744 = vmatpush1.bf16.msra.mxu0 %v6370_v61  ;;  %1215 = vmatprep.mubr.f32.mxu0 %v6267_v60 }
 0xcd9   :  { %5746 = vmatprep.subr.bf16.mxu0 %v6382_v0 }
 0xcdc   :  { %5748 = vmatpush1.bf16.msra.mxu0 %v6386_v3 }
 0xdaa   :  { %v991_v16 = vpop.f32.mrb[14].mxu0 }
 0xdab   :  { %v993_v17 = vpop.f32.mrb[15].mxu0  ;;  %v996_v22 = vadd.f32 %v991_v16, %v6427_v30 }
 0xdac   :  { %v998_v19 = vrot.slane %v993_v17, 4 }
 0xdae   :  { %v1000_v21 = vadd.f32 %v998_v19, %v6425_v27 }
 0xdb0   :  { %v1002_v24 = vrot.slane %v1000_v21, 4 }
 0xdb2   :  { %v1004_v25 = vsel %vm546_vm4, %v996_v22, %v1002_v24 }
 0xdb3   :  { %v4993_v26 = vmul.f32 -1.442695, %v1004_v25 }
 0xdb5   :  { %6052 = vpow2.f32 %v4993_v26 }
 0xdb6   :  { %6054 = vtanh.f32 %v1004_v25 }
 0xdbf   :  { %v6053_v28 = vpop.eup %6052 }
 0xdc0   :  { %v1009_v29 = vadd.f32 1.0, %v6053_v28  ;;  %v6055_v31 = vpop.eup %6054 }
 0xdc2   :  { %6056 = vrcp.f32 %v1009_v29 }
 0xdcc   :  { %v6057_v32 = vpop.eup %6056 }
 0xdcd   :  { %v1012_v33 = vsel %vm6440_vm7, %v6055_v31, %v6057_v32 }
 0xdce   :  { %1015 = vrot.lane.b32.xlu0 %v1012_v33, %s6272_s6  ;;  %v1013_v38 = vmul.f32 %v1012_v33, %v913_v11 }
 0xe40   :  { %v1016_v35 = vpop.permute.xlu0 %1015 }
 0xe41   :  { %v1018_v37 = vmul.f32 %v1016_v35, %v1012_v33 }
 0xe43   :  { %1020 = vrot.lane.b32.xlu1 %v1018_v37, %s6270_s28 }
 0xeb5   :  { %v1021_v39 = vpop.permute.xlu1 %1020 }
 0xeb6   :  { %v1023_v40 = vadd.f32 %v1021_v39, %v1013_v38 }
 0xeb8   :  { %6058 = vtanh.f32 %v1023_v40 }
 0xec2   :  { %v6059_v41 = vpop.eup %6058 }
 0xec3   :  { %1026 = vrot.lane.b32.xlu0 %v6059_v41, %s6272_s6 }
 0xf35   :  { %v1027_v42 = vpop.permute.xlu0 %1026 }
 0xf36   :  { %v6520_v43 = vmul.f32 %v1027_v42, %v1012_v33 }
 0xf38   :  { %1031 = vrot.lane.b32.xlu1 %v6520_v43, %s6270_s28 }
 0xfaa   :  { %v1032_v46 = vpop.permute.xlu1 %1031 }
 0xfab   :  { %4994 = vmatmul.mubr.msk.f32.vlgmr.msra.gmra.mrb[10].mxu1 %vm347_vm2, %v1032_v46 }
 0xfac   :  { %5752 = vmatpush1.bf16.msra.mxu1 %v6370_v61  ;;  %1325 = vmatprep.mubr.f32.mxu1 %v6267_v60 }
 0xfad   :  { %5754 = vmatprep.subr.bf16.mxu1 %v6382_v0 }
 0xfb0   :  { %5756 = vmatpush1.bf16.msra.mxu1 %v6386_v3 }
0x107e   :  { %v1101_v47 = vpop.f32.mrb[10].mxu1 }
0x107f   :  { %v1107_v48 = vrot.slane %v1101_v47, 6  ;;  %v1103_v49 = vpop.f32.mrb[11].mxu1 }
0x1080   :  { %v1111_v50 = vrot.slane %v1103_v49, 6 }
0x1081   :  { %v1109_v52 = vadd.f32 %v1107_v48, %v6427_v30 }
0x1082   :  { %v1113_v53 = vadd.f32 %v1111_v50, %v6425_v27 }
0x1083   :  { %v1115_v54 = vrot.slane %v1109_v52, 2 }
0x1084   :  { %v1118_v55 = vrot.slane %v1113_v53, 2 }
0x1086   :  { %v1120_v58 = vsel %vm546_vm4, %v1115_v54, %v1118_v55 }
0x1087   :  { %v4995_v59 = vmul.f32 -1.442695, %v1120_v58 }
0x1089   :  { %6060 = vpow2.f32 %v4995_v59 }
0x108a   :  { %6062 = vtanh.f32 %v1120_v58 }
0x1093   :  { %v6061_v61 = vpop.eup %6060 }
0x1094   :  { %v1125_v62 = vadd.f32 1.0, %v6061_v61  ;;  %v6063_v0 = vpop.eup %6062  ;;  %v6274_v61 = vmov 0.0|0.0  }
0x1095   :  { %5757 = vmatprep.subr.bf16.mxu0 %v6274_v61  ;;  %5797 = vmatprep.subr.bf16.mxu1 %v6274_v61 }
0x1096   :  { %6064 = vrcp.f32 %v1125_v62  ;;  %v1428_v62 = vld [vmem:[%s4953_s11] sm:$0xff] }
0x10a0   :  { %v6065_v3 = vpop.eup %6064 }
0x10a1   :  { %v1128_v63 = vsel %vm6440_vm7, %v6063_v0, %v6065_v3  ;;  %v1429_v0 = vld [vmem:[%s4953_s11 + $0x8] sm:$0xff]  ;;  %v1430_v3 = vld [vmem:[%s4953_s11 + $0x10] sm:$0xff] }
0x10a2   :  { %1131 = vrot.lane.b32.xlu0 %v1128_v63, %s6272_s6  ;;  %v1129_v4 = vmul.f32 %v1128_v63, %v1023_v40 }
0x1114   :  { %v1132_v1 = vpop.permute.xlu0 %1131 }
0x1115   :  { %v1134_v2 = vmul.f32 %v1132_v1, %v1128_v63  ;;  %v1431_v1 = vld [vmem:[%s4953_s11 + $0x18] sm:$0xff] }
0x1117   :  { %1136 = vrot.lane.b32.xlu1 %v1134_v2, %s6270_s28  ;;  %v5761_v2 = vpack.c.bf16 %v1431_v1, %v1430_v3  ;;  %v1861_v3 = vld [vmem:[%s4958_s24 + $0x8] sm:$0xff] }
0x1189   :  { %v1137_v5 = vpop.permute.xlu1 %1136 }
0x118a   :  { %v1139_v6 = vadd.f32 %v1137_v5, %v1129_v4  ;;  %v1432_v4 = vld [vmem:[%s4953_s11 + $0x20] sm:$0xff]  ;;  %v1433_v5 = vld [vmem:[%s4953_s11 + $0x28] sm:$0xff] }
0x118c   :  { %6066 = vtanh.f32 %v1139_v6 }
0x1196   :  { %v6067_v7 = vpop.eup %6066 }
0x1197   :  { %1142 = vrot.lane.b32.xlu0 %v6067_v7, %s6272_s6  ;;  %v1434_v7 = vld [vmem:[%s4953_s11 + $0x30] sm:$0xff] }
0x1209   :  { %v1143_v57 = vpop.permute.xlu0 %1142 }
0x120a   :  { %v6537_v8 = vmul.f32 %v1143_v57, %v1128_v63  ;;  %v5758_v63 = vpack.c.bf16 %v1429_v0, %v1428_v62  ;;  %v1435_v57 = vld [vmem:[%s4953_s11 + $0x38] sm:$0xff]  ;;  %v1395_v0 = vrot.slane %v6449_v56, 4  ;;  %s6283_s11 = smov 20  }
0x120c   :  { %1147 = vrot.lane.b32.xlu1 %v6537_v8, %s6270_s28 }
0x127e   :  { %v1148_v36 = vpop.permute.xlu1 %1147 }
0x127f   :  { %4996 = vmatmul.mubr.msk.f32.vlgmr.msra.gmra.mrb[16].mxu0 %vm347_vm2, %v1148_v36  ;;  %v5767_v36 = vpack.c.bf16 %v1435_v57, %v1434_v7 }
0x1280   :  { %5759 = vmatpush3.bf16.msra.mxu0 %v5758_v63  ;;  %5350 = vmatprep.mubr.msk.f32.mxu0 %vm6276_vm8, %v6267_v60  ;;  %v1862_v63 = vld [vmem:[%s4958_s24 + $0x10] sm:$0xff] }
0x1281   :  { %5760 = vmatprep.subr.bf16.mxu0 %v6274_v61 }
0x1284   :  { %5762 = vmatpush3.bf16.msra.mxu0 %v5761_v2  ;;  %v1863_v2 = vld [vmem:[%s4958_s24 + $0x18] sm:$0xff] }
0x1285   :  { %5763 = vmatprep.subr.bf16.mxu0 %v6274_v61 }
0x1352   :  { %v1217_v9 = vpop.f32.mrb[16].mxu0 }
0x1353   :  { %v1223_v34 = vrot.slane %v1217_v9, 4  ;;  %v1219_v10 = vpop.f32.mrb[17].mxu0  ;;  %v1518_v9 = vld [vmem:[%s6583_s14] sm:$0xff] }
0x1354   :  { %v1226_v13 = vadd.f32 %v1219_v10, %v6425_v27 }
0x1355   :  { %v1225_v11 = vadd.f32 %v1223_v34, %v6427_v30  ;;  %v1519_v34 = vld [vmem:[%s6583_s14 + $0x8] sm:$0xff] }
0x1356   :  { %v5769_v10 = vpack.c.bf16 %v1519_v34, %v1518_v9 }
0x1357   :  { %v1228_v12 = vrot.slane %v1225_v11, 4 }
0x1359   :  { %v1230_v15 = vsel %vm546_vm4, %v1228_v12, %v1226_v13 }
0x135a   :  { %v4997_v16 = vmul.f32 -1.442695, %v1230_v15 }
0x135c   :  { %6068 = vpow2.f32 %v4997_v16  ;;  %v1627_v16 = vld [vmem:[%s6595_s18 + $0x8] sm:$0xff] }
0x135d   :  { %6070 = vtanh.f32 %v1230_v15  ;;  %v1372_v15 = vrot.slane %v6467_v23, 6 }
0x1366   :  { %v6069_v17 = vpop.eup %6068 }
0x1367   :  { %v1235_v19 = vadd.f32 1.0, %v6069_v17  ;;  %v6071_v21 = vpop.eup %6070  ;;  %v1374_v17 = vrot.slane %v6485_v51, 4 }
0x1369   :  { %6072 = vrcp.f32 %v1235_v19  ;;  %v1376_v19 = vrot.slane %v6503_v14, 2  ;;  %v1520_v14 = vld [vmem:[%s6583_s14 + $0x10] sm:$0xff] }
0x1373   :  { %v6073_v22 = vpop.eup %6072 }
0x1374   :  { %v1238_v24 = vsel %vm6440_vm7, %v6071_v21, %v6073_v22  ;;  %v1385_v21 = vsel %vm546_vm4, %v6449_v56, %v1372_v15  ;;  %v6648_v56 = vpack.c.bf16 %v1863_v2, %v1862_v63 }
0x1375   :  { %1241 = vrot.lane.b32.xlu0 %v1238_v24, %s6272_s6  ;;  %v1239_v28 = vmul.f32 %v1238_v24, %v1139_v6  ;;  %v5764_v6 = vpack.c.bf16 %v1433_v5, %v1432_v4  ;;  %v1387_v22 = vsel %vm1386_vm9, %v1385_v21, %v1374_v17  ;;  %v1752_v17 = vld [vmem:[%s4957_s4 + $0x8] sm:$0xff]  ;;  %v5000_v21 = vld [vmem:[%s4954_s30] ss:$0 sm:$0xff]  ;;  %s4943_s30 = sld [smem:[%s7324_s0 + %s6292_s25]]  }
0x1377   :  { %5765 = vmatpush3.bf16.msra.mxu0 %v5764_v6 }
0x1378   :  { %5766 = vmatprep.subr.bf16.mxu0 %v6274_v61 }
0x137b   :  { %5768 = vmatpush3.bf16.msra.mxu0 %v5767_v36 }
0x137c   :  { %5770 = vmatprep.subr.bf16.mxu0 %v5769_v10 }
0x13e7   :  { %v1242_v25 = vpop.permute.xlu0 %1241 }
0x13e8   :  { %v1244_v26 = vmul.f32 %v1242_v25, %v1238_v24  ;;  %v1626_v25 = vld [vmem:[%s6595_s18] sm:$0xff] }
0x13ea   :  { %1246 = vrot.lane.b32.xlu1 %v1244_v26, %s6270_s28  ;;  %v1521_v26 = vld [vmem:[%s6583_s14 + $0x18] sm:$0xff] }
0x145c   :  { %v1247_v29 = vpop.permute.xlu1 %1246 }
0x145d   :  { %v6549_v31 = vadd.f32 %v1247_v29, %v1239_v28 }
0x145f   :  { %6074 = vtanh.f32 %v6549_v31 }
0x1469   :  { %v6075_v32 = vpop.eup %6074 }
0x146a   :  { %1252 = vrot.lane.b32.xlu0 %v6075_v32, %s6272_s6 }
0x14dc   :  { %v1253_v33 = vpop.permute.xlu0 %1252 }
0x14dd   :  { %v6553_v35 = vmul.f32 %v1253_v33, %v1238_v24  ;;  %v1389_v24 = vsel %vm1388_vm10, %v1387_v22, %v1376_v19  ;;  %v1522_v33 = vld [vmem:[%s6583_s14 + $0x20] sm:$0xff] }
0x14df   :  { %1257 = vrot.lane.b32.xlu1 %v6553_v35, %s6270_s28 }
0x1551   :  { %v1258_v37 = vpop.permute.xlu1 %1257 }
0x1552   :  { %4998 = vmatmul.mubr.msk.f32.vlgmr.msra.gmra.mrb[12].mxu1 %vm347_vm2, %v1258_v37  ;;  %v1523_v37 = vld [vmem:[%s6583_s14 + $0x28] sm:$0xff] }
0x1553   :  { %5406 = vmatprep.mubr.msk.f32.mxu1 %vm6276_vm8, %v6267_v60 }
0x1625   :  { %v1327_v38 = vpop.f32.mrb[12].mxu1 }
0x1626   :  { %v1333_v39 = vrot.slane %v1327_v38, 2  ;;  %v1329_v40 = vpop.f32.mrb[13].mxu1  ;;  %v5777_v38 = vpack.c.bf16 %v1523_v37, %v1522_v33 }
0x1627   :  { %v1337_v41 = vrot.slane %v1329_v40, 2  ;;  %v1525_v40 = vld [vmem:[%s6583_s14 + $0x38] sm:$0xff] }
0x1628   :  { %v1335_v42 = vadd.f32 %v1333_v39, %v6427_v30  ;;  %v1524_v39 = vld [vmem:[%s6583_s14 + $0x30] sm:$0xff]  ;;  %s4959_s14 = sld [smem:[%s7324_s0 + %s6283_s11]]   ;;  %s6297_s11 = smov 26  }
0x1629   :  { %v1339_v46 = vadd.f32 %v1337_v41, %v6425_v27  ;;  %v6273_v27 = vmov 0   ;;  %v5781_v41 = vpack.c.bf16 %v1525_v40, %v1524_v39 }
0x162a   :  { %v1341_v47 = vrot.slane %v1335_v42, 6  ;;  %6004 = vset.pattern.permute.xlu1 %v6273_v27  ;;  %6003 = vset.pattern.permute.xlu0 %v6273_v27  ;;  %v1378_v42 = vrot.slane %v6537_v8, 6 }
0x162b   :  { %v1344_v48 = vrot.slane %v1339_v46, 6  ;;  %v1380_v46 = vrot.slane %v6553_v35, 4 }
0x162d   :  { %v1346_v49 = vsel %vm546_vm4, %v1341_v47, %v1344_v48 }
0x162e   :  { %v4999_v50 = vmul.f32 -1.442695, %v1346_v49 }
0x1630   :  { %6076 = vpow2.f32 %v4999_v50  ;;  %v1390_v50 = vsel %vm546_vm4, %v6520_v43, %v1378_v42 }
0x1631   :  { %6078 = vtanh.f32 %v1346_v49 }
0x163a   :  { %v6077_v52 = vpop.eup %6076 }
0x163b   :  { %v1351_v53 = vadd.f32 1.0, %v6077_v52  ;;  %v6079_v54 = vpop.eup %6078  ;;  %v1391_v52 = vsel %vm1386_vm9, %v1390_v50, %v1380_v46 }
0x163d   :  { %6080 = vrcp.f32 %v1351_v53  ;;  %v1393_v53 = vrot.slane %v6520_v43, 4 }
0x1647   :  { %v6081_v55 = vpop.eup %6080 }
0x1648   :  { %v6563_v58 = vsel %vm6440_vm7, %v6079_v54, %v6081_v55  ;;  %v1400_v55 = vsel %vm546_vm4, %v1376_v19, %v6485_v51  ;;  %v1860_v51 = vld [vmem:[%s4958_s24] sm:$0xff]  ;;  %s4947_s24 = sld [smem:[%s7324_s0 + %s6291_s20]]  }
0x1649   :  { %1357 = vrot.lane.b32.xlu0 %v6563_v58, %s6272_s6  ;;  %v1355_v11 = vmul.f32 %v6563_v58, %v6549_v31  ;;  %v5773_v31 = vpack.c.bf16 %v1521_v26, %v1520_v14  ;;  %v1401_v62 = vsel %vm1386_vm9, %v1400_v55, %v1372_v15  ;;  %v6645_v1 = vpack.c.bf16 %v1861_v3, %v1860_v51  ;;  %v1754_v14 = vld [vmem:[%s4957_s4 + $0x18] sm:$0xff] }
0x164a   :  { %v1402_v43 = vsel %vm1388_vm10, %v1401_v62, %v1395_v0  ;;  %v5015_v0 = vld [vmem:[%s4959_s14] ss:$0 sm:$0xff]  ;;  %s4965_s14 = sld [smem:[%s7324_s0 + %s6297_s11]]  }
0x164b   :  { %5799 = vmatpush3.bf16.msra.mxu1 %v6645_v1 }
0x164c   :  { %5800 = vmatprep.subr.bf16.mxu1 %v6274_v61 }
0x164f   :  { %5802 = vmatpush3.bf16.msra.mxu1 %v6648_v56 }
0x1650   :  { %5803 = vmatprep.subr.bf16.mxu1 %v6274_v61 }
0x16bb   :  { %v1358_v30 = vpop.permute.xlu0 %1357 }
0x16bc   :  { %v1360_v59 = vmul.f32 %v1358_v30, %v6563_v58 }
0x16be   :  { %1362 = vrot.lane.b32.xlu1 %v1360_v59, %s6270_s28  ;;  %v1628_v59 = vld [vmem:[%s6595_s18 + $0x10] sm:$0xff] }
0x1730   :  { %v1363_v12 = vpop.permute.xlu1 %1362 }
0x1731   :  { %v1365_v13 = vadd.f32 %v1363_v12, %v1355_v11 }
0x1733   :  { %6082 = vtanh.f32 %v1365_v13  ;;  %1422 = vrot.lane.b32.xlu1 %v1365_v13, %s6278_s19  ;;  %v1425_v28 = vrot.slane %v1365_v13, 2 }
0x1737   :  { %1634 = vperm.xlu1 %6004, %v1627_v16  }
0x173b   :  { %1405 = vrot.lane.b32.xlu1 %v1389_v24, %s6270_s28 }
0x173d   :  { %v6083_v23 = vpop.eup %6082 }
0x173e   :  { %1368 = vrot.lane.b32.xlu0 %v6083_v23, %s6272_s6 }
0x1742   :  { %1631 = vperm.xlu0 %6003, %v1626_v25   ;;  %v1753_v25 = vld [vmem:[%s4957_s4 + $0x10] sm:$0xff] }
0x1743   :  { %v5793_v26 = vpack.c.bf16 %v1754_v14, %v1753_v25 }
0x17a5   :  { %v1423_v29 = vpop.permute.xlu1 %1422 }
0x17a6   :  { %v1427_v32 = vsel %vm347_vm2, %v1423_v29, %v1425_v28  ;;  %v1755_v29 = vld [vmem:[%s4957_s4 + $0x20] sm:$0xff] }
0x17a7   :  { %5351 = vmatmul.mubr.msk.f32.vlgmr.msra.gmra.mrb[18].mxu0 %vm1443_vm11, %v1427_v32 }
0x17a8   :  { %5772 = vmatpush3.bf16.msra.mxu0 %v5769_v10 }
0x17a9   :  { %5774 = vmatprep.subr.bf16.mxu0 %v5773_v31 }
0x17ac   :  { %5776 = vmatpush3.bf16.msra.mxu0 %v5773_v31  ;;  %v5002_v31 = vld [vmem:[%s4956_s10] ss:$0 sm:$0xff]  ;;  %s6296_s10 = smov 48  }
0x17ad   :  { %5778 = vmatprep.subr.bf16.mxu0 %v5777_v38 }
0x17b0   :  { %5780 = vmatpush3.bf16.msra.mxu0 %v5777_v38  ;;  %v1369_v47 = vpop.permute.xlu0 %1368 }
0x17b1   :  { %v1371_v48 = vmul.f32 %v1369_v47, %v6563_v58  ;;  %5782 = vmatprep.subr.bf16.mxu0 %v5781_v41 }
0x17b3   :  { %v1383_v49 = vrot.slane %v1371_v48, 2 }
0x17b4   :  { %5784 = vmatpush3.bf16.msra.mxu0 %v5781_v41 }
0x17b5   :  { %5786 = vmatprep.subr.bf16.mxu0 %v6402_v18  ;;  %v1392_v8 = vsel %vm1388_vm10, %v1391_v52, %v1383_v49  ;;  %v1397_v54 = vsel %vm546_vm4, %v1383_v49, %v6553_v35  ;;  %v1629_v35 = vld [vmem:[%s6595_s18 + $0x18] sm:$0x3f] }
0x17b6   :  { %1407 = vrot.lane.b32.xlu1 %v1392_v8, %s6270_s28  ;;  %v1398_v58 = vsel %vm1386_vm9, %v1397_v54, %v1378_v42  ;;  %v1635_v4 = vpop.permute.xlu1 %1634 }
0x17b7   :  { %v1399_v30 = vsel %vm1388_vm10, %v1398_v58, %v1393_v53  ;;  %vm1643_vm13 = vcmp.eq.s32.totalorder %v6436_v44, %v1635_v4 }
0x17b8   :  { %1413 = vrot.lane.b32.xlu0 %v1399_v30, %s6272_s6  ;;  %v5008_v11 = vsel %vm1643_vm13, 1.0, %v6267_v60  ;;  %vm3960_vm13 = vcmask 244736  }
0x17ba   :  { %1637 = vperm.xlu1 %6004, %v1628_v59   ;;  %v1406_v6 = vpop.permute.xlu1 %1405 }
0x17bc   :  { %1415 = vrot.lane.b32.xlu0 %v1402_v43, %s6272_s6 }
0x17c0   :  { %1640 = vperm.xlu0 %6003, %v1629_v35  }
0x17c1   :  { %v1632_v5 = vpop.permute.xlu0 %1631 }
0x17c2   :  { %vm1642_vm12 = vcmp.eq.s32.totalorder %v6436_v44, %v1632_v5 }
0x17c3   :  { %v5007_v10 = vsel %vm1642_vm12, 1.0, %v6267_v60 }
0x1828   :  { %v1408_v36 = vpop.permute.xlu1 %1407 }
0x182a   :  { %v1414_v7 = vpop.permute.xlu0 %1413 }
0x182b   :  { %v1419_v57 = vsel %vm347_vm2, %v1406_v6, %v1414_v7 }
0x182c   :  { %5369 = vmatprep.mubr.msk.f32.mxu0 %vm1443_vm11, %v1419_v57 }
0x182e   :  { %v1416_v9 = vpop.permute.xlu0 %1415 }
0x182f   :  { %v1420_v34 = vsel %vm347_vm2, %v1408_v36, %v1416_v9 }
0x1830   :  { %5370 = vmatmul.mubr.msk.f32.vlgmr.msra.gmra.mrb[20].mxu0 %vm1443_vm11, %v1420_v34 }
0x1831   :  { %5788 = vmatpush3.bf16.msra.mxu0 %v6402_v18  ;;  %5376 = vmatprep.mubr.msk.f32.mxu0 %vm344_vm1, %v5007_v10  ;;  %v1751_v18 = vld [vmem:[%s4957_s4] sm:$0xff]  ;;  %s4966_s4 = sld [smem:[%s7324_s0 + %s6293_s1]]  }
0x1832   :  { %v5789_v19 = vpack.c.bf16 %v1752_v17, %v1751_v18 }
0x1834   :  { %5377 = vmatmul.mubr.msk.f32.vlgmr.msra.gmra.mrb[22].mxu0 %vm344_vm1, %v5008_v11  ;;  %5790 = vmatprep.subr.bf16.mxu0 %v5789_v19 }
0x1835   :  { %5792 = vmatpush3.bf16.msra.mxu0 %v5789_v19 }
0x1836   :  { %5794 = vmatprep.subr.bf16.mxu0 %v5793_v26 }
0x1839   :  { %v1638_v12 = vpop.permute.xlu1 %1637  ;;  %5796 = vmatpush3.bf16.msra.mxu0 %v5793_v26 }
0x183a   :  { %vm1644_vm14 = vcmp.eq.s32.totalorder %v6436_v44, %v1638_v12  ;;  %5390 = vmatprep.subr.mxu0 %v1755_v29 }
0x183b   :  { %v5009_v13 = vsel %vm1644_vm14, 1.0, %v6267_v60 }
0x183c   :  { %5379 = vmatprep.mubr.msk.f32.mxu0 %vm344_vm1, %v5009_v13 }
0x183d   :  { %5391 = vmatpush3.msra.mxu0 %v1755_v29 }
0x183e   :  { %5809 = vmatprep.subr.bf16.mxu0 %v6274_v61 }
0x183f   :  { %v1641_v15 = vpop.permute.xlu0 %1640 }
0x1840   :  { %vm1645_vm15 = vcmp.eq.s32.totalorder %v6436_v44, %v1641_v15 }
0x1841   :  { %v5010_v16 = vsel %vm1645_vm15, 1.0, %v6267_v60 }
0x1842   :  { %5380 = vmatmul.mubr.msk.f32.gmra.mrb[24].mxu0 %vm344_vm1, %v5010_v16 }
0x187a   :  { %v1513_v22 = vpop.f32.mrb[18].mxu0 }
0x187b   :  { %v1514_v24 = vadd.f32 %v5000_v21, %v1513_v22  ;;  %v5352_v23 = vpop.f32.mrb[19].mxu0 }
0x187d   :  { %6084 = vtanh.f32 %v1514_v24  ;;  %1947 = vrot.lane.b32.xlu0 %v1514_v24, %s6270_s28 }
0x1887   :  { %v6085_v28 = vpop.eup %6084 }
0x1888   :  { %5407 = vmatmul.mubr.msk.f32.vlgmr.msra.gmra.mrb[14].mxu1 %vm347_vm2, %v6085_v28 }
0x1889   :  { %5805 = vmatpush3.bf16.msra.mxu1 %v6645_v1  ;;  %5417 = vmatprep.mubr.msk.f32.mxu1 %vm6276_vm8, %v6267_v60 }
0x188a   :  { %5806 = vmatprep.subr.bf16.mxu1 %v6274_v61 }
0x188d   :  { %5808 = vmatpush3.bf16.msra.mxu1 %v6648_v56 }
0x188e   :  { %5815 = vmatprep.subr.bf16.mxu1 %v6274_v61 }
0x18ef   :  { %v1948_v13 = vpop.permute.xlu0 %1947 }
0x1903   :  { %v5371_v32 = vpop.f32.mrb[20].mxu0 }
0x1904   :  { %v1611_v33 = vadd.f32 %v5371_v32, %v5002_v31  ;;  %v1605_v37 = vpop.f32.mrb[21].mxu0 }
0x1905   :  { %v1606_v38 = vadd.f32 %v5002_v31, %v1605_v37 }
0x1906   :  { %v1617_v39 = vmin.f32 %v1611_v33, 0.0  ;;  %vm1615_vm0 = vcmp.gt.f32.partialorder %v1611_v33, 0.0 }
0x1907   :  { %v1616_v40 = vmin.f32 %v1606_v38, 0.0  ;;  %v5378_v41 = vpop.f32.mrb[22].mxu0  ;;  %vm1614_vm5 = vcmp.gt.f32.partialorder %v1606_v38, 0.0 }
0x1908   :  { %v1620_v42 = vmul.f32 1.442695, %v1617_v39  ;;  %v1732_v46 = vpop.f32.mrb[23].mxu0 }
0x1909   :  { %v1618_v47 = vmul.f32 1.442695, %v1616_v40  ;;  %5392 = vmatprep.mubr.msk.f32.mxu0 %vm372_vm3, %v1732_v46 }
0x190a   :  { %6086 = vpow2.f32 %v1620_v42  ;;  %5393 = vmatmul.mubr.msk.f32.vlgmr.msra.gmra.mrb[26].mxu0 %vm372_vm3, %v5378_v41 }
0x190b   :  { %6088 = vpow2.f32 %v1618_v47  ;;  %5811 = vmatpush3.bf16.msra.mxu0 %v6645_v1 }
0x190c   :  { %5812 = vmatprep.subr.bf16.mxu0 %v6274_v61 }
0x190f   :  { %5814 = vmatpush3.bf16.msra.mxu0 %v6648_v56 }
0x1910   :  { %5821 = vmatprep.subr.bf16.mxu0 %v6274_v61 }
0x1914   :  { %v6087_v48 = vpop.eup %6086 }
0x1915   :  { %v6089_v49 = vpop.eup %6088  ;;  %v5006_v50 = vadd.f32 -1.0, %v6087_v48  ;;  %v5381_v52 = vpop.f32.mrb[24].mxu0 }
0x1916   :  { %v5005_v8 = vadd.f32 -1.0, %v6089_v49  ;;  %v1742_v53 = vpop.f32.mrb[25].mxu0 }
0x1917   :  { %v6694_v54 = vsel %vm1615_vm0, %v1611_v33, %v5006_v50  ;;  %5395 = vmatprep.mubr.msk.f32.mxu0 %vm372_vm3, %v1742_v53 }
0x1918   :  { %v6697_v55 = vsel %vm1614_vm5, %v1606_v38, %v5005_v8  ;;  %5396 = vmatmul.mubr.msk.f32.gmra.mrb[28].mxu0 %vm372_vm3, %v5381_v52  ;;  %vm6928_vm3 = vmpackc.low %vm347_vm2, %vm347_vm2 }
0x1919   :  { %v6011_v58 = vpack.i.bf16 %v6694_v54, %v6697_v55  ;;  %v6704_v30 = vpack.c.bf16 %v6694_v54, %v6697_v55  ;;  %5428 = vmatprep.mubr.msk.f32.mxu0 %vm6276_vm8, %v6267_v60 }
0x195b   :  { %v1933_v59 = vpop.f32.mrb[14].mxu1 }
0x195c   :  { %v5408_v62 = vpop.f32.mrb[15].mxu1 }
0x19dd   :  { %v5394_v43 = vpop.f32.mrb[26].mxu0 }
0x19de   :  { %v6711_v35 = vadd.f32 %v5394_v43, %v5015_v0  ;;  %v1841_v51 = vpop.f32.mrb[27].mxu0 }
0x19df   :  { %v6713_v3 = vadd.f32 %v5015_v0, %v1841_v51 }
0x19e1   :  { %v1937_v63 = vadd.f32 %v1933_v59, %v6713_v3 }
0x19e3   :  { %v5021_v2 = vmul.f32 -1.442695, %v1937_v63 }
0x19e5   :  { %6090 = vpow2.f32 %v5021_v2 }
0x19e6   :  { %6092 = vtanh.f32 %v1937_v63 }
0x19eb   :  { %v5397_v4 = vpop.f32.mrb[28].mxu0 }
0x19ec   :  { %v6716_v5 = vadd.f32 %v5397_v4, %v5015_v0  ;;  %v1851_v6 = vpop.f32.mrb[29].mxu0 }
0x19ed   :  { %v6718_v7 = vadd.f32 %v5015_v0, %v1851_v6 }
0x19ef   :  { %v6091_v57 = vpop.eup %6090 }
0x19f0   :  { %v1942_v36 = vadd.f32 1.0, %v6091_v57  ;;  %v6093_v9 = vpop.eup %6092 }
0x19f2   :  { %6094 = vrcp.f32 %v1942_v36 }
0x19fc   :  { %v6095_v34 = vpop.eup %6094 }
0x19fd   :  { %v1945_v10 = vsel %vm6440_vm7, %v6093_v9, %v6095_v34 }
0x19fe   :  { %1952 = vrot.lane.b32.xlu1 %v1945_v10, %s6272_s6  ;;  %v1950_v15 = vmul.f32 %v1948_v13, %v1945_v10 }
0x1a70   :  { %v1953_v11 = vpop.permute.xlu1 %1952 }
0x1a71   :  { %v1955_v12 = vmul.f32 %v1953_v11, %v1945_v10 }
0x1a73   :  { %1957 = vrot.lane.b32.xlu1 %v1955_v12, %s6270_s28 }
0x1ae5   :  { %v1958_v16 = vpop.permute.xlu1 %1957 }
0x1ae6   :  { %v1960_v18 = vadd.f32 %v1958_v16, %v1950_v15 }
0x1ae8   :  { %6096 = vtanh.f32 %v1960_v18  ;;  %v2055_v39 = vrot.slane %v1960_v18, 6 }
0x1af2   :  { %v6097_v17 = vpop.eup %6096 }
0x1af3   :  { %1963 = vrot.lane.b32.xlu0 %v6097_v17, %s6272_s6 }
0x1b65   :  { %v1964_v19 = vpop.permute.xlu0 %1963 }
0x1b66   :  { %v6725_v21 = vmul.f32 %v1964_v19, %v1945_v10 }
0x1b68   :  { %1968 = vrot.lane.b32.xlu1 %v6725_v21, %s6270_s28 }
0x1bda   :  { %v1969_v22 = vpop.permute.xlu1 %1968 }
0x1bdb   :  { %5418 = vmatmul.mubr.msk.f32.vlgmr.msra.gmra.mrb[16].mxu1 %vm347_vm2, %v1969_v22 }
0x1bdc   :  { %5817 = vmatpush3.bf16.msra.mxu1 %v6645_v1  ;;  %5439 = vmatprep.mubr.msk.f32.mxu1 %vm6276_vm8, %v6267_v60 }
0x1bdd   :  { %5818 = vmatprep.subr.bf16.mxu1 %v6274_v61 }
0x1be0   :  { %5820 = vmatpush3.bf16.msra.mxu1 %v6648_v56 }
0x1be1   :  { %5827 = vmatprep.subr.bf16.mxu1 %v6274_v61 }
0x1cae   :  { %v2038_v24 = vpop.f32.mrb[16].mxu1 }
0x1caf   :  { %v2043_v23 = vrot.slane %v2038_v24, 6  ;;  %v5419_v25 = vpop.f32.mrb[17].mxu1 }
0x1cb1   :  { %v2045_v14 = vadd.f32 %v2043_v23, %v6713_v3 }
0x1cb3   :  { %v5023_v26 = vmul.f32 -1.442695, %v2045_v14 }
0x1cb5   :  { %6098 = vpow2.f32 %v5023_v26 }
0x1cb6   :  { %6100 = vtanh.f32 %v2045_v14 }
0x1cbf   :  { %v6099_v28 = vpop.eup %6098 }
0x1cc0   :  { %v2050_v29 = vadd.f32 1.0, %v6099_v28  ;;  %v6101_v31 = vpop.eup %6100 }
0x1cc2   :  { %6102 = vrcp.f32 %v2050_v29 }
0x1ccc   :  { %v6103_v32 = vpop.eup %6102 }
0x1ccd   :  { %v2053_v33 = vsel %vm6440_vm7, %v6101_v31, %v6103_v32 }
0x1cce   :  { %2059 = vrot.lane.b32.xlu0 %v2053_v33, %s6272_s6  ;;  %v2057_v40 = vmul.f32 %v2055_v39, %v2053_v33 }
0x1d40   :  { %v2060_v37 = vpop.permute.xlu0 %2059 }
0x1d41   :  { %v2062_v38 = vmul.f32 %v2060_v37, %v2053_v33 }
0x1d43   :  { %2064 = vrot.lane.b32.xlu1 %v2062_v38, %s6270_s28 }
0x1db5   :  { %v2065_v41 = vpop.permute.xlu1 %2064 }
0x1db6   :  { %v2067_v42 = vadd.f32 %v2065_v41, %v2057_v40 }
0x1db8   :  { %6104 = vtanh.f32 %v2067_v42  ;;  %v2163_v57 = vrot.slane %v2067_v42, 6 }
0x1dc2   :  { %v6105_v46 = vpop.eup %6104 }
0x1dc3   :  { %2070 = vrot.lane.b32.xlu0 %v6105_v46, %s6272_s6 }
0x1e35   :  { %v2071_v47 = vpop.permute.xlu0 %2070 }
0x1e36   :  { %v2073_v48 = vmul.f32 %v2071_v47, %v2053_v33 }
0x1e38   :  { %v2075_v49 = vrot.slane %v2073_v48, 2  ;;  %v3466_v13 = vsel %vm546_vm4, %v6725_v21, %v2073_v48 }
0x1e3a   :  { %2076 = vrot.lane.b32.xlu1 %v2075_v49, %s6270_s28 }
0x1eac   :  { %v2077_v50 = vpop.permute.xlu1 %2076 }
0x1ead   :  { %5429 = vmatmul.mubr.msk.f32.vlgmr.msra.gmra.mrb[30].mxu0 %vm347_vm2, %v2077_v50 }
0x1eae   :  { %5823 = vmatpush3.bf16.msra.mxu0 %v6645_v1  ;;  %5450 = vmatprep.mubr.msk.f32.mxu0 %vm6276_vm8, %v6267_v60 }
0x1eaf   :  { %5824 = vmatprep.subr.bf16.mxu0 %v6274_v61 }
0x1eb2   :  { %5826 = vmatpush3.bf16.msra.mxu0 %v6648_v56 }
0x1eb3   :  { %5833 = vmatprep.subr.bf16.mxu0 %v6274_v61 }
0x1f80   :  { %v2146_v52 = vpop.f32.mrb[30].mxu0 }
0x1f81   :  { %v2151_v8 = vrot.slane %v2146_v52, 4  ;;  %v5430_v53 = vpop.f32.mrb[31].mxu0 }
0x1f83   :  { %v2153_v59 = vadd.f32 %v2151_v8, %v6713_v3 }
0x1f85   :  { %v5025_v62 = vmul.f32 -1.442695, %v2153_v59 }
0x1f87   :  { %6106 = vpow2.f32 %v5025_v62 }
0x1f88   :  { %6108 = vtanh.f32 %v2153_v59 }
0x1f91   :  { %v6107_v0 = vpop.eup %6106 }
0x1f92   :  { %v2158_v43 = vadd.f32 1.0, %v6107_v0  ;;  %v6109_v51 = vpop.eup %6108 }
0x1f94   :  { %6110 = vrcp.f32 %v2158_v43 }
0x1f9e   :  { %v6111_v63 = vpop.eup %6110 }
0x1f9f   :  { %v2161_v2 = vsel %vm6440_vm7, %v6109_v51, %v6111_v63 }
0x1fa0   :  { %2167 = vrot.lane.b32.xlu0 %v2161_v2, %s6272_s6  ;;  %v2165_v36 = vmul.f32 %v2163_v57, %v2161_v2 }
0x2012   :  { %v2168_v4 = vpop.permute.xlu0 %2167 }
0x2013   :  { %v2170_v6 = vmul.f32 %v2168_v4, %v2161_v2 }
0x2015   :  { %2172 = vrot.lane.b32.xlu1 %v2170_v6, %s6270_s28 }
0x2087   :  { %v2173_v9 = vpop.permute.xlu1 %2172 }
0x2088   :  { %v2175_v34 = vadd.f32 %v2173_v9, %v2165_v36 }
0x208a   :  { %6112 = vtanh.f32 %v2175_v34  ;;  %v2271_v32 = vrot.slane %v2175_v34, 6 }
0x2094   :  { %v6113_v10 = vpop.eup %6112 }
0x2095   :  { %2178 = vrot.lane.b32.xlu0 %v6113_v10, %s6272_s6 }
0x2107   :  { %v2179_v11 = vpop.permute.xlu0 %2178 }
0x2108   :  { %v2181_v12 = vmul.f32 %v2179_v11, %v2161_v2 }
0x210a   :  { %v2183_v15 = vrot.slane %v2181_v12, 4  ;;  %v3467_v16 = vsel %vm1386_vm9, %v3466_v13, %v2181_v12 }
0x210c   :  { %2184 = vrot.lane.b32.xlu1 %v2183_v15, %s6270_s28 }
0x217e   :  { %v2185_v18 = vpop.permute.xlu1 %2184 }
0x217f   :  { %5440 = vmatmul.mubr.msk.f32.vlgmr.msra.gmra.mrb[18].mxu1 %vm347_vm2, %v2185_v18 }
0x2180   :  { %5829 = vmatpush3.bf16.msra.mxu1 %v6645_v1  ;;  %5461 = vmatprep.mubr.msk.f32.mxu1 %vm6276_vm8, %v6267_v60 }
0x2181   :  { %5830 = vmatprep.subr.bf16.mxu1 %v6274_v61 }
0x2184   :  { %5832 = vmatpush3.bf16.msra.mxu1 %v6648_v56 }
0x2185   :  { %5839 = vmatprep.subr.bf16.mxu1 %v6274_v61 }
0x2252   :  { %v2254_v17 = vpop.f32.mrb[18].mxu1 }
0x2253   :  { %v2259_v19 = vrot.slane %v2254_v17, 2  ;;  %v5441_v21 = vpop.f32.mrb[19].mxu1 }
0x2255   :  { %v2261_v22 = vadd.f32 %v2259_v19, %v6713_v3 }
0x2257   :  { %v5027_v24 = vmul.f32 -1.442695, %v2261_v22 }
0x2259   :  { %6114 = vpow2.f32 %v5027_v24 }
0x225a   :  { %6116 = vtanh.f32 %v2261_v22 }
0x2263   :  { %v6115_v23 = vpop.eup %6114 }
0x2264   :  { %v2266_v25 = vadd.f32 1.0, %v6115_v23  ;;  %v6117_v14 = vpop.eup %6116 }
0x2266   :  { %6118 = vrcp.f32 %v2266_v25 }
0x2270   :  { %v6119_v26 = vpop.eup %6118 }
0x2271   :  { %v2269_v28 = vsel %vm6440_vm7, %v6117_v14, %v6119_v26 }
0x2272   :  { %2275 = vrot.lane.b32.xlu0 %v2269_v28, %s6272_s6  ;;  %v2273_v33 = vmul.f32 %v2271_v32, %v2269_v28 }
0x22e4   :  { %v2276_v29 = vpop.permute.xlu0 %2275 }
0x22e5   :  { %v2278_v31 = vmul.f32 %v2276_v29, %v2269_v28 }
0x22e7   :  { %2280 = vrot.lane.b32.xlu1 %v2278_v31, %s6270_s28 }
0x2359   :  { %v2281_v3 = vpop.permute.xlu1 %2280 }
0x235a   :  { %v2283_v37 = vadd.f32 %v2281_v3, %v2273_v33 }
0x235c   :  { %6120 = vtanh.f32 %v2283_v37  ;;  %v2376_v51 = vrot.slane %v2283_v37, 6 }
0x2366   :  { %v6121_v38 = vpop.eup %6120 }
0x2367   :  { %2286 = vrot.lane.b32.xlu0 %v6121_v38, %s6272_s6 }
0x23d9   :  { %v2287_v39 = vpop.permute.xlu0 %2286 }
0x23da   :  { %v2289_v40 = vmul.f32 %v2287_v39, %v2269_v28 }
0x23dc   :  { %v2291_v41 = vrot.slane %v2289_v40, 6  ;;  %v6774_v42 = vsel %vm1388_vm10, %v3467_v16, %v2289_v40 }
0x23de   :  { %2292 = vrot.lane.b32.xlu1 %v2291_v41, %s6270_s28 }
0x2450   :  { %v2293_v46 = vpop.permute.xlu1 %2292 }
0x2451   :  { %5451 = vmatmul.mubr.msk.f32.vlgmr.msra.gmra.mrb[32].mxu0 %vm347_vm2, %v2293_v46 }
0x2452   :  { %5835 = vmatpush3.bf16.msra.mxu0 %v6645_v1  ;;  %5472 = vmatprep.mubr.msk.f32.mxu0 %vm6276_vm8, %v6267_v60 }
0x2453   :  { %5836 = vmatprep.subr.bf16.mxu0 %v6274_v61 }
0x2456   :  { %5838 = vmatpush3.bf16.msra.mxu0 %v6648_v56 }
0x2457   :  { %5845 = vmatprep.subr.bf16.mxu0 %v6274_v61 }
0x2524   :  { %v2362_v47 = vpop.f32.mrb[32].mxu0 }
0x2525   :  { %v2366_v48 = vadd.f32 %v2362_v47, %v6711_v35  ;;  %v5452_v49 = vpop.f32.mrb[33].mxu0 }
0x2527   :  { %v5029_v50 = vmul.f32 -1.442695, %v2366_v48 }
0x2529   :  { %6122 = vpow2.f32 %v5029_v50 }
0x252a   :  { %6124 = vtanh.f32 %v2366_v48 }
0x2533   :  { %v6123_v52 = vpop.eup %6122 }
0x2534   :  { %v2371_v8 = vadd.f32 1.0, %v6123_v52  ;;  %v6125_v53 = vpop.eup %6124 }
0x2536   :  { %6126 = vrcp.f32 %v2371_v8 }
0x2540   :  { %v6127_v59 = vpop.eup %6126 }
0x2541   :  { %v2374_v62 = vsel %vm6440_vm7, %v6125_v53, %v6127_v59 }
0x2542   :  { %2380 = vrot.lane.b32.xlu0 %v2374_v62, %s6272_s6  ;;  %v2378_v63 = vmul.f32 %v2376_v51, %v2374_v62 }
0x25b4   :  { %v2381_v0 = vpop.permute.xlu0 %2380 }
0x25b5   :  { %v2383_v43 = vmul.f32 %v2381_v0, %v2374_v62 }
0x25b7   :  { %2385 = vrot.lane.b32.xlu1 %v2383_v43, %s6270_s28 }
0x2629   :  { %v2386_v2 = vpop.permute.xlu1 %2385 }
0x262a   :  { %v2388_v4 = vadd.f32 %v2386_v2, %v2378_v63 }
0x262c   :  { %6128 = vtanh.f32 %v2388_v4  ;;  %v2483_v24 = vrot.slane %v2388_v4, 6 }
0x2636   :  { %v6129_v6 = vpop.eup %6128 }
0x2637   :  { %2391 = vrot.lane.b32.xlu0 %v6129_v6, %s6272_s6 }
0x26a9   :  { %v2392_v57 = vpop.permute.xlu0 %2391 }
0x26aa   :  { %v6790_v36 = vmul.f32 %v2392_v57, %v2374_v62 }
0x26ac   :  { %2396 = vrot.lane.b32.xlu1 %v6790_v36, %s6270_s28 }
0x271e   :  { %v2397_v9 = vpop.permute.xlu1 %2396 }
0x271f   :  { %5462 = vmatmul.mubr.msk.f32.vlgmr.msra.gmra.mrb[20].mxu1 %vm347_vm2, %v2397_v9 }
0x2720   :  { %5841 = vmatpush3.bf16.msra.mxu1 %v6645_v1  ;;  %5483 = vmatprep.mubr.msk.f32.mxu1 %vm6276_vm8, %v6267_v60 }
0x2721   :  { %5842 = vmatprep.subr.bf16.mxu1 %v6274_v61 }
0x2724   :  { %5844 = vmatpush3.bf16.msra.mxu1 %v6648_v56 }
0x2725   :  { %5851 = vmatprep.subr.bf16.mxu1 %v6274_v61 }
0x27f2   :  { %v2466_v34 = vpop.f32.mrb[20].mxu1 }
0x27f3   :  { %v2471_v10 = vrot.slane %v2466_v34, 6  ;;  %v5463_v11 = vpop.f32.mrb[21].mxu1 }
0x27f5   :  { %v2473_v12 = vadd.f32 %v2471_v10, %v6711_v35 }
0x27f7   :  { %v5031_v13 = vmul.f32 -1.442695, %v2473_v12 }
0x27f9   :  { %6130 = vpow2.f32 %v5031_v13 }
0x27fa   :  { %6132 = vtanh.f32 %v2473_v12 }
0x2803   :  { %v6131_v15 = vpop.eup %6130 }
0x2804   :  { %v2478_v16 = vadd.f32 1.0, %v6131_v15  ;;  %v6133_v18 = vpop.eup %6132 }
0x2806   :  { %6134 = vrcp.f32 %v2478_v16 }
0x2810   :  { %v6135_v17 = vpop.eup %6134 }
0x2811   :  { %v2481_v19 = vsel %vm6440_vm7, %v6133_v18, %v6135_v17 }
0x2812   :  { %2487 = vrot.lane.b32.xlu0 %v2481_v19, %s6272_s6  ;;  %v2485_v23 = vmul.f32 %v2483_v24, %v2481_v19 }
0x2884   :  { %v2488_v21 = vpop.permute.xlu0 %2487 }
0x2885   :  { %v2490_v22 = vmul.f32 %v2488_v21, %v2481_v19 }
0x2887   :  { %2492 = vrot.lane.b32.xlu1 %v2490_v22, %s6270_s28 }
0x28f9   :  { %v2493_v25 = vpop.permute.xlu1 %2492 }
0x28fa   :  { %v2495_v14 = vadd.f32 %v2493_v25, %v2485_v23 }
0x28fc   :  { %6136 = vtanh.f32 %v2495_v14  ;;  %v2591_v52 = vrot.slane %v2495_v14, 6 }
0x2906   :  { %v6137_v26 = vpop.eup %6136 }
0x2907   :  { %2498 = vrot.lane.b32.xlu0 %v6137_v26, %s6272_s6 }
0x2979   :  { %v2499_v28 = vpop.permute.xlu0 %2498 }
0x297a   :  { %v2501_v29 = vmul.f32 %v2499_v28, %v2481_v19 }
0x297c   :  { %v2503_v31 = vrot.slane %v2501_v29, 2  ;;  %v3469_v51 = vsel %vm546_vm4, %v6790_v36, %v2501_v29 }
0x297e   :  { %2504 = vrot.lane.b32.xlu1 %v2503_v31, %s6270_s28 }
0x29f0   :  { %v2505_v32 = vpop.permute.xlu1 %2504 }
0x29f1   :  { %5473 = vmatmul.mubr.msk.f32.vlgmr.msra.gmra.mrb[34].mxu0 %vm347_vm2, %v2505_v32 }
0x29f2   :  { %5847 = vmatpush3.bf16.msra.mxu0 %v6645_v1  ;;  %5494 = vmatprep.mubr.msk.f32.mxu0 %vm6276_vm8, %v6267_v60 }
0x29f3   :  { %5848 = vmatprep.subr.bf16.mxu0 %v6274_v61 }
0x29f6   :  { %5850 = vmatpush3.bf16.msra.mxu0 %v6648_v56 }
0x29f7   :  { %5857 = vmatprep.subr.bf16.mxu0 %v6274_v61 }
0x2ac4   :  { %v2574_v33 = vpop.f32.mrb[34].mxu0 }
0x2ac5   :  { %v2579_v3 = vrot.slane %v2574_v33, 4  ;;  %v5474_v37 = vpop.f32.mrb[35].mxu0 }
0x2ac7   :  { %v2581_v38 = vadd.f32 %v2579_v3, %v6711_v35 }
0x2ac9   :  { %v5033_v39 = vmul.f32 -1.442695, %v2581_v38 }
0x2acb   :  { %6138 = vpow2.f32 %v5033_v39 }
0x2acc   :  { %6140 = vtanh.f32 %v2581_v38 }
0x2ad5   :  { %v6139_v40 = vpop.eup %6138 }
0x2ad6   :  { %v2586_v41 = vadd.f32 1.0, %v6139_v40  ;;  %v6141_v46 = vpop.eup %6140 }
0x2ad8   :  { %6142 = vrcp.f32 %v2586_v41 }
0x2ae2   :  { %v6143_v47 = vpop.eup %6142 }
0x2ae3   :  { %v2589_v48 = vsel %vm6440_vm7, %v6141_v46, %v6143_v47 }
0x2ae4   :  { %2595 = vrot.lane.b32.xlu0 %v2589_v48, %s6272_s6  ;;  %v2593_v8 = vmul.f32 %v2591_v52, %v2589_v48 }
0x2b56   :  { %v2596_v49 = vpop.permute.xlu0 %2595 }
0x2b57   :  { %v2598_v50 = vmul.f32 %v2596_v49, %v2589_v48 }
0x2b59   :  { %2600 = vrot.lane.b32.xlu1 %v2598_v50, %s6270_s28 }
0x2bcb   :  { %v2601_v53 = vpop.permute.xlu1 %2600 }
0x2bcc   :  { %v2603_v59 = vadd.f32 %v2601_v53, %v2593_v8 }
0x2bce   :  { %6144 = vtanh.f32 %v2603_v59  ;;  %v2699_v17 = vrot.slane %v2603_v59, 6 }
0x2bd8   :  { %v6145_v62 = vpop.eup %6144 }
0x2bd9   :  { %2606 = vrot.lane.b32.xlu0 %v6145_v62, %s6272_s6 }
0x2c4b   :  { %v2607_v0 = vpop.permute.xlu0 %2606 }
0x2c4c   :  { %v2609_v43 = vmul.f32 %v2607_v0, %v2589_v48 }
0x2c4e   :  { %v2611_v63 = vrot.slane %v2609_v43, 4  ;;  %v3470_v2 = vsel %vm1386_vm9, %v3469_v51, %v2609_v43 }
0x2c50   :  { %2612 = vrot.lane.b32.xlu1 %v2611_v63, %s6270_s28 }
0x2cc2   :  { %v2613_v4 = vpop.permute.xlu1 %2612 }
0x2cc3   :  { %5484 = vmatmul.mubr.msk.f32.vlgmr.msra.gmra.mrb[22].mxu1 %vm347_vm2, %v2613_v4 }
0x2cc4   :  { %5853 = vmatpush3.bf16.msra.mxu1 %v6645_v1  ;;  %5505 = vmatprep.mubr.msk.f32.mxu1 %vm6276_vm8, %v6267_v60 }
0x2cc5   :  { %5854 = vmatprep.subr.bf16.mxu1 %v6274_v61 }
0x2cc8   :  { %5856 = vmatpush3.bf16.msra.mxu1 %v6648_v56 }
0x2cc9   :  { %5863 = vmatprep.subr.bf16.mxu1 %v6274_v61 }
0x2d96   :  { %v2682_v6 = vpop.f32.mrb[22].mxu1 }
0x2d97   :  { %v2687_v57 = vrot.slane %v2682_v6, 2  ;;  %v5485_v36 = vpop.f32.mrb[23].mxu1 }
0x2d99   :  { %v2689_v9 = vadd.f32 %v2687_v57, %v6711_v35 }
0x2d9b   :  { %v5035_v34 = vmul.f32 -1.442695, %v2689_v9 }
0x2d9d   :  { %6146 = vpow2.f32 %v5035_v34 }
0x2d9e   :  { %6148 = vtanh.f32 %v2689_v9 }
0x2da7   :  { %v6147_v10 = vpop.eup %6146 }
0x2da8   :  { %v2694_v11 = vadd.f32 1.0, %v6147_v10  ;;  %v6149_v12 = vpop.eup %6148 }
0x2daa   :  { %6150 = vrcp.f32 %v2694_v11 }
0x2db4   :  { %v6151_v13 = vpop.eup %6150 }
0x2db5   :  { %v2697_v15 = vsel %vm6440_vm7, %v6149_v12, %v6151_v13 }
0x2db6   :  { %2703 = vrot.lane.b32.xlu0 %v2697_v15, %s6272_s6  ;;  %v2701_v19 = vmul.f32 %v2699_v17, %v2697_v15 }
0x2e28   :  { %v2704_v16 = vpop.permute.xlu0 %2703 }
0x2e29   :  { %v2706_v18 = vmul.f32 %v2704_v16, %v2697_v15 }
0x2e2b   :  { %2708 = vrot.lane.b32.xlu1 %v2706_v18, %s6270_s28 }
0x2e9d   :  { %v2709_v35 = vpop.permute.xlu1 %2708 }
0x2e9e   :  { %v2711_v21 = vadd.f32 %v2709_v35, %v2701_v19 }
0x2ea0   :  { %6152 = vtanh.f32 %v2711_v21  ;;  %v2804_v46 = vrot.slane %v2711_v21, 6 }
0x2eaa   :  { %v6153_v22 = vpop.eup %6152 }
0x2eab   :  { %2714 = vrot.lane.b32.xlu0 %v6153_v22, %s6272_s6 }
0x2f1d   :  { %v2715_v24 = vpop.permute.xlu0 %2714 }
0x2f1e   :  { %v2717_v23 = vmul.f32 %v2715_v24, %v2697_v15 }
0x2f20   :  { %v2719_v25 = vrot.slane %v2717_v23, 6  ;;  %v6839_v14 = vsel %vm1388_vm10, %v3470_v2, %v2717_v23 }
0x2f22   :  { %2720 = vrot.lane.b32.xlu1 %v2719_v25, %s6270_s28 }
0x2f94   :  { %v2721_v26 = vpop.permute.xlu1 %2720 }
0x2f95   :  { %5495 = vmatmul.mubr.msk.f32.vlgmr.msra.gmra.mrb[36].mxu0 %vm347_vm2, %v2721_v26 }
0x2f96   :  { %5859 = vmatpush3.bf16.msra.mxu0 %v6645_v1  ;;  %5516 = vmatprep.mubr.msk.f32.mxu0 %vm6276_vm8, %v6267_v60 }
0x2f97   :  { %5860 = vmatprep.subr.bf16.mxu0 %v6274_v61 }
0x2f9a   :  { %5862 = vmatpush3.bf16.msra.mxu0 %v6648_v56 }
0x2f9b   :  { %5869 = vmatprep.subr.bf16.mxu0 %v6274_v61 }
0x3068   :  { %v2790_v28 = vpop.f32.mrb[36].mxu0 }
0x3069   :  { %v2794_v29 = vadd.f32 %v2790_v28, %v6718_v7  ;;  %v5496_v31 = vpop.f32.mrb[37].mxu0 }
0x306b   :  { %v5037_v32 = vmul.f32 -1.442695, %v2794_v29 }
0x306d   :  { %6154 = vpow2.f32 %v5037_v32 }
0x306e   :  { %6156 = vtanh.f32 %v2794_v29 }
0x3077   :  { %v6155_v33 = vpop.eup %6154 }
0x3078   :  { %v2799_v3 = vadd.f32 1.0, %v6155_v33  ;;  %v6157_v37 = vpop.eup %6156 }
0x307a   :  { %6158 = vrcp.f32 %v2799_v3 }
0x3084   :  { %v6159_v38 = vpop.eup %6158 }
0x3085   :  { %v2802_v39 = vsel %vm6440_vm7, %v6157_v37, %v6159_v38 }
0x3086   :  { %2808 = vrot.lane.b32.xlu0 %v2802_v39, %s6272_s6  ;;  %v2806_v47 = vmul.f32 %v2804_v46, %v2802_v39 }
0x30f8   :  { %v2809_v40 = vpop.permute.xlu0 %2808 }
0x30f9   :  { %v2811_v41 = vmul.f32 %v2809_v40, %v2802_v39 }
0x30fb   :  { %2813 = vrot.lane.b32.xlu1 %v2811_v41, %s6270_s28 }
0x316d   :  { %v2814_v48 = vpop.permute.xlu1 %2813 }
0x316e   :  { %v2816_v49 = vadd.f32 %v2814_v48, %v2806_v47 }
0x3170   :  { %6160 = vtanh.f32 %v2816_v49  ;;  %v2911_v34 = vrot.slane %v2816_v49, 6 }
0x317a   :  { %v6161_v50 = vpop.eup %6160 }
0x317b   :  { %2819 = vrot.lane.b32.xlu0 %v6161_v50, %s6272_s6 }
0x31ed   :  { %v2820_v52 = vpop.permute.xlu0 %2819 }
0x31ee   :  { %v6855_v8 = vmul.f32 %v2820_v52, %v2802_v39 }
0x31f0   :  { %2824 = vrot.lane.b32.xlu1 %v6855_v8, %s6270_s28 }
0x3262   :  { %v2825_v53 = vpop.permute.xlu1 %2824 }
0x3263   :  { %5506 = vmatmul.mubr.msk.f32.vlgmr.msra.gmra.mrb[24].mxu1 %vm347_vm2, %v2825_v53 }
0x3264   :  { %5865 = vmatpush3.bf16.msra.mxu1 %v6645_v1  ;;  %5527 = vmatprep.mubr.msk.f32.mxu1 %vm6276_vm8, %v6267_v60 }
0x3265   :  { %5866 = vmatprep.subr.bf16.mxu1 %v6274_v61 }
0x3268   :  { %5868 = vmatpush3.bf16.msra.mxu1 %v6648_v56 }
0x3269   :  { %5875 = vmatprep.subr.bf16.mxu1 %v6274_v61 }
0x3336   :  { %v2894_v59 = vpop.f32.mrb[24].mxu1 }
0x3337   :  { %v2899_v62 = vrot.slane %v2894_v59, 6  ;;  %v5507_v0 = vpop.f32.mrb[25].mxu1 }
0x3339   :  { %v2901_v43 = vadd.f32 %v2899_v62, %v6718_v7 }
0x333b   :  { %v5039_v51 = vmul.f32 -1.442695, %v2901_v43 }
0x333d   :  { %6162 = vpow2.f32 %v5039_v51 }
0x333e   :  { %6164 = vtanh.f32 %v2901_v43 }
0x3347   :  { %v6163_v63 = vpop.eup %6162 }
0x3348   :  { %v2906_v2 = vadd.f32 1.0, %v6163_v63  ;;  %v6165_v4 = vpop.eup %6164 }
0x334a   :  { %6166 = vrcp.f32 %v2906_v2 }
0x3354   :  { %v6167_v6 = vpop.eup %6166 }
0x3355   :  { %v2909_v57 = vsel %vm6440_vm7, %v6165_v4, %v6167_v6 }
0x3356   :  { %2915 = vrot.lane.b32.xlu0 %v2909_v57, %s6272_s6  ;;  %v2913_v10 = vmul.f32 %v2911_v34, %v2909_v57 }
0x33c8   :  { %v2916_v36 = vpop.permute.xlu0 %2915 }
0x33c9   :  { %v2918_v9 = vmul.f32 %v2916_v36, %v2909_v57 }
0x33cb   :  { %2920 = vrot.lane.b32.xlu1 %v2918_v9, %s6270_s28 }
0x343d   :  { %v2921_v11 = vpop.permute.xlu1 %2920 }
0x343e   :  { %v2923_v12 = vadd.f32 %v2921_v11, %v2913_v10 }
0x3440   :  { %6168 = vtanh.f32 %v2923_v12  ;;  %v3019_v33 = vrot.slane %v2923_v12, 6 }
0x344a   :  { %v6169_v13 = vpop.eup %6168 }
0x344b   :  { %2926 = vrot.lane.b32.xlu0 %v6169_v13, %s6272_s6 }
0x34bd   :  { %v2927_v15 = vpop.permute.xlu0 %2926 }
0x34be   :  { %v2929_v16 = vmul.f32 %v2927_v15, %v2909_v57 }
0x34c0   :  { %v2931_v18 = vrot.slane %v2929_v16, 2  ;;  %v3472_v46 = vsel %vm546_vm4, %v6855_v8, %v2929_v16 }
0x34c2   :  { %2932 = vrot.lane.b32.xlu1 %v2931_v18, %s6270_s28 }
0x3534   :  { %v2933_v17 = vpop.permute.xlu1 %2932 }
0x3535   :  { %5517 = vmatmul.mubr.msk.f32.vlgmr.msra.gmra.mrb[38].mxu0 %vm347_vm2, %v2933_v17 }
0x3536   :  { %5871 = vmatpush3.bf16.msra.mxu0 %v6645_v1  ;;  %5538 = vmatprep.mubr.msk.f32.mxu0 %vm6276_vm8, %v6267_v60 }
0x3537   :  { %5872 = vmatprep.subr.bf16.mxu0 %v6274_v61 }
0x353a   :  { %5874 = vmatpush3.bf16.msra.mxu0 %v6648_v56 }
0x353b   :  { %5881 = vmatprep.subr.bf16.mxu0 %v6274_v61 }
0x3608   :  { %v3002_v19 = vpop.f32.mrb[38].mxu0 }
0x3609   :  { %v3007_v35 = vrot.slane %v3002_v19, 4  ;;  %v5518_v21 = vpop.f32.mrb[39].mxu0 }
0x360b   :  { %v3009_v22 = vadd.f32 %v3007_v35, %v6718_v7 }
0x360d   :  { %v5041_v24 = vmul.f32 -1.442695, %v3009_v22 }
0x360f   :  { %6170 = vpow2.f32 %v5041_v24 }
0x3610   :  { %6172 = vtanh.f32 %v3009_v22 }
0x3619   :  { %v6171_v23 = vpop.eup %6170 }
0x361a   :  { %v3014_v25 = vadd.f32 1.0, %v6171_v23  ;;  %v6173_v26 = vpop.eup %6172 }
0x361c   :  { %6174 = vrcp.f32 %v3014_v25 }
0x3626   :  { %v6175_v28 = vpop.eup %6174 }
0x3627   :  { %v3017_v29 = vsel %vm6440_vm7, %v6173_v26, %v6175_v28  ;;  %v3477_v28 = vld [vmem:[%s4960_s21] sm:$0xff] }
0x3628   :  { %3023 = vrot.lane.b32.xlu0 %v3017_v29, %s6272_s6  ;;  %v3021_v3 = vmul.f32 %v3019_v33, %v3017_v29 }
0x369a   :  { %v3024_v31 = vpop.permute.xlu0 %3023 }
0x369b   :  { %v3026_v32 = vmul.f32 %v3024_v31, %v3017_v29 }
0x369d   :  { %3028 = vrot.lane.b32.xlu1 %v3026_v32, %s6270_s28 }
0x370f   :  { %v3029_v37 = vpop.permute.xlu1 %3028 }
0x3710   :  { %v3031_v38 = vadd.f32 %v3029_v37, %v3021_v3  ;;  %v3479_v37 = vld [vmem:[%s4960_s21 + $0x10] sm:$0xff] }
0x3712   :  { %6176 = vtanh.f32 %v3031_v38  ;;  %v3127_v6 = vrot.slane %v3031_v38, 6  ;;  %v3480_v38 = vld [vmem:[%s4960_s21 + $0x18] sm:$0xff] }
0x371c   :  { %v6177_v39 = vpop.eup %6176 }
0x371d   :  { %3034 = vrot.lane.b32.xlu0 %v6177_v39, %s6272_s6  ;;  %v5891_v39 = vpack.c.bf16 %v3480_v38, %v3479_v37 }
0x378f   :  { %v3035_v40 = vpop.permute.xlu0 %3034 }
0x3790   :  { %v3037_v41 = vmul.f32 %v3035_v40, %v3017_v29  ;;  %v3478_v29 = vld [vmem:[%s4960_s21 + $0x8] sm:$0xff] }
0x3791   :  { %v5887_v31 = vpack.c.bf16 %v3478_v29, %v3477_v28  ;;  %v3618_v29 = vld [vmem:[%s4962_s26 + $0x8] sm:$0xff] }
0x3792   :  { %v3039_v47 = vrot.slane %v3037_v41, 4  ;;  %v3473_v48 = vsel %vm1386_vm9, %v3472_v46, %v3037_v41 }
0x3794   :  { %3040 = vrot.lane.b32.xlu1 %v3039_v47, %s6270_s28 }
0x3806   :  { %v3041_v49 = vpop.permute.xlu1 %3040 }
0x3807   :  { %5528 = vmatmul.mubr.msk.f32.vlgmr.msra.gmra.mrb[26].mxu1 %vm347_vm2, %v3041_v49 }
0x3808   :  { %5877 = vmatpush3.bf16.msra.mxu1 %v6645_v1  ;;  %5549 = vmatprep.mubr.msk.f32.mxu1 %vm6276_vm8, %v6267_v60 }
0x3809   :  { %5878 = vmatprep.subr.bf16.mxu1 %v6274_v61 }
0x380c   :  { %5880 = vmatpush3.bf16.msra.mxu1 %v6648_v56 }
0x380d   :  { %5888 = vmatprep.subr.bf16.mxu1 %v5887_v31 }
0x38da   :  { %v3110_v50 = vpop.f32.mrb[26].mxu1 }
0x38db   :  { %v3115_v52 = vrot.slane %v3110_v50, 2  ;;  %v5529_v8 = vpop.f32.mrb[27].mxu1 }
0x38dd   :  { %v3117_v53 = vadd.f32 %v3115_v52, %v6718_v7 }
0x38df   :  { %v5043_v59 = vmul.f32 -1.442695, %v3117_v53 }
0x38e1   :  { %6178 = vpow2.f32 %v5043_v59 }
0x38e2   :  { %6180 = vtanh.f32 %v3117_v53 }
0x38eb   :  { %v6179_v62 = vpop.eup %6178 }
0x38ec   :  { %v3122_v0 = vadd.f32 1.0, %v6179_v62  ;;  %v6181_v43 = vpop.eup %6180 }
0x38ee   :  { %6182 = vrcp.f32 %v3122_v0 }
0x38f8   :  { %v6183_v51 = vpop.eup %6182 }
0x38f9   :  { %v3125_v63 = vsel %vm6440_vm7, %v6181_v43, %v6183_v51 }
0x38fa   :  { %3131 = vrot.lane.b32.xlu0 %v3125_v63, %s6272_s6  ;;  %v3129_v57 = vmul.f32 %v3127_v6, %v3125_v63 }
0x396c   :  { %v3132_v2 = vpop.permute.xlu0 %3131 }
0x396d   :  { %v3134_v4 = vmul.f32 %v3132_v2, %v3125_v63 }
0x396f   :  { %3136 = vrot.lane.b32.xlu1 %v3134_v4, %s6270_s28 }
0x39e1   :  { %v3137_v7 = vpop.permute.xlu1 %3136 }
0x39e2   :  { %v3139_v36 = vadd.f32 %v3137_v7, %v3129_v57 }
0x39e4   :  { %6184 = vtanh.f32 %v3139_v36 }
0x39ee   :  { %v6185_v9 = vpop.eup %6184 }
0x39ef   :  { %3142 = vrot.lane.b32.xlu0 %v6185_v9, %s6272_s6 }
0x3a61   :  { %v3143_v34 = vpop.permute.xlu0 %3142 }
0x3a62   :  { %v3145_v10 = vmul.f32 %v3143_v34, %v3125_v63 }
0x3a64   :  { %v3147_v11 = vrot.slane %v3145_v10, 6  ;;  %v6903_v12 = vsel %vm1388_vm10, %v3473_v48, %v3145_v10 }
0x3a66   :  { %3148 = vrot.lane.b32.xlu1 %v3147_v11, %s6270_s28 }
0x3ad8   :  { %v3149_v13 = vpop.permute.xlu1 %3148 }
0x3ad9   :  { %5539 = vmatmul.mubr.msk.f32.vlgmr.msra.gmra.mrb[40].mxu0 %vm347_vm2, %v3149_v13 }
0x3ada   :  { %5883 = vmatpush3.bf16.msra.mxu0 %v6645_v1  ;;  %5560 = vmatprep.mubr.msk.f32.mxu0 %vm6276_vm8, %v6267_v60 }
0x3adb   :  { %5884 = vmatprep.subr.bf16.mxu0 %v6274_v61 }
0x3ade   :  { %5886 = vmatpush3.bf16.msra.mxu0 %v6648_v56  ;;  %v3232_v56 = vrot.slane %v3139_v36, 6 }
0x3bac   :  { %v3218_v15 = vpop.f32.mrb[40].mxu0 }
0x3bad   :  { %v3222_v16 = vadd.f32 %v3218_v15, %v6716_v5  ;;  %v5540_v18 = vpop.f32.mrb[41].mxu0 }
0x3baf   :  { %v5045_v17 = vmul.f32 -1.442695, %v3222_v16 }
0x3bb1   :  { %6186 = vpow2.f32 %v5045_v17 }
0x3bb2   :  { %6188 = vtanh.f32 %v3222_v16 }
0x3bbb   :  { %v6187_v19 = vpop.eup %6186 }
0x3bbc   :  { %v3227_v35 = vadd.f32 1.0, %v6187_v19  ;;  %v6189_v21 = vpop.eup %6188 }
0x3bbe   :  { %6190 = vrcp.f32 %v3227_v35 }
0x3bc8   :  { %v6191_v22 = vpop.eup %6190 }
0x3bc9   :  { %v3230_v1 = vsel %vm6440_vm7, %v6189_v21, %v6191_v22 }
0x3bca   :  { %3236 = vrot.lane.b32.xlu0 %v3230_v1, %s6272_s6  ;;  %v3234_v23 = vmul.f32 %v3232_v56, %v3230_v1 }
0x3c3c   :  { %v3237_v61 = vpop.permute.xlu0 %3236 }
0x3c3d   :  { %v3239_v24 = vmul.f32 %v3237_v61, %v3230_v1 }
0x3c3f   :  { %3241 = vrot.lane.b32.xlu1 %v3239_v24, %s6270_s28 }
0x3cb1   :  { %v3242_v25 = vpop.permute.xlu1 %3241 }
0x3cb2   :  { %v3244_v26 = vadd.f32 %v3242_v25, %v3234_v23 }
0x3cb4   :  { %6192 = vtanh.f32 %v3244_v26  ;;  %v3339_v51 = vrot.slane %v3244_v26, 6 }
0x3cbe   :  { %v6193_v32 = vpop.eup %6192 }
0x3cbf   :  { %3247 = vrot.lane.b32.xlu0 %v6193_v32, %s6272_s6  ;;  %v3619_v32 = vld [vmem:[%s4962_s26 + $0x10] sm:$0xff] }
0x3d31   :  { %v3248_v33 = vpop.permute.xlu0 %3247 }
0x3d32   :  { %v6921_v3 = vmul.f32 %v3248_v33, %v3230_v1  ;;  %v3620_v33 = vld [vmem:[%s4962_s26 + $0x18] sm:$0xff] }
0x3d34   :  { %3252 = vrot.lane.b32.xlu1 %v6921_v3, %s6270_s28 }
0x3da6   :  { %v3253_v40 = vpop.permute.xlu1 %3252 }
0x3da7   :  { %5550 = vmatmul.mubr.msk.f32.vlgmr.msra.gmra.mrb[28].mxu1 %vm347_vm2, %v3253_v40 }
0x3da8   :  { %5890 = vmatpush3.bf16.msra.mxu1 %v5887_v31 }
0x3da9   :  { %5892 = vmatprep.subr.bf16.mxu1 %v5891_v39 }
0x3dac   :  { %5894 = vmatpush3.bf16.msra.mxu1 %v5891_v39 }
0x3dad   :  { %5905 = vmatprep.subr.msk.bf16.mxu1 %vm6928_vm3, %v6704_v30 }
0x3e7a   :  { %v3322_v46 = vpop.f32.mrb[28].mxu1 }
0x3e7b   :  { %v3327_v47 = vrot.slane %v3322_v46, 6  ;;  %v5551_v48 = vpop.f32.mrb[29].mxu1 }
0x3e7d   :  { %v3329_v49 = vadd.f32 %v3327_v47, %v6716_v5 }
0x3e7f   :  { %v5047_v50 = vmul.f32 -1.442695, %v3329_v49 }
0x3e81   :  { %6194 = vpow2.f32 %v5047_v50 }
0x3e82   :  { %6196 = vtanh.f32 %v3329_v49 }
0x3e8b   :  { %v6195_v52 = vpop.eup %6194 }
0x3e8c   :  { %v3334_v8 = vadd.f32 1.0, %v6195_v52  ;;  %v6197_v53 = vpop.eup %6196 }
0x3e8e   :  { %6198 = vrcp.f32 %v3334_v8 }
0x3e98   :  { %v6199_v59 = vpop.eup %6198 }
0x3e99   :  { %v3337_v62 = vsel %vm6440_vm7, %v6197_v53, %v6199_v59 }
0x3e9a   :  { %3343 = vrot.lane.b32.xlu0 %v3337_v62, %s6272_s6  ;;  %v3341_v63 = vmul.f32 %v3339_v51, %v3337_v62 }
0x3f0c   :  { %v3344_v0 = vpop.permute.xlu0 %3343 }
0x3f0d   :  { %v3346_v43 = vmul.f32 %v3344_v0, %v3337_v62  ;;  %v6287_v0 = vmov 32  }
0x3f0e   :  { %6006 = vset.pattern.permute.xlu0 %v6287_v0  ;;  %6005 = vset.pattern.permute.xlu1 %v6287_v0 }
0x3f0f   :  { %3348 = vrot.lane.b32.xlu1 %v3346_v43, %s6270_s28 }
0x3f81   :  { %v3349_v2 = vpop.permute.xlu1 %3348 }
0x3f82   :  { %v3351_v4 = vadd.f32 %v3349_v2, %v3341_v63 }
0x3f84   :  { %6200 = vtanh.f32 %v3351_v4 }
0x3f8e   :  { %v6201_v6 = vpop.eup %6200 }
0x3f8f   :  { %3354 = vrot.lane.b32.xlu0 %v6201_v6, %s6272_s6 }
0x4001   :  { %v3355_v57 = vpop.permute.xlu0 %3354 }
0x4002   :  { %v3357_v7 = vmul.f32 %v3355_v57, %v3337_v62 }
0x4004   :  { %v3359_v36 = vrot.slane %v3357_v7, 2 }
0x4006   :  { %3360 = vrot.lane.b32.xlu1 %v3359_v36, %s6270_s28 }
0x4078   :  { %v3361_v9 = vpop.permute.xlu1 %3360 }
0x4079   :  { %5561 = vmatmul.mubr.msk.f32.vlgmr.msra.gmra.mrb[42].mxu0 %vm347_vm2, %v3361_v9 }
0x414c   :  { %v3430_v34 = vpop.f32.mrb[42].mxu0 }
0x414d   :  { %v3435_v10 = vrot.slane %v3430_v34, 4  ;;  %v5562_v11 = vpop.f32.mrb[43].mxu0 }
0x414f   :  { %v3437_v13 = vadd.f32 %v3435_v10, %v6716_v5  ;;  %v3447_v5 = vrot.slane %v3351_v4, 6 }
0x4151   :  { %v5049_v15 = vmul.f32 -1.442695, %v3437_v13 }
0x4153   :  { %6202 = vpow2.f32 %v5049_v15  ;;  %v5059_v15 = vld [vmem:[%s4963_s8] ss:$0 sm:$0xff] }
0x4154   :  { %6204 = vtanh.f32 %v3437_v13 }
0x415d   :  { %v6203_v16 = vpop.eup %6202 }
0x415e   :  { %v3442_v18 = vadd.f32 1.0, %v6203_v16  ;;  %v6205_v17 = vpop.eup %6204 }
0x4160   :  { %6206 = vrcp.f32 %v3442_v18 }
0x416a   :  { %v6207_v19 = vpop.eup %6206 }
0x416b   :  { %v3445_v35 = vsel %vm6440_vm7, %v6205_v17, %v6207_v19 }
0x416c   :  { %3451 = vrot.lane.b32.xlu0 %v3445_v35, %s6272_s6  ;;  %v3449_v1 = vmul.f32 %v3447_v5, %v3445_v35 }
0x41de   :  { %v3452_v21 = vpop.permute.xlu0 %3451 }
0x41df   :  { %v3454_v22 = vmul.f32 %v3452_v21, %v3445_v35  ;;  %v3845_v21 = vld [vmem:[%s4945_s12 + $0x8] sm:$0xff] }
0x41e1   :  { %3456 = vrot.lane.b32.xlu1 %v3454_v22, %s6270_s28 }
0x41e5   :  { %3492 = vrot.lane.b32.xlu1 %v6774_v42, %s6270_s28  ;;  %v3475_v42 = vsel %vm546_vm4, %v6921_v3, %v3357_v7  ;;  %v5899_v3 = vpack.c.bf16 %v3620_v33, %v3619_v32 }
0x41e9   :  { %3496 = vrot.lane.b32.xlu1 %v6903_v12, %s6270_s28 }
0x4253   :  { %v3457_v61 = vpop.permute.xlu1 %3456 }
0x4254   :  { %v3459_v24 = vadd.f32 %v3457_v61, %v3449_v1 }
0x4256   :  { %6208 = vtanh.f32 %v3459_v24  ;;  %v3847_v24 = vld [vmem:[%s4945_s12 + $0x18] sm:$0x3f] }
0x4257   :  { %v3493_v56 = vpop.permute.xlu1 %3492 }
0x4258   :  { %5571 = vmatprep.mubr.msk.f32.mxu1 %vm347_vm2, %v3493_v56  ;;  %v3846_v56 = vld [vmem:[%s4945_s12 + $0x10] sm:$0xff] }
0x425b   :  { %v3497_v28 = vpop.permute.xlu1 %3496 }
0x4260   :  { %v6209_v45 = vpop.eup %6208 }
0x4261   :  { %3462 = vrot.lane.b32.xlu0 %v6209_v45, %s6272_s6 }
0x4265   :  { %3494 = vrot.lane.b32.xlu0 %v6839_v14, %s6270_s28  ;;  %v3617_v14 = vld [vmem:[%s4962_s26] sm:$0xff] }
0x4266   :  { %v5895_v31 = vpack.c.bf16 %v3618_v29, %v3617_v14 }
0x4268   :  { %5896 = vmatprep.subr.bf16.mxu0 %v5895_v31 }
0x4269   :  { %5898 = vmatpush3.bf16.msra.mxu0 %v5895_v31 }
0x426a   :  { %5900 = vmatprep.subr.bf16.mxu0 %v5899_v3 }
0x426d   :  { %5902 = vmatpush3.bf16.msra.mxu0 %v5899_v3 }
0x42d3   :  { %v3463_v23 = vpop.permute.xlu0 %3462 }
0x42d4   :  { %v3465_v25 = vmul.f32 %v3463_v23, %v3445_v35  ;;  %v3844_v35 = vld [vmem:[%s4945_s12] sm:$0xff] }
0x42d5   :  { %v7004_v23 = vld [vmem:[%s4946_s17] ss:$0 sm:$0xff] }
0x42d6   :  { %v3476_v12 = vsel %vm1386_vm9, %v3475_v42, %v3465_v25  ;;  %vm3944_vm9 = vcmp.le.s32.totalorder %v6436_v44, %v6421_v20 }
0x42d7   :  { %3498 = vrot.lane.b32.xlu0 %v3476_v12, %s6270_s28  ;;  %v3495_v26 = vpop.permute.xlu0 %3494 }
0x42d8   :  { %5572 = vmatmul.mubr.msk.f32.vlgmr.msra.gmra.mrb[30].mxu1 %vm347_vm2, %v3495_v26 }
0x42d9   :  { %5908 = vmatpush3.bf16.xpose.msk.msra.mxu1 %vm6928_vm3, %v6704_v30  ;;  %5574 = vmatprep.mubr.msk.f32.mxu1 %vm347_vm2, %v3497_v28  ;;  %v5050_v30 = vld [vmem:[%s4961_s2] ss:$0 sm:$0xff] }
0x4349   :  { %v3499_v37 = vpop.permute.xlu0 %3498 }
0x434a   :  { %5575 = vmatmul.mubr.msk.f32.gmra.mrb[32].mxu1 %vm347_vm2, %v3499_v37 }
0x43ab   :  { %v5573_v38 = vpop.f32.mrb[30].mxu1 }
0x43ac   :  { %v3580_v39 = vadd.f32 %v5573_v38, %v5050_v30  ;;  %v3574_v40 = vpop.f32.mrb[31].mxu1 }
0x43ad   :  { %v3575_v41 = vadd.f32 %v5050_v30, %v3574_v40 }
0x43ae   :  { %v3598_v46 = vmin.f32 %v3580_v39, 0.0  ;;  %vm3594_vm6 = vcmp.gt.f32.partialorder %v3580_v39, 0.0 }
0x43af   :  { %v3597_v47 = vmin.f32 %v3575_v41, 0.0  ;;  %vm3593_vm4 = vcmp.gt.f32.partialorder %v3575_v41, 0.0 }
0x43b0   :  { %v3603_v48 = vmul.f32 1.442695, %v3598_v46 }
0x43b1   :  { %v3601_v49 = vmul.f32 1.442695, %v3597_v47 }
0x43b2   :  { %6210 = vpow2.f32 %v3603_v48 }
0x43b3   :  { %6212 = vpow2.f32 %v3601_v49 }
0x43bc   :  { %v6211_v50 = vpop.eup %6210 }
0x43bd   :  { %v6213_v52 = vpop.eup %6212  ;;  %v5056_v8 = vadd.f32 -1.0, %v6211_v50 }
0x43be   :  { %v5055_v53 = vadd.f32 -1.0, %v6213_v52 }
0x43bf   :  { %v6974_v62 = vsel %vm3594_vm6, %v3580_v39, %v5056_v8 }
0x43c0   :  { %v6972_v59 = vsel %vm3593_vm4, %v3575_v41, %v5055_v53  ;;  %vm3882_vm4 = vcmask 128000   ;;  %v7030_v53 = vld [vmem:[%s4943_s30 + $0x8] sm:$0xff] }
0x43c1   :  { %5585 = vmatprep.mubr.msk.f32.mxu0 %vm347_vm2, %v6972_v59 }
0x43c2   :  { %5586 = vmatmul.mubr.msk.f32.vlgmr.msra.gmra.mrb[44].mxu0 %vm347_vm2, %v6974_v62 }
0x441d   :  { %v5576_v43 = vpop.f32.mrb[32].mxu1 }
0x441e   :  { %v3590_v51 = vadd.f32 %v5576_v43, %v5050_v30  ;;  %v3584_v63 = vpop.f32.mrb[33].mxu1  ;;  %v7035_v43 = vld [vmem:[%s4943_s30] sm:$0xff] }
0x441f   :  { %v3585_v2 = vadd.f32 %v5050_v30, %v3584_v63 }
0x4420   :  { %v3600_v4 = vmin.f32 %v3590_v51, 0.0  ;;  %vm3596_vm8 = vcmp.gt.f32.partialorder %v3590_v51, 0.0 }
0x4421   :  { %v3599_v6 = vmin.f32 %v3585_v2, 0.0  ;;  %vm3595_vm7 = vcmp.gt.f32.partialorder %v3585_v2, 0.0 }
0x4422   :  { %v3607_v57 = vmul.f32 1.442695, %v3600_v4 }
0x4423   :  { %v3605_v7 = vmul.f32 1.442695, %v3599_v6 }
0x4424   :  { %6214 = vpow2.f32 %v3607_v57 }
0x4425   :  { %6216 = vpow2.f32 %v3605_v7 }
0x442e   :  { %v6215_v36 = vpop.eup %6214 }
0x442f   :  { %v6217_v9 = vpop.eup %6216  ;;  %v5058_v34 = vadd.f32 -1.0, %v6215_v36 }
0x4430   :  { %v5057_v10 = vadd.f32 -1.0, %v6217_v9 }
0x4431   :  { %v6984_v13 = vsel %vm3596_vm8, %v3590_v51, %v5058_v34  ;;  %v7038_v51 = vld [vmem:[%s4943_s30 + $0x18] sm:$0x3f] }
0x4432   :  { %v6980_v11 = vsel %vm3595_vm7, %v3585_v2, %v5057_v10 }
0x4433   :  { %5588 = vmatprep.mubr.msk.f32.mxu0 %vm347_vm2, %v6980_v11 }
0x4434   :  { %5589 = vmatmul.mubr.msk.f32.gmra.mrb[46].mxu0 %vm347_vm2, %v6984_v13 }
0x4495   :  { %v5587_v16 = vpop.f32.mrb[44].mxu0 }
0x4496   :  { %v3712_v18 = vadd.f32 %v5587_v16, %v5059_v15  ;;  %v3706_v17 = vpop.f32.mrb[45].mxu0 }
0x4497   :  { %v3707_v19 = vadd.f32 %v5059_v15, %v3706_v17 }
0x4498   :  { %3732 = vperm.xlu0 %6006, %v3712_v18  }
0x4499   :  { %3727 = vperm.xlu1 %6005, %v3707_v19   ;;  %5595 = vmatprep.mubr.msk.f32.mxu1 %vm347_vm2, %v3707_v19 }
0x449a   :  { %5596 = vmatmul.mubr.msk.f32.vlgmr.msra.gmra.mrb[34].mxu1 %vm347_vm2, %v3712_v18 }
0x449d   :  { %6007 = vset.pattern.permute.xlu1 %v6273_v27 }
0x449e   :  { %3850 = vperm.xlu1 %6007, %v3844_v35  }
0x44a2   :  { %3853 = vperm.xlu1 %6007, %v3845_v21  }
0x44a6   :  { %6008 = vset.pattern.permute.xlu1 %v6287_v0  ;;  %v7033_v0 = vld [vmem:[%s4943_s30 + $0x10] sm:$0xff] }
0x4507   :  { %v5590_v22 = vpop.f32.mrb[46].mxu0 }
0x4508   :  { %v3722_v5 = vadd.f32 %v5590_v22, %v5059_v15  ;;  %v3716_v1 = vpop.f32.mrb[47].mxu0 }
0x4509   :  { %v3717_v61 = vadd.f32 %v5059_v15, %v3716_v1 }
0x450a   :  { %3742 = vperm.xlu1 %6008, %v3722_v5  }
0x450b   :  { %3737 = vperm.xlu0 %6006, %v3717_v61   ;;  %5598 = vmatprep.mubr.msk.f32.mxu1 %vm347_vm2, %v3717_v61 }
0x450c   :  { %5599 = vmatmul.mubr.msk.f32.gmra.mrb[36].mxu1 %vm347_vm2, %v3722_v5 }
0x450e   :  { %6010 = vset.pattern.permute.xlu1 %v6273_v27 }
0x450f   :  { %3859 = vperm.xlu1 %6010, %v3847_v24   ;;  %6009 = vset.pattern.permute.xlu0 %v6273_v27  ;;  %v5070_v27 = vld [vmem:[%s4947_s24] ss:$0 sm:$0xff]  ;;  %s6300_s24 = smov 5  }
0x4510   :  { %3856 = vperm.xlu0 %6009, %v3846_v56   ;;  %s7230_s29 = sld [smem:[%s7324_s0 + %s6300_s24]]  }
0x4517   :  { %v3733_v26 = vpop.permute.xlu0 %3732 }
0x4518   :  { %v3728_v45 = vpop.permute.xlu1 %3727 }
0x451d   :  { %v3851_v25 = vpop.permute.xlu1 %3850 }
0x451e   :  { %vm3940_vm12 = vcmp.eq.s32.totalorder %v3851_v25, %v7004_v23  ;;  %vm3865_vm0 = vcmp.eq.s32.totalorder %v3851_v25, %v5070_v27 }
0x451f   :  { %vm3948_vm14 = vmand %vm3940_vm12, %vm3944_vm9 }
0x4520   :  { %v5072_v42 = vsel %vm3948_vm14, 1.0, %v6267_v60 }
0x4521   :  { %5609 = vmatprep.mubr.msk.f32.mxu0 %vm3960_vm13, %v5072_v42  ;;  %v7014_v12 = vpop.permute.xlu1 %3853 }
0x4522   :  { %vm3866_vm15 = vcmp.eq.s32.totalorder %v7014_v12, %v5070_v27  ;;  %vm3941_vm14 = vcmp.eq.s32.totalorder %v7014_v12, %v7004_v23 }
0x456d   :  { %v5597_v28 = vpop.f32.mrb[34].mxu1 }
0x456e   :  { %v3831_v14 = vadd.f32 %v5597_v28, %v3733_v26  ;;  %v3825_v29 = vpop.f32.mrb[35].mxu1  ;;  %v4485_v26 = vld [vmem:[%s4966_s4 + $0x8] sm:$0xff] }
0x456f   :  { %v3826_v31 = vadd.f32 %v3825_v29, %v3728_v45 }
0x4570   :  { %v3870_v32 = vsel %vm3866_vm15, %v3831_v14, -1e+09  ;;  %vm6295_vm15 = vmmov 1  }
0x4571   :  { %v3869_v33 = vsel %vm3865_vm0, %v3826_v31, -1e+09  ;;  %v3876_v3 = vsel %vm344_vm1, %v3870_v32, -inf  ;;  %vm5914_vm0 = vmpackc.low %vm1388_vm10, %vm6295_vm15 }
0x4572   :  { %3877 = vmax.xlane.f32.xlu0 %v3876_v3  ;;  %v3873_v37 = vsel %vm344_vm1, %v3869_v33, -inf }
0x4573   :  { %3874 = vmax.xlane.f32.xlu1 %v3873_v37 }
0x4589   :  { %v3743_v30 = vpop.permute.xlu1 %3742 }
0x458a   :  { %v3738_v38 = vpop.permute.xlu0 %3737 }
0x458e   :  { %v7019_v39 = vpop.permute.xlu1 %3859 }
0x458f   :  { %v7021_v40 = vpop.permute.xlu0 %3856  ;;  %vm3868_vm5 = vcmp.eq.s32.totalorder %v7019_v39, %v5070_v27 }
0x4590   :  { %vm3867_vm3 = vcmp.eq.s32.totalorder %v7021_v40, %v5070_v27  ;;  %v4484_v27 = vld [vmem:[%s4966_s4] sm:$0xff] }
0x4591   :  { %v5927_v28 = vpack.c.bf16 %v4485_v26, %v4484_v27  ;;  %v4480_v26 = vld [vmem:[%s4965_s14 + $0x30] sm:$0xff] }
0x45df   :  { %v5600_v41 = vpop.f32.mrb[36].mxu1 }
0x45e0   :  { %v3841_v46 = vadd.f32 %v5600_v41, %v3743_v30  ;;  %v3835_v47 = vpop.f32.mrb[37].mxu1 }
0x45e1   :  { %v3836_v48 = vadd.f32 %v3835_v47, %v3738_v38 }
0x45e2   :  { %v3872_v49 = vsel %vm3868_vm5, %v3841_v46, -1e+09 }
0x45e3   :  { %v3883_v50 = vsel %vm3882_vm4, %v3872_v49, -inf  ;;  %v3871_v52 = vsel %vm3867_vm3, %v3836_v48, -1e+09  ;;  %vm3942_vm3 = vcmp.eq.s32.totalorder %v7021_v40, %v7004_v23 }
0x45e4   :  { %3884 = vmax.xlane.f32.xlu1 %v3883_v50  ;;  %v3879_v8 = vsel %vm344_vm1, %v3871_v52, -inf }
0x45e5   :  { %3880 = vmax.xlane.f32.xlu0 %v3879_v8 }
0x45f5   :  { %4099 = vperm.xlu1 %6010, %v7030_v53  }
0x45f9   :  { %4102 = vperm.xlu1 %6010, %v7033_v0  }
0x45fb   :  { %4096 = vperm.xlu0 %6009, %v7035_v43  }
0x45fd   :  { %4105 = vperm.xlu1 %6010, %v7038_v51  }
0x45ff   :  { %6012 = vrot.lane.b32.xlu0 %v6011_v58, %s6278_s19  ;;  %v3878_v2 = vpop.xlane.xlu0 %3877 }
0x4600   :  { %v3875_v63 = vpop.xlane.xlu1 %3874  ;;  %v7048_v6 = vsub.f32 %v3870_v32, %v3878_v2 }
0x4601   :  { %v7046_v4 = vsub.f32 %v3869_v33, %v3875_v63 }
0x4602   :  { %v3892_v7 = vmul.f32 1.442695, %v7048_v6 }
0x4603   :  { %v3890_v57 = vmul.f32 1.442695, %v7046_v4 }
0x4605   :  { %6218 = vpow2.f32 %v3890_v57 }
0x4606   :  { %6220 = vpow2.f32 %v3892_v7 }
0x460f   :  { %v6219_v36 = vpop.eup %6218 }
0x4610   :  { %v6221_v9 = vpop.eup %6220  ;;  %v3898_v34 = vsel %vm344_vm1, %v6219_v36, 0.0 }
0x4611   :  { %v3901_v54 = vsel %vm344_vm1, %v6221_v9, 0.0 }
0x461e   :  { %3899 = vadd.xlane.f32.xlu0 %v3898_v34 }
0x4621   :  { %3902 = vadd.xlane.f32.xlu1 %v3901_v54 }
0x4632   :  { %4300 = vrot.lane.b32.xlu1 %v6972_v59, %s6278_s19 }
0x4636   :  { %4304 = vrot.lane.b32.xlu1 %v6980_v11, %s6278_s19 }
0x463a   :  { %4306 = vrot.lane.b32.xlu1 %v6984_v13, %s6278_s19 }
0x4671   :  { %v3885_v55 = vpop.xlane.xlu1 %3884 }
0x4672   :  { %v7060_v58 = vsub.f32 %v3872_v49, %v3885_v55  ;;  %v3881_v10 = vpop.xlane.xlu0 %3880 }
0x4673   :  { %v7062_v15 = vsub.f32 %v3871_v52, %v3881_v10  ;;  %v3932_v10 = vadd.s32 8, %v6421_v20 }
0x4674   :  { %v3896_v16 = vmul.f32 1.442695, %v7060_v58 }
0x4675   :  { %v3894_v18 = vmul.f32 1.442695, %v7062_v15  ;;  %v4100_v17 = vpop.permute.xlu1 %4099  ;;  %vm3945_vm12 = vcmp.le.s32.totalorder %v6436_v44, %v3932_v10 }
0x4676   :  { %vm4108_vm7 = vcmp.eq.s32.totalorder %v6436_v44, %v4100_v17 }
0x4677   :  { %6222 = vpow2.f32 %v3894_v18  ;;  %v5086_v56 = vsel %vm4108_vm7, 1.0, %v6267_v60 }
0x4678   :  { %6224 = vpow2.f32 %v3896_v16 }
0x4679   :  { %v4103_v13 = vpop.permute.xlu1 %4102 }
0x467a   :  { %v4097_v59 = vpop.permute.xlu0 %4096  ;;  %vm4109_vm8 = vcmp.eq.s32.totalorder %v6436_v44, %v4103_v13 }
0x467b   :  { %vm4107_vm6 = vcmp.eq.s32.totalorder %v6436_v44, %v4097_v59  ;;  %v7075_v25 = vsel %vm4109_vm8, 1.0, %v6267_v60  ;;  %vm3943_vm8 = vcmp.eq.s32.totalorder %v7019_v39, %v7004_v23 }
0x467c   :  { %v5085_v11 = vsel %vm4107_vm6, 1.0, %v6267_v60  ;;  %vm3949_vm6 = vmand %vm3941_vm14, %vm3945_vm12  ;;  %vm4571_vm12 = vcmask 654336  }
0x467d   :  { %5619 = vmatprep.mubr.msk.f32.mxu1 %vm344_vm1, %v5085_v11  ;;  %v4106_v24 = vpop.permute.xlu1 %4105 }
0x467e   :  { %v6013_v19 = vpop.permute.xlu0 %6012  ;;  %vm4110_vm9 = vcmp.eq.s32.totalorder %v6436_v44, %v4106_v24 }
0x467f   :  { %v6015_v35 = vunpack.i.h.bf16 %v6013_v19  ;;  %v6014_v21 = vunpack.i.l.bf16 %v6013_v19  ;;  %v7082_v42 = vsel %vm4110_vm9, 1.0, %v6267_v60 }
0x4681   :  { %v6223_v22 = vpop.eup %6222  ;;  %v5919_v5 = vpack.c.bf16 %v6015_v35, %v6014_v21  ;;  %v4474_v21 = vld [vmem:[%s4965_s14] sm:$0xff] }
0x4682   :  { %v3904_v1 = vsel %vm344_vm1, %v6223_v22, 0.0  ;;  %v6225_v61 = vpop.eup %6224  ;;  %v4475_v22 = vld [vmem:[%s4965_s14 + $0x8] sm:$0xff] }
0x4683   :  { %5920 = vmatprep.subr.bf16.mxu1 %v5919_v5  ;;  %3905 = vadd.xlane.f32.xlu0 %v3904_v1  ;;  %v3907_v45 = vsel %vm3882_vm4, %v6225_v61, 0.0  ;;  %v5931_v1 = vpack.c.bf16 %v4475_v22, %v4474_v21  ;;  %v4477_v61 = vld [vmem:[%s4965_s14 + $0x18] sm:$0xff] }
0x4684   :  { %5922 = vmatpush3.bf16.msra.mxu1 %v5919_v5  ;;  %v4476_v5 = vld [vmem:[%s4965_s14 + $0x10] sm:$0xff] }
0x4685   :  { %5928 = vmatprep.subr.bf16.mxu1 %v5927_v28  ;;  %v5935_v24 = vpack.c.bf16 %v4477_v61, %v4476_v5 }
0x4687   :  { %3908 = vadd.xlane.f32.xlu0 %v3907_v45  ;;  %5620 = vmatmul.mubr.msk.f32.vlgmr.msra.gmra.mrb[38].mxu1 %vm344_vm1, %v5086_v56  ;;  %v4479_v45 = vld [vmem:[%s4965_s14 + $0x28] sm:$0xff] }
0x4688   :  { %5622 = vmatprep.mubr.msk.f32.mxu1 %vm344_vm1, %v7075_v25  ;;  %5930 = vmatpush3.bf16.msra.mxu1 %v5927_v28  ;;  %v4481_v28 = vld [vmem:[%s4965_s14 + $0x38] sm:$0xff] }
0x4689   :  { %5932 = vmatprep.subr.bf16.mxu1 %v5931_v1 }
0x468b   :  { %5623 = vmatmul.mubr.msk.f32.gmra.mrb[40].mxu1 %vm344_vm1, %v7082_v42 }
0x469d   :  { %4302 = vrot.lane.b32.xlu0 %v6974_v62, %s6278_s19  ;;  %s6294_s19 = smov 25  }
0x469e   :  { %s4964_s9 = sld [smem:[%s7324_s0 + %s6294_s19]]  }
0x46a4   :  { %v4298_v16 = vld [vmem:[%s4964_s9] sm:$0xff]  ;;  %v4299_v18 = vld [vmem:[%s4964_s9 + $0x8] sm:$0xff] }
0x46a5   :  { %v5923_v13 = vpack.c.bf16 %v4299_v18, %v4298_v16 }
0x46ab   :  { %v3900_v14 = vpop.xlane.xlu0 %3899 }
0x46ac   :  { %6226 = vlog2.f32 %v3900_v14  ;;  %v5943_v14 = vpack.c.bf16 %v4481_v28, %v4480_v26 }
0x46ae   :  { %v3903_v29 = vpop.xlane.xlu1 %3902 }
0x46af   :  { %6228 = vlog2.f32 %v3903_v29  ;;  %v4482_v29 = vld [vmem:[%s4965_s14 + $0x40] sm:$0xff] }
0x46b2   :  { %v7091_v31 = vpop.permute.xlu1 %4300 }
0x46b3   :  { %5639 = vmatprep.mubr.msk.f32.mxu1 %vm344_vm1, %v7091_v31 }
0x46b6   :  { %v6227_v32 = vpop.eup %6226  ;;  %v4305_v63 = vpop.permute.xlu1 %4304 }
0x46b7   :  { %v3911_v33 = vmul.f32 0.6931472, %v6227_v32 }
0x46b9   :  { %v6229_v3 = vpop.eup %6228  ;;  %v3918_v37 = vsub.f32 %v7046_v4, %v3911_v33 }
0x46ba   :  { %v3913_v30 = vmul.f32 0.6931472, %v6229_v3 }
0x46bb   :  { %v3922_v38 = vmul.f32 1.442695, %v3918_v37  ;;  %v7096_v41 = vmul.f32 %v5085_v11, %v3918_v37 }
0x46bc   :  { %v3919_v62 = vsub.f32 %v7048_v6, %v3913_v30  ;;  %v4307_v6 = vpop.permute.xlu1 %4306 }
0x46bd   :  { %6230 = vpow2.f32 %v3922_v38 }
0x46be   :  { %v3924_v46 = vmul.f32 1.442695, %v3919_v62  ;;  %v7099_v47 = vmul.f32 %v5086_v56, %v3919_v62  ;;  %v4478_v56 = vld [vmem:[%s4965_s14 + $0x20] sm:$0xff] }
0x46bf   :  { %v5939_v27 = vpack.c.bf16 %v4479_v45, %v4478_v56 }
0x46c0   :  { %6232 = vpow2.f32 %v3924_v46 }
0x46c7   :  { %v6231_v48 = vpop.eup %6230 }
0x46ca   :  { %v6233_v49 = vpop.eup %6232 }
0x46cb   :  { %v5909_v50 = vpack.c.bf16 %v6233_v49, %v6231_v48 }
0x46cd   :  { %5910 = vmatprep.subr.bf16.mxu0 %v5909_v50 }
0x46ce   :  { %5912 = vmatpush3.bf16.msra.mxu0 %v5909_v50 }
0x4710   :  { %v3906_v52 = vpop.xlane.xlu0 %3905 }
0x4711   :  { %6234 = vlog2.f32 %v3906_v52 }
0x4714   :  { %v3909_v8 = vpop.xlane.xlu0 %3908 }
0x4715   :  { %6236 = vlog2.f32 %v3909_v8 }
0x4718   :  { %v4303_v2 = vpop.permute.xlu0 %4302 }
0x4719   :  { %5640 = vmatmul.mubr.msk.f32.vlgmr.msra.gmra.mrb[42].mxu1 %vm344_vm1, %v4303_v2 }
0x471a   :  { %5642 = vmatprep.mubr.msk.f32.mxu1 %vm344_vm1, %v4305_v63  ;;  %5934 = vmatpush3.bf16.msra.mxu1 %v5931_v1 }
0x471b   :  { %v6235_v4 = vpop.eup %6234  ;;  %5936 = vmatprep.subr.bf16.mxu1 %v5935_v24 }
0x471c   :  { %v3915_v57 = vmul.f32 0.6931472, %v6235_v4 }
0x471d   :  { %5643 = vmatmul.mubr.msk.f32.gmra.mrb[44].mxu1 %vm344_vm1, %v4307_v6 }
0x471e   :  { %v7105_v7 = vsub.f32 %v7062_v15, %v3915_v57  ;;  %v3933_v15 = vadd.s32 16, %v6421_v20  ;;  %5938 = vmatpush3.bf16.msra.mxu1 %v5935_v24 }
0x471f   :  { %v6237_v36 = vpop.eup %6236  ;;  %5940 = vmatprep.subr.bf16.mxu1 %v5939_v27 }
0x4720   :  { %v3917_v9 = vmul.f32 0.6931472, %v6237_v36  ;;  %v3926_v34 = vmul.f32 1.442695, %v7105_v7  ;;  %vm3946_vm5 = vcmp.le.s32.totalorder %v6436_v44, %v3933_v15 }
0x4721   :  { %vm3950_vm9 = vmand %vm3942_vm3, %vm3946_vm5 }
0x4722   :  { %v7109_v54 = vsub.f32 %v7060_v58, %v3917_v9  ;;  %6238 = vpow2.f32 %v3926_v34  ;;  %v3934_v58 = vadd.s32 24, %v6421_v20  ;;  %v5073_v20 = vsel %vm3949_vm6, 1.0, %v6267_v60  ;;  %5942 = vmatpush3.bf16.msra.mxu1 %v5939_v27 }
0x4723   :  { %v5074_v12 = vsel %vm3950_vm9, 1.0, %v6267_v60  ;;  %5944 = vmatprep.subr.bf16.mxu1 %v5943_v14  ;;  %vm4161_vm9 = vcmask 5120  }
0x4724   :  { %v3928_v55 = vmul.f32 1.442695, %v7109_v54  ;;  %vm3947_vm7 = vcmp.le.s32.totalorder %v6436_v44, %v3934_v58 }
0x4725   :  { %vm3951_vm15 = vmand %vm3943_vm8, %vm3947_vm7 }
0x4726   :  { %6240 = vpow2.f32 %v3928_v55  ;;  %v5075_v40 = vsel %vm3951_vm15, 1.0, %v6267_v60  ;;  %5946 = vmatpush3.bf16.msra.mxu1 %v5943_v14  ;;  %vm4928_vm15 = vcmask 15360  }
0x472c   :  { %v6239_v17 = vpop.eup %6238 }
0x4730   :  { %v6241_v59 = vpop.eup %6240 }
0x4731   :  { %v5913_v11 = vpack.c.bf16 %v6241_v59, %v6239_v17 }
0x4733   :  { %5915 = vmatprep.subr.msk.bf16.mxu0 %vm5914_vm0, %v5913_v11 }
0x4734   :  { %5918 = vmatpush3.bf16.msk.msra.mxu0 %vm5914_vm0, %v5913_v11 }
0x4735   :  { %5924 = vmatprep.subr.bf16.mxu0 %v5923_v13 }
0x4737   :  { %5610 = vmatmul.mubr.msk.f32.vlgmr.msra.gmra.mrb[48].mxu0 %vm3960_vm13, %v5073_v20 }
0x4738   :  { %5612 = vmatprep.mubr.msk.f32.mxu0 %vm3960_vm13, %v5074_v12  ;;  %5926 = vmatpush3.bf16.msra.mxu0 %v5923_v13 }
0x473b   :  { %5613 = vmatmul.mubr.msk.f32.gmra.mrb[50].mxu0 %vm3960_vm13, %v5075_v40  ;;  %vm4461_vm13 = vcmask 392192  }
0x473c   :  { %5629 = vmatprep.mubr.msk.f32.mxu0 %vm344_vm1, %v7091_v31  ;;  %v4483_v31 = vld [vmem:[%s4965_s14 + $0x48] sm:$0xff] }
0x473d   :  { %v5947_v32 = vpack.c.bf16 %v4483_v31, %v4482_v29 }
0x473f   :  { %5630 = vmatmul.mubr.msk.f32.vlgmr.msra.gmra.mrb[52].mxu0 %vm344_vm1, %v4303_v2  ;;  %5948 = vmatprep.subr.bf16.mxu1 %v5947_v32 }
0x4740   :  { %5632 = vmatprep.mubr.msk.f32.mxu0 %vm344_vm1, %v4305_v63  ;;  %5950 = vmatpush3.bf16.msra.mxu1 %v5947_v32 }
0x4743   :  { %5633 = vmatmul.mubr.msk.f32.gmra.mrb[54].mxu0 %vm344_vm1, %v4307_v6 }
0x475a   :  { %v7139_v23 = vpop.f32.mrb[38].mxu1 }
0x475b   :  { %4407 = vrot.lane.b32.xlu1 %v7139_v23, %s6269_s27  ;;  %v7143_v39 = vpop.f32.mrb[39].mxu1 }
0x475c   :  { %4405 = vrot.lane.b32.xlu0 %v7143_v39, %s6269_s27 }
0x475e   :  { %v7147_v19 = vpop.f32.mrb[40].mxu1 }
0x475f   :  { %4419 = vrot.lane.b32.xlu1 %v7139_v23, %s6270_s28  ;;  %v7151_v35 = vpop.f32.mrb[41].mxu1 }
0x4760   :  { %4417 = vrot.lane.b32.xlu0 %v7143_v39, %s6270_s28 }
0x4763   :  { %4431 = vrot.lane.b32.xlu1 %v7139_v23, %s6296_s10 }
0x4764   :  { %4429 = vrot.lane.b32.xlu0 %v7143_v39, %s6296_s10 }
0x4767   :  { %4409 = vrot.lane.b32.xlu1 %v7151_v35, %s6269_s27 }
0x4768   :  { %4441 = vrot.lane.b32.xlu0 %v7143_v39, %s6272_s6 }
0x476b   :  { %4411 = vrot.lane.b32.xlu1 %v7147_v19, %s6269_s27  ;;  %s6298_s27 = smov 28  }
0x476c   :  { %4443 = vrot.lane.b32.xlu0 %v7139_v23, %s6272_s6  ;;  %s4967_s17 = sld [smem:[%s7324_s0 + %s6298_s27]]  }
0x476f   :  { %4423 = vrot.lane.b32.xlu1 %v7147_v19, %s6270_s28 }
0x4770   :  { %4421 = vrot.lane.b32.xlu0 %v7151_v35, %s6270_s28 }
0x4772   :  { %v4669_v33 = vld [vmem:[%s4967_s17] sm:$0xff]  ;;  %v4670_v3 = vld [vmem:[%s4967_s17 + $0x8] sm:$0xff] }
0x4773   :  { %4435 = vrot.lane.b32.xlu1 %v7147_v19, %s6296_s10  ;;  %v5951_v37 = vpack.c.bf16 %v4670_v3, %v4669_v33 }
0x4774   :  { %4433 = vrot.lane.b32.xlu0 %v7151_v35, %s6296_s10 }
0x4775   :  { %5952 = vmatprep.subr.bf16.mxu1 %v5951_v37 }
0x4777   :  { %4447 = vrot.lane.b32.xlu1 %v7147_v19, %s6272_s6 }
0x4778   :  { %4445 = vrot.lane.b32.xlu0 %v7151_v35, %s6272_s6  ;;  %s6299_s6 = smov 29  }
0x4779   :  { %s4968_s22 = sld [smem:[%s7324_s0 + %s6299_s6]]  }
0x477f   :  { %v5113_v32 = vld [vmem:[%s4968_s22] ss:$0 sm:$0xff] }
0x47cd   :  { %v4408_v30 = vpop.permute.xlu1 %4407 }
0x47ce   :  { %v4406_v38 = vpop.permute.xlu0 %4405  ;;  %v4454_v55 = vsel %vm344_vm1, %v7139_v23, %v4408_v30 }
0x47cf   :  { %v4453_v15 = vsel %vm344_vm1, %v7143_v39, %v4406_v38 }
0x47d1   :  { %v4420_v62 = vpop.permute.xlu1 %4419 }
0x47d2   :  { %v4418_v46 = vpop.permute.xlu0 %4417  ;;  %v4458_v16 = vsel %vm347_vm2, %v4454_v55, %v4420_v62 }
0x47d3   :  { %v4457_v18 = vsel %vm347_vm2, %v4453_v15, %v4418_v46 }
0x47d5   :  { %v4432_v48 = vpop.permute.xlu1 %4431 }
0x47d6   :  { %v4430_v49 = vpop.permute.xlu0 %4429  ;;  %v4463_v17 = vsel %vm4461_vm13, %v4458_v16, %v4432_v48 }
0x47d7   :  { %v4462_v59 = vsel %vm4461_vm13, %v4457_v18, %v4430_v49  ;;  %v4829_v49 = vld [vmem:[%s7230_s29] sm:$0xff] }
0x47d9   :  { %v4410_v50 = vpop.permute.xlu1 %4409 }
0x47da   :  { %v4442_v52 = vpop.permute.xlu0 %4441  ;;  %v4455_v22 = vsel %vm344_vm1, %v7151_v35, %v4410_v50 }
0x47db   :  { %v4466_v21 = vsel %vm1443_vm11, %v4462_v59, %v4442_v52 }
0x47dd   :  { %v4412_v8 = vpop.permute.xlu1 %4411 }
0x47de   :  { %v4444_v63 = vpop.permute.xlu0 %4443  ;;  %v4456_v13 = vsel %vm344_vm1, %v7147_v19, %v4412_v8 }
0x47df   :  { %v4467_v11 = vsel %vm1443_vm11, %v4463_v17, %v4444_v63 }
0x47e1   :  { %v4424_v2 = vpop.permute.xlu1 %4423 }
0x47e2   :  { %v4422_v4 = vpop.permute.xlu0 %4421  ;;  %v4460_v5 = vsel %vm347_vm2, %v4456_v13, %v4424_v2  ;;  %v4831_v13 = vld [vmem:[%s7230_s29 + $0x10] sm:$0xff] }
0x47e3   :  { %v4459_v24 = vsel %vm347_vm2, %v4455_v22, %v4422_v4  ;;  %vm4779_vm2 = vcmask 39936  }
0x47e5   :  { %v4436_v36 = vpop.permute.xlu1 %4435 }
0x47e6   :  { %v4434_v9 = vpop.permute.xlu0 %4433  ;;  %v4465_v56 = vsel %vm4461_vm13, %v4460_v5, %v4436_v36  ;;  %v4123_v5 = vsel %vm344_vm1, %v7096_v41, 0.0 }
0x47e7   :  { %v4464_v45 = vsel %vm4461_vm13, %v4459_v24, %v4434_v9  ;;  %v4121_v24 = vmul.f32 %v7075_v25, %v7105_v7  ;;  %vm4932_vm13 = vcmask 31744  }
0x47e9   :  { %v4448_v20 = vpop.permute.xlu1 %4447 }
0x47ea   :  { %v4446_v1 = vpop.permute.xlu0 %4445  ;;  %v4469_v26 = vsel %vm1443_vm11, %v4465_v56, %v4448_v20  ;;  %v4830_v20 = vld [vmem:[%s7230_s29 + $0x8] sm:$0xff] }
0x47eb   :  { %v4468_v29 = vsel %vm1443_vm11, %v4464_v45, %v4446_v1  ;;  %vm4789_vm11 = vcmask 37888   ;;  %v4832_v1 = vld [vmem:[%s7230_s29 + $0x18] sm:$0x3f]  ;;  %v4129_v45 = vsel %vm344_vm1, %v4121_v24, 0.0 }
0x480a   :  { %v7181_v6 = vpop.f32.mrb[48].mxu0 }
0x480b   :  { %v7183_v57 = vpop.f32.mrb[49].mxu0 }
0x480c   :  { %v5081_v56 = vadd.f32 -2.0, %v7183_v57 }
0x480e   :  { %v7185_v34 = vpop.f32.mrb[50].mxu0 }
0x480f   :  { %v7189_v10 = vpop.f32.mrb[51].mxu0 }
0x4810   :  { %v5083_v41 = vadd.f32 -2.0, %v7189_v10 }
0x4812   :  { %v5631_v58 = vpop.f32.mrb[52].mxu0 }
0x4813   :  { %v4471_v12 = vmul.f32 %v5631_v58, %v4467_v11  ;;  %v4382_v40 = vpop.f32.mrb[53].mxu0 }
0x4814   :  { %v4470_v61 = vmul.f32 %v4466_v21, %v4382_v40 }
0x4816   :  { %v5634_v27 = vpop.f32.mrb[54].mxu0  ;;  %5665 = vmatprep.mubr.msk.f32.mxu1 %vm4571_vm12, %v4470_v61  ;;  %v4126_v61 = vsel %vm344_vm1, %v7099_v47, 0.0 }
0x4817   :  { %v4473_v28 = vmul.f32 %v5634_v27, %v4469_v26  ;;  %v4392_v14 = vpop.f32.mrb[55].mxu0  ;;  %5666 = vmatmul.mubr.msk.f32.vlgmr.msra.gmra.mrb[42].mxu1 %vm4571_vm12, %v4471_v12  ;;  %v4122_v27 = vmul.f32 %v7082_v42, %v7109_v54  ;;  %v4065_v26 = vmax.f32 %v5081_v56, 0.0 }
0x4818   :  { %v4472_v31 = vmul.f32 %v4468_v29, %v4392_v14  ;;  %5954 = vmatpush3.bf16.msra.mxu1 %v5951_v37  ;;  %v4067_v14 = vmax.f32 %v5083_v41, 0.0 }
0x4819   :  { %v4069_v47 = vsel %vm344_vm1, %v4065_v26, 0.0 }
0x481a   :  { %5668 = vmatprep.mubr.msk.f32.mxu1 %vm4571_vm12, %v4472_v31  ;;  %v4075_v25 = vsel %vm344_vm1, %v4067_v14, 0.0 }
0x481b   :  { %5669 = vmatmul.mubr.msk.f32.gmra.mrb[44].mxu1 %vm4571_vm12, %v4473_v28  ;;  %v4132_v28 = vsel %vm3882_vm4, %v4122_v27, 0.0 }
0x481c   :  { %5675 = vmatprep.mubr.msk.f32.mxu1 %vm344_vm1, %v7143_v39 }
0x481f   :  { %5676 = vmatmul.mubr.msk.f32.vlgmr.msra.gmra.mrb[42].mxu1 %vm344_vm1, %v7139_v23 }
0x4820   :  { %5678 = vmatprep.mubr.msk.f32.mxu1 %vm344_vm1, %v7151_v35 }
0x4823   :  { %5679 = vmatmul.mubr.msk.f32.gmra.mrb[44].mxu1 %vm344_vm1, %v7147_v19 }
0x48f2   :  { %v5677_v33 = vpop.f32.mrb[42].mxu1 }
0x48f3   :  { %v4776_v3 = vadd.f32 %v5677_v33, %v5113_v32  ;;  %v4745_v37 = vpop.f32.mrb[43].mxu1 }
0x48f4   :  { %v4775_v39 = vadd.f32 %v5113_v32, %v4745_v37 }
0x48f5   :  { %v4783_v30 = vsel %vm4779_vm2, %v4776_v3, -inf }
0x48f6   :  { %4784 = vmax.xlane.f32.xlu1 %v4783_v30  ;;  %v5680_v23 = vpop.f32.mrb[44].mxu1  ;;  %v4780_v35 = vsel %vm4779_vm2, %v4775_v39, -inf }
0x48f7   :  { %4781 = vmax.xlane.f32.xlu0 %v4780_v35  ;;  %v4755_v38 = vpop.f32.mrb[45].mxu1  ;;  %v4778_v62 = vadd.f32 %v5680_v23, %v5113_v32 }
0x48f8   :  { %v4777_v19 = vadd.f32 %v5113_v32, %v4755_v38 }
0x48f9   :  { %v4790_v48 = vsel %vm4789_vm11, %v4778_v62, -inf }
0x48fa   :  { %v4786_v46 = vsel %vm4779_vm2, %v4777_v19, -inf }
0x48fb   :  { %4787 = vmax.xlane.f32.xlu0 %v4786_v46 }
0x48ff   :  { %4791 = vmax.xlane.f32.xlu0 %v4790_v48 }
0x4907   :  { %4834 = vperm.xlu1 %6010, %v4829_v49  }
0x4983   :  { %v4785_v50 = vpop.xlane.xlu1 %4784 }
0x4984   :  { %v7234_v52 = vsub.f32 %v4776_v3, %v4785_v50  ;;  %v4782_v8 = vpop.xlane.xlu0 %4781 }
0x4985   :  { %v7236_v63 = vsub.f32 %v4775_v39, %v4782_v8 }
0x4986   :  { %v4799_v2 = vmul.f32 1.442695, %v7234_v52 }
0x4987   :  { %v4797_v4 = vmul.f32 1.442695, %v7236_v63  ;;  %v4835_v7 = vpop.permute.xlu1 %4834 }
0x4988   :  { %6242 = vpow2.f32 %v4799_v2  ;;  %v4788_v36 = vpop.xlane.xlu0 %4787  ;;  %vm4845_vm14 = vcmp.eq.s32.totalorder %v6436_v44, %v4835_v7 }
0x4989   :  { %6244 = vpow2.f32 %v4797_v4  ;;  %v7248_v12 = vsub.f32 %v4777_v19, %v4788_v36  ;;  %v5114_v23 = vsel %vm4845_vm14, 1.0, %v6267_v60 }
0x498b   :  { %v4801_v40 = vmul.f32 1.442695, %v7248_v12 }
0x498c   :  { %v4792_v9 = vpop.xlane.xlu0 %4791 }
0x498d   :  { %v7240_v55 = vsub.f32 %v4778_v62, %v4792_v9 }
0x498f   :  { %v4803_v15 = vmul.f32 1.442695, %v7240_v55 }
0x4991   :  { %6246 = vpow2.f32 %v4803_v15  ;;  %v5082_v15 = vadd.f32 -2.0, %v7181_v6  ;;  %v6258_v6 = vld [vmem:[%s6595_s18 + $0x8] sm:$0xff] }
0x4992   :  { %v6243_v16 = vpop.eup %6242  ;;  %6248 = vpow2.f32 %v4801_v40  ;;  %vm4136_vm6 = vcmp.eq.s32.totalorder %v7030_v53, %v6258_v6  ;;  %v6261_v40 = vld [vmem:[%s6595_s18 + $0x18] sm:$0x3f] }
0x4993   :  { %v6245_v18 = vpop.eup %6244  ;;  %v4808_v17 = vsel %vm4779_vm2, %v6243_v16, 0.0 }
0x4994   :  { %4809 = vadd.xlane.f32.xlu0 %v4808_v17  ;;  %v4805_v59 = vsel %vm4779_vm2, %v6245_v18, 0.0  ;;  %v4066_v17 = vmax.f32 %v5082_v15, 0.0 }
0x4995   :  { %4806 = vadd.xlane.f32.xlu1 %v4805_v59 }
0x499b   :  { %v6247_v58 = vpop.eup %6246 }
0x499c   :  { %v4814_v11 = vsel %vm4789_vm11, %v6247_v58, 0.0  ;;  %v6249_v21 = vpop.eup %6248 }
0x499d   :  { %4815 = vadd.xlane.f32.xlu0 %v4814_v11  ;;  %v4811_v22 = vsel %vm4779_vm2, %v6249_v21, 0.0  ;;  %v4072_v11 = vsel %vm344_vm1, %v4066_v17, 0.0  ;;  %vm4138_vm1 = vcmp.eq.s32.totalorder %v7038_v51, %v6261_v40 }
0x499e   :  { %v5092_v53 = vsel %vm4138_vm1, 1.0, %v6267_v60 }
0x499f   :  { %v4173_v41 = vsub.f32 1.0, %v5092_v53 }
0x49a6   :  { %4840 = vperm.xlu1 %6010, %v4831_v13   ;;  %v6259_v13 = vld [vmem:[%s6595_s18] sm:$0xff] }
0x49a7   :  { %vm4135_vm7 = vcmp.eq.s32.totalorder %v7035_v43, %v6259_v13 }
0x49b3   :  { %4837 = vperm.xlu0 %6009, %v4830_v20   ;;  %v5090_v20 = vsel %vm4136_vm6, 1.0, %v6267_v60 }
0x49b4   :  { %v4171_v21 = vsub.f32 1.0, %v5090_v20 }
0x49ca   :  { %4812 = vadd.xlane.f32.xlu1 %v4811_v22 }
0x49d2   :  { %4124 = vadd.xlane.f32.xlu0 %v4123_v5 }
0x49db   :  { %4843 = vperm.xlu1 %6010, %v4832_v1  }
0x49ff   :  { %4127 = vadd.xlane.f32.xlu1 %v4126_v61 }
0x4a03   :  { %4130 = vadd.xlane.f32.xlu1 %v4129_v45 }
0x4a07   :  { %4133 = vadd.xlane.f32.xlu1 %v4132_v28 }
0x4a0b   :  { %4070 = vadd.xlane.f32.xlu1 %v4069_v47 }
0x4a0f   :  { %4076 = vadd.xlane.f32.xlu1 %v4075_v25 }
0x4a21   :  { %v4810_v57 = vpop.xlane.xlu0 %4809 }
0x4a22   :  { %6250 = vlog2.f32 %v4810_v57  ;;  %v4807_v29 = vpop.xlane.xlu1 %4806 }
0x4a23   :  { %6252 = vlog2.f32 %v4807_v29 }
0x4a26   :  { %v4841_v62 = vpop.permute.xlu1 %4840 }
0x4a27   :  { %vm4847_vm5 = vcmp.eq.s32.totalorder %v6436_v44, %v4841_v62 }
0x4a28   :  { %v5116_v2 = vsel %vm4847_vm5, 1.0, %v6267_v60 }
0x4a2a   :  { %v4816_v31 = vpop.xlane.xlu0 %4815 }
0x4a2b   :  { %6254 = vlog2.f32 %v4816_v31 }
0x4a2c   :  { %v6251_v42 = vpop.eup %6250 }
0x4a2d   :  { %v6253_v54 = vpop.eup %6252  ;;  %v4820_v32 = vmul.f32 0.6931472, %v6251_v42 }
0x4a2e   :  { %v4818_v10 = vmul.f32 0.6931472, %v6253_v54 }
0x4a2f   :  { %v4826_v37 = vsub.f32 %v7234_v52, %v4820_v32 }
0x4a30   :  { %v4825_v3 = vsub.f32 %v7236_v63, %v4818_v10 }
0x4a32   :  { %v4838_v33 = vpop.permute.xlu0 %4837  ;;  %v4857_v38 = vmul.f32 %v5114_v23, %v4825_v3 }
0x4a33   :  { %vm4846_vm0 = vcmp.eq.s32.totalorder %v6436_v44, %v4838_v33 }
0x4a34   :  { %v5115_v39 = vsel %vm4846_vm0, 1.0, %v6267_v60  ;;  %v4861_v19 = vsel %vm4779_vm2, %v4857_v38, 0.0 }
0x4a35   :  { %v4858_v30 = vmul.f32 %v5115_v39, %v4826_v37  ;;  %v6255_v48 = vpop.eup %6254 }
0x4a36   :  { %v4824_v52 = vmul.f32 0.6931472, %v6255_v48 }
0x4a37   :  { %v4864_v35 = vsel %vm4779_vm2, %v4858_v30, 0.0 }
0x4a38   :  { %4865 = vadd.xlane.f32.xlu0 %v4864_v35  ;;  %v4828_v36 = vsub.f32 %v7240_v55, %v4824_v52 }
0x4a3c   :  { %4862 = vadd.xlane.f32.xlu0 %v4861_v19 }
0x4a57   :  { %v4813_v46 = vpop.xlane.xlu1 %4812 }
0x4a58   :  { %6256 = vlog2.f32 %v4813_v46 }
0x4a5b   :  { %v4844_v49 = vpop.permute.xlu1 %4843 }
0x4a5c   :  { %vm4848_vm3 = vcmp.eq.s32.totalorder %v6436_v44, %v4844_v49  ;;  %v5084_v44 = vadd.f32 -2.0, %v7185_v34  ;;  %v6260_v34 = vld [vmem:[%s6595_s18 + $0x10] sm:$0xff] }
0x4a5d   :  { %v5117_v4 = vsel %vm4848_vm3, 1.0, %v6267_v60  ;;  %vm4137_vm8 = vcmp.eq.s32.totalorder %v7033_v0, %v6260_v34 }
0x4a5e   :  { %v4860_v16 = vmul.f32 %v5117_v4, %v4828_v36  ;;  %v4068_v58 = vmax.f32 %v5084_v44, 0.0  ;;  %v5091_v22 = vsel %vm4137_vm8, 1.0, %v6267_v60 }
0x4a5f   :  { %v4125_v5 = vpop.xlane.xlu0 %4124  ;;  %v4172_v45 = vsub.f32 1.0, %v5091_v22 }
0x4a60   :  { %v4870_v59 = vsel %vm4789_vm11, %v4860_v16, 0.0  ;;  %v4078_v55 = vsel %vm3882_vm4, %v4068_v58, 0.0  ;;  %vm4155_vm4 = vcmask 7168  }
0x4a62   :  { %v6257_v50 = vpop.eup %6256 }
0x4a63   :  { %v4822_v8 = vmul.f32 0.6931472, %v6257_v50 }
0x4a65   :  { %v4827_v63 = vsub.f32 %v7248_v12, %v4822_v8  ;;  %v5089_v12 = vsel %vm4135_vm7, 1.0, %v6267_v60 }
0x4a66   :  { %v4170_v1 = vsub.f32 1.0, %v5089_v12  ;;  %v4147_v24 = vmul.f32 %v5089_v12, %v4125_v5 }
0x4a67   :  { %v4859_v9 = vmul.f32 %v5116_v2, %v4827_v63 }
0x4a68   :  { %v4174_v27 = vmul.f32 %v4170_v1, %v4125_v5  ;;  %v4156_v51 = vsel %vm4155_vm4, %v4147_v24, 0.0 }
0x4a69   :  { %v4867_v18 = vsel %vm4779_vm2, %v4859_v9, 0.0 }
0x4a6a   :  { %4868 = vadd.xlane.f32.xlu0 %v4867_v18  ;;  %v4182_v60 = vsel %vm4155_vm4, %v4174_v27, 0.0 }
0x4a6e   :  { %4871 = vadd.xlane.f32.xlu0 %v4870_v59 }
0x4a72   :  { %4073 = vadd.xlane.f32.xlu0 %v4072_v11 }
0x4a76   :  { %4079 = vadd.xlane.f32.xlu0 %v4078_v55 }
0x4a8c   :  { %v4128_v61 = vpop.xlane.xlu1 %4127 }
0x4a8d   :  { %v4148_v43 = vmul.f32 %v5090_v20, %v4128_v61  ;;  %v4175_v56 = vmul.f32 %v4171_v21, %v4128_v61 }
0x4a8f   :  { %v4157_v0 = vsel %vm4155_vm4, %v4148_v43, 0.0  ;;  %v4183_v28 = vsel %vm4155_vm4, %v4175_v56, 0.0 }
0x4a90   :  { %v4131_v26 = vpop.xlane.xlu1 %4130  ;;  %v4158_v25 = vadd.f32 %v4157_v0, %v4156_v51  ;;  %v4184_v29 = vadd.f32 %v4183_v28, %v4182_v60 }
0x4a91   :  { %v4149_v14 = vmul.f32 %v5091_v22, %v4131_v26  ;;  %v4176_v47 = vmul.f32 %v4172_v45, %v4131_v26 }
0x4a93   :  { %v4159_v7 = vsel %vm4155_vm4, %v4149_v14, 0.0  ;;  %v4185_v57 = vsel %vm4155_vm4, %v4176_v47, 0.0 }
0x4a94   :  { %v4160_v42 = vadd.f32 %v4159_v7, %v4158_v25  ;;  %v4134_v54 = vpop.xlane.xlu1 %4133  ;;  %v4186_v10 = vadd.f32 %v4185_v57, %v4184_v29 }
0x4a95   :  { %v4150_v31 = vmul.f32 %v5092_v53, %v4134_v54  ;;  %v4177_v32 = vmul.f32 %v4173_v41, %v4134_v54 }
0x4a97   :  { %v4162_v33 = vsel %vm4161_vm9, %v4150_v31, 0.0  ;;  %v4187_v3 = vsel %vm4161_vm9, %v4177_v32, 0.0 }
0x4a98   :  { %v4163_v37 = vadd.f32 %v4162_v33, %v4160_v42  ;;  %v4188_v39 = vadd.f32 %v4187_v3, %v4186_v10 }
0x4a9a   :  { %v4189_v30 = vrot.slane %v4188_v39, 4  ;;  %v4164_v7 = vrot.slane %v4163_v37, 4 }
0x4a9c   :  { %v4190_v23 = vadd.f32 %v4189_v30, %v4188_v39  ;;  %v4165_v29 = vadd.f32 %v4164_v7, %v4163_v37 }
0x4a9e   :  { %v4191_v35 = vrot.slane %v4190_v23, 2  ;;  %v4166_v54 = vrot.slane %v4165_v29, 2 }
0x4aa0   :  { %v4192_v38 = vadd.f32 %v4191_v35, %v4190_v23  ;;  %v4167_v32 = vadd.f32 %v4166_v54, %v4165_v29 }
0x4aa2   :  { %v4193_v19 = vrot.slane %v4192_v38, 1  ;;  %v4168_v33 = vrot.slane %v4167_v32, 1 }
0x4aa4   :  { %v4194_v62 = vadd.f32 %v4193_v19, %v4192_v38  ;;  %v4169_v30 = vadd.f32 %v4168_v33, %v4167_v32 }
0x4aa6   :  { %4916 = vrot.lane.b32.xlu1 %v4194_v62, %s6268_s23 }
0x4ac5   :  { %v4866_v46 = vpop.xlane.xlu0 %4865 }
0x4ac6   :  { %v4874_v52 = vmul.f32 %v5090_v20, %v4866_v46  ;;  %v4895_v8 = vmul.f32 %v4866_v46, %v4171_v21 }
0x4ac8   :  { %v4882_v15 = vsel %vm4155_vm4, %v4874_v52, 0.0  ;;  %v4903_v16 = vsel %vm4155_vm4, %v4895_v8, 0.0 }
0x4ac9   :  { %v4863_v48 = vpop.xlane.xlu0 %4862 }
0x4aca   :  { %v4873_v49 = vmul.f32 %v5089_v12, %v4863_v48  ;;  %v4894_v50 = vmul.f32 %v4863_v48, %v4170_v1 }
0x4acc   :  { %v4881_v2 = vsel %vm4155_vm4, %v4873_v49, 0.0  ;;  %v4902_v4 = vsel %vm4155_vm4, %v4894_v50, 0.0 }
0x4acd   :  { %v4883_v44 = vadd.f32 %v4882_v15, %v4881_v2  ;;  %v4904_v59 = vadd.f32 %v4903_v16, %v4902_v4 }
0x4af7   :  { %v4869_v63 = vpop.xlane.xlu0 %4868 }
0x4af8   :  { %v4875_v36 = vmul.f32 %v5091_v22, %v4869_v63  ;;  %v4896_v9 = vmul.f32 %v4869_v63, %v4172_v45 }
0x4afa   :  { %v4884_v18 = vsel %vm4155_vm4, %v4875_v36, 0.0  ;;  %v4905_v17 = vsel %vm4155_vm4, %v4896_v9, 0.0 }
0x4afb   :  { %v4872_v58 = vpop.xlane.xlu0 %4871  ;;  %v4885_v6 = vadd.f32 %v4884_v18, %v4883_v44  ;;  %v4906_v13 = vadd.f32 %v4905_v17, %v4904_v59 }
0x4afc   :  { %v4876_v11 = vmul.f32 %v5092_v53, %v4872_v58  ;;  %v4897_v55 = vmul.f32 %v4872_v58, %v4173_v41  ;;  %v4071_v41 = vpop.xlane.xlu1 %4070 }
0x4afe   :  { %v4886_v20 = vsel %vm4161_vm9, %v4876_v11, 0.0  ;;  %v4907_v34 = vsel %vm4161_vm9, %v4897_v55, 0.0 }
0x4aff   :  { %v4887_v12 = vadd.f32 %v4886_v20, %v4885_v6  ;;  %v4908_v40 = vadd.f32 %v4907_v34, %v4906_v13  ;;  %v4074_v26 = vpop.xlane.xlu0 %4073 }
0x4b00   :  { %v4081_v51 = vadd.f32 %v4074_v26, %v4071_v41  ;;  %v4077_v14 = vpop.xlane.xlu1 %4076 }
0x4b01   :  { %v4888_v21 = vrot.slane %v4887_v12, 4  ;;  %v4909_v22 = vrot.slane %v4908_v40, 4 }
0x4b02   :  { %v4082_v47 = vadd.f32 %v4081_v51, %v4077_v14 }
0x4b03   :  { %v4889_v5 = vadd.f32 %v4888_v21, %v4887_v12  ;;  %v4910_v1 = vadd.f32 %v4909_v22, %v4908_v40  ;;  %v4080_v28 = vpop.xlane.xlu0 %4079 }
0x4b04   :  { %v4083_v25 = vsel %vm1388_vm10, %v4080_v28, 0.0  ;;  %vm4930_vm10 = vcmask 23552  }
0x4b05   :  { %v4890_v61 = vrot.slane %v4889_v5, 2  ;;  %v4911_v24 = vrot.slane %v4910_v1, 2  ;;  %v4084_v60 = vadd.f32 %v4083_v25, %v4082_v47 }
0x4b07   :  { %v4891_v43 = vadd.f32 %v4890_v61, %v4889_v5  ;;  %v4912_v56 = vadd.f32 %v4911_v24, %v4910_v1  ;;  %v4085_v57 = vrot.slane %v4084_v60, 4 }
0x4b09   :  { %v4892_v45 = vrot.slane %v4891_v43, 1  ;;  %v4913_v27 = vrot.slane %v4912_v56, 1  ;;  %v4086_v42 = vadd.f32 %v4085_v57, %v4084_v60 }
0x4b0b   :  { %v4893_v53 = vadd.f32 %v4892_v45, %v4891_v43  ;;  %v4914_v0 = vadd.f32 %v4913_v27, %v4912_v56  ;;  %v4087_v31 = vrot.slane %v4086_v42, 2 }
0x4b0d   :  { %4920 = vrot.lane.b32.xlu0 %v4893_v53, %s6263_s7  ;;  %4924 = vrot.lane.b32.xlu1 %v4914_v0, %s6277_s15  ;;  %v4088_v10 = vadd.f32 %v4087_v31, %v4086_v42  ;;  %s6301_s7 = smov 30  }
0x4b0e   :  { %s4969_s18 = sld [smem:[%s7324_s0 + %s6301_s7]]  }
0x4b0f   :  { %v4089_v39 = vrot.slane %v4088_v10, 1 }
0x4b11   :  { %v4090_v38 = vadd.f32 %v4089_v39, %v4088_v10 }
0x4b18   :  { %v4917_v3 = vpop.permute.xlu1 %4916 }
0x4b19   :  { %v4927_v23 = vsel %vm4155_vm4, %v4169_v30, %v4917_v3 }
0x4b7f   :  { %v4925_v35 = vpop.permute.xlu1 %4924  ;;  %v4921_v37 = vpop.permute.xlu0 %4920 }
0x4b80   :  { %v4929_v19 = vsel %vm4928_vm15, %v4927_v23, %v4921_v37 }
0x4b81   :  { %v4931_v62 = vsel %vm4930_vm10, %v4929_v19, %v4925_v35 }
0x4b82   :  { %v4933_v46 = vsel %vm4932_vm13, %v4931_v62, %v4090_v38 }
0x4b83   :  { %v4934_v48 = vsel %vm4779_vm2, %v4933_v46, 0.0 }
0x4b84   :  { %4935 = vst [vmem:[%s4969_s18] sm:$0x1] %v4934_v48 }

</bundles_post_ra>
